<compile_context>
chip_gen: v5e
topology: v5e:2x2
jax: 0.10.0
libtpu: 0.0.40
codegen_flags: <defaults>
</compile_context>

<pallas_src>
import jax
import jax.numpy as jnp
from jax.experimental import pallas as pl
from jax.experimental.pallas import tpu as pltpu

P_DROP = 0.2
INV_KEEP = 1.0 / (1.0 - P_DROP)

K_IN, H1, H2, N_OUT = 28 * 28, 512, 512, 10
K_PAD = 896   # 784 padded to a multiple of 128 lanes
N_PAD = 128   # 10 padded to one full lane group (unmasked stores, dense MXU N)


def _round_up(x, m):
    return (x + m - 1) // m * m


def _keep_mask(shape, seed, row_off, layer_salt):
    """Bernoulli(keep = 1 - P_DROP) mask from a cheap integer hash.

    Uses only plain jnp integer vector ops (no pltpu.prng_*), so it lowers both
    under Mosaic on TPU and under the CPU interpreter.  `seed` decorrelates
    calls, `row_off` decorrelates batch tiles, `layer_salt` decorrelates the
    two dropout layers.
    """
    # Scalar-side mixing stays in int32 (wrapping arithmetic).
    mix = row_off + seed * jnp.int32(-1640531535)  # seed * 0x9E3779B1 (mod 2^32)
    rows = jax.lax.broadcasted_iota(jnp.int32, shape, 0) + mix
    cols = jax.lax.broadcasted_iota(jnp.int32, shape, 1)
    x = rows.astype(jnp.uint32) * jnp.uint32(0x85EBCA77)
    x = x ^ (cols.astype(jnp.uint32) * jnp.uint32(0xC2B2AE3D))
    x = x ^ jnp.uint32(layer_salt)
    # murmur3-style finalizer (avalanche).
    x = x ^ (x >> 16)
    x = x * jnp.uint32(0x7FEB352D)
    x = x ^ (x >> 15)
    x = x * jnp.uint32(0x846CA68B)
    x = x ^ (x >> 16)
    # Top 24 bits as a non-negative int32 -> pure integer compare, no
    # int->float convert and no extra multiplies on the VPU.
    r24 = (x >> 8).astype(jnp.int32)
    return r24 >= jnp.int32(int(P_DROP * (1 << 24)))


def mlp_kernel(seed_ref, x_ref, w1_ref, b1_ref, w2_ref, b2_ref, w3_ref, b3_ref,
               o_ref):
    pid = pl.program_id(0)
    seed = seed_ref[0]

    # fc1 (bf16 MXU, f32 accumulate) + bias + relu
    h = jnp.dot(x_ref[...], w1_ref[...], preferred_element_type=jnp.float32)
    h = jnp.maximum(h + b1_ref[...], 0.0)
    # dropout(p=0.2); the 1/(1-p) scale is folded into w2 in the wrapper.
    keep = _keep_mask(h.shape, seed, pid * h.shape[0], 0x3C6EF372)
    h = jnp.where(keep, h, 0.0)

    # fc2 + bias + relu + dropout (scale folded into w3).
    h2 = jnp.dot(h.astype(jnp.bfloat16), w2_ref[...],
                 preferred_element_type=jnp.float32)
    h2 = jnp.maximum(h2 + b2_ref[...], 0.0)
    keep2 = _keep_mask(h2.shape, seed, pid * h2.shape[0], 0x61C88647)
    h2 = jnp.where(keep2, h2, 0.0)

    # fc3 logits (output padded to 128 lanes; extra lanes are zero).
    out = jnp.dot(h2.astype(jnp.bfloat16), w3_ref[...],
                  preferred_element_type=jnp.float32)
    o_ref[...] = (out + b3_ref[...]).astype(o_ref.dtype)


@jax.jit
def net_forward(x_nchw, params, seed):
    """Forward pass of Net. x_nchw: (B, 1, 28, 28) float32; seed: (1,) int32."""
    w1, b1, w2, b2, w3, b3 = params
    B = x_nchw.shape[0]

    # x.view(-1, 784); cast to bf16 (halves HBM traffic), pad K 784 -> 896.
    x2d = x_nchw.reshape(B, K_IN).astype(jnp.bfloat16)
    x2d = jnp.pad(x2d, ((0, 0), (0, K_PAD - K_IN)))

    # Batch tile for the pipelined grid (weights stay resident across tiles).
    TM = 256 if B >= 256 else _round_up(B, 16)
    B_pad = _round_up(B, TM)
    if B_pad != B:
        x2d = jnp.pad(x2d, ((0, B_pad - B), (0, 0)))

    # bf16 weights; dropout inverse-keep scale folded into w2/w3; fc1 K padded;
    # fc3 N padded to 128 lanes.  Biases stay f32 (added to the f32 accumulator).
    w1p = jnp.pad(w1, ((0, K_PAD - K_IN), (0, 0))).astype(jnp.bfloat16)
    w2p = (w2 * INV_KEEP).astype(jnp.bfloat16)
    w3p = jnp.pad(w3 * INV_KEEP, ((0, 0), (0, N_PAD - N_OUT))).astype(jnp.bfloat16)
    b1r = b1.reshape(1, H1)
    b2r = b2.reshape(1, H2)
    b3r = jnp.pad(b3, (0, N_PAD - N_OUT)).reshape(1, N_PAD)

    grid = (B_pad // TM,)
    grid_spec = pltpu.PrefetchScalarGridSpec(
        num_scalar_prefetch=1,            # seed lands in SMEM
        grid=grid,
        in_specs=[
            pl.BlockSpec((TM, K_PAD), lambda i, s: (i, 0)),   # x tile
            pl.BlockSpec((K_PAD, H1), lambda i, s: (0, 0)),   # w1 (resident)
            pl.BlockSpec((1, H1),     lambda i, s: (0, 0)),   # b1
            pl.BlockSpec((H1, H2),    lambda i, s: (0, 0)),   # w2 (resident)
            pl.BlockSpec((1, H2),     lambda i, s: (0, 0)),   # b2
            pl.BlockSpec((H2, N_PAD), lambda i, s: (0, 0)),   # w3 (resident)
            pl.BlockSpec((1, N_PAD),  lambda i, s: (0, 0)),   # b3
        ],
        out_specs=pl.BlockSpec((TM, N_PAD), lambda i, s: (i, 0)),
    )

    out = pl.pallas_call(
        mlp_kernel,
        out_shape=jax.ShapeDtypeStruct((B_pad, N_PAD), jnp.float32),
        grid_spec=grid_spec,
        compiler_params=pltpu.CompilerParams(
            dimension_semantics=("parallel",)),   # dual-TC sharding on v7x
    )(seed, x2d, w1p, b1r, w2p, b2r, w3p, b3r)

    return out[:B, :N_OUT]


def init_params(key):
    """Deterministic init mirroring nn.Linear default U(-1/sqrt(fan_in), ..)."""
    def linear(key, fan_in, fan_out):
        kw, kb = jax.random.split(key)
        bound = 1.0 / jnp.sqrt(fan_in)
        w = jax.random.uniform(kw, (fan_in, fan_out), jnp.float32, -bound, bound)
        b = jax.random.uniform(kb, (fan_out,), jnp.float32, -bound, bound)
        return w, b

    k1, k2, k3 = jax.random.split(key, 3)
    w1, b1 = linear(k1, K_IN, H1)
    w2, b2 = linear(k2, H1, H2)
    w3, b3 = linear(k3, H2, N_OUT)
    return (w1, b1, w2, b2, w3, b3)


if __name__ == "__main__":
    key = jax.random.PRNGKey(0)
    kp, kx = jax.random.split(key)

    params = init_params(kp)

    B = 8
    x = jax.random.normal(kx, (B, 1, 28, 28), jnp.float32)  # NCHW MNIST-like
    seed = jnp.array([1234], dtype=jnp.int32)

    logits = net_forward(x, params, seed)
    jax.block_until_ready(logits)

    assert logits.shape == (B, 10)
    assert logits.dtype == jnp.float32
    assert bool(jnp.all(jnp.isfinite(logits)))
    print("KERNEL_OK")
</pallas_src>

<mosaic_0001>
module attributes {stable_mosaic.version = 11 : i64} {
  func.func @mlp_kernel(%arg0: i32, %arg1: memref<1xi32, #tpu.memory_space<smem>>, %arg2: memref<16x896xbf16, #tpu.memory_space<vmem>>, %arg3: memref<896x512xbf16, #tpu.memory_space<vmem>>, %arg4: memref<1x512xf32, #tpu.memory_space<vmem>>, %arg5: memref<512x512xbf16, #tpu.memory_space<vmem>>, %arg6: memref<1x512xf32, #tpu.memory_space<vmem>>, %arg7: memref<512x128xbf16, #tpu.memory_space<vmem>>, %arg8: memref<1x128xf32, #tpu.memory_space<vmem>>, %arg9: memref<16x128xf32, #tpu.memory_space<vmem>>) attributes {dimension_semantics = [#tpu.dimension_semantics<parallel>], iteration_bounds = array<i64: 1>, scalar_prefetch = 1 : i64, scratch_operands = 0 : i64, tpu.core_type = #tpu.core_type<tc>, window_params = [{transform_indices = @transform_0, window_bounds = array<i64: 16, 896>}, {pipeline_mode = #tpu.pipeline_mode<synchronous>, transform_indices = @transform_1, window_bounds = array<i64: 896, 512>}, {pipeline_mode = #tpu.pipeline_mode<synchronous>, transform_indices = @transform_2, window_bounds = array<i64: 1, 512>}, {pipeline_mode = #tpu.pipeline_mode<synchronous>, transform_indices = @transform_3, window_bounds = array<i64: 512, 512>}, {pipeline_mode = #tpu.pipeline_mode<synchronous>, transform_indices = @transform_4, window_bounds = array<i64: 1, 512>}, {pipeline_mode = #tpu.pipeline_mode<synchronous>, transform_indices = @transform_5, window_bounds = array<i64: 512, 128>}, {pipeline_mode = #tpu.pipeline_mode<synchronous>, transform_indices = @transform_6, window_bounds = array<i64: 1, 128>}, {transform_indices = @transform_7, window_bounds = array<i64: 16, 128>}]} {
    %c0 = arith.constant 0 : index
    %0 = memref.load %arg1[%c0] : memref<1xi32, #tpu.memory_space<smem>>
    %c0_0 = arith.constant 0 : index
    %c0_1 = arith.constant 0 : index
    %1 = vector.load %arg2[%c0_0, %c0_1] : memref<16x896xbf16, #tpu.memory_space<vmem>>, vector<16x896xbf16>
    %c0_2 = arith.constant 0 : index
    %c0_3 = arith.constant 0 : index
    %2 = vector.load %arg3[%c0_2, %c0_3] : memref<896x512xbf16, #tpu.memory_space<vmem>>, vector<896x512xbf16>
    %cst = arith.constant dense<0.000000e+00> : vector<16x512xf32>
    %3 = tpu.matmul %1, %2, %cst {dimension_numbers = #tpu.dot_dimension_numbers<[1], [0], [0], [1], [0, 0, 1, 1], [], []>} : vector<16x896xbf16>, vector<896x512xbf16>, vector<16x512xf32> -> vector<16x512xf32>
    %c0_4 = arith.constant 0 : index
    %c0_5 = arith.constant 0 : index
    %4 = vector.load %arg4[%c0_4, %c0_5] : memref<1x512xf32, #tpu.memory_space<vmem>>, vector<1x512xf32>
    %5 = vector.broadcast %4 : vector<1x512xf32> to vector<16x512xf32>
    %6 = arith.addf %3, %5 : vector<16x512xf32>
    %cst_6 = arith.constant 0.000000e+00 : f32
    %7 = vector.broadcast %cst_6 : f32 to vector<16x512xf32>
    %8 = arith.maximumf %6, %7 : vector<16x512xf32>
    %c16_i32 = arith.constant 16 : i32
    %9 = arith.muli %arg0, %c16_i32 : i32
    %c-1640531535_i32 = arith.constant -1640531535 : i32
    %10 = arith.muli %0, %c-1640531535_i32 : i32
    %11 = arith.addi %9, %10 : i32
    %12 = tpu.iota {dimensions = array<i32: 0>} : vector<16x512xi32>
    %13 = vector.broadcast %11 : i32 to vector<16x512xi32>
    %14 = arith.addi %12, %13 : vector<16x512xi32>
    %15 = tpu.iota {dimensions = array<i32: 1>} : vector<16x512xi32>
    %c-2048144777_i32 = arith.constant -2048144777 : i32
    %16 = vector.broadcast %c-2048144777_i32 : i32 to vector<16x512xi32>
    %17 = arith.muli %14, %16 : vector<16x512xi32>
    %c-1028477379_i32 = arith.constant -1028477379 : i32
    %18 = vector.broadcast %c-1028477379_i32 : i32 to vector<16x512xi32>
    %19 = arith.muli %15, %18 : vector<16x512xi32>
    %20 = arith.xori %17, %19 : vector<16x512xi32>
    %c1013904242_i32 = arith.constant 1013904242 : i32
    %21 = vector.broadcast %c1013904242_i32 : i32 to vector<16x512xi32>
    %22 = arith.xori %20, %21 : vector<16x512xi32>
    %c16_i32_7 = arith.constant 16 : i32
    %23 = vector.broadcast %c16_i32_7 : i32 to vector<16x512xi32>
    %24 = arith.shrui %22, %23 : vector<16x512xi32>
    %25 = arith.xori %22, %24 : vector<16x512xi32>
    %c2146121005_i32 = arith.constant 2146121005 : i32
    %26 = vector.broadcast %c2146121005_i32 : i32 to vector<16x512xi32>
    %27 = arith.muli %25, %26 : vector<16x512xi32>
    %c15_i32 = arith.constant 15 : i32
    %28 = vector.broadcast %c15_i32 : i32 to vector<16x512xi32>
    %29 = arith.shrui %27, %28 : vector<16x512xi32>
    %30 = arith.xori %27, %29 : vector<16x512xi32>
    %c-2073254261_i32 = arith.constant -2073254261 : i32
    %31 = vector.broadcast %c-2073254261_i32 : i32 to vector<16x512xi32>
    %32 = arith.muli %30, %31 : vector<16x512xi32>
    %c16_i32_8 = arith.constant 16 : i32
    %33 = vector.broadcast %c16_i32_8 : i32 to vector<16x512xi32>
    %34 = arith.shrui %32, %33 : vector<16x512xi32>
    %35 = arith.xori %32, %34 : vector<16x512xi32>
    %c8_i32 = arith.constant 8 : i32
    %36 = vector.broadcast %c8_i32 : i32 to vector<16x512xi32>
    %37 = arith.shrui %35, %36 : vector<16x512xi32>
    %c3355443_i32 = arith.constant 3355443 : i32
    %38 = vector.broadcast %c3355443_i32 : i32 to vector<16x512xi32>
    %39 = arith.cmpi sge, %37, %38 : vector<16x512xi32>
    %cst_9 = arith.constant 0.000000e+00 : f32
    %40 = vector.broadcast %cst_9 : f32 to vector<16x512xf32>
    %41 = arith.select %39, %8, %40 : vector<16x512xi1>, vector<16x512xf32>
    %42 = arith.truncf %41 : vector<16x512xf32> to vector<16x512xbf16>
    %c0_10 = arith.constant 0 : index
    %c0_11 = arith.constant 0 : index
    %43 = vector.load %arg5[%c0_10, %c0_11] : memref<512x512xbf16, #tpu.memory_space<vmem>>, vector<512x512xbf16>
    %cst_12 = arith.constant dense<0.000000e+00> : vector<16x512xf32>
    %44 = tpu.matmul %42, %43, %cst_12 {dimension_numbers = #tpu.dot_dimension_numbers<[1], [0], [0], [1], [0, 0, 1, 1], [], []>} : vector<16x512xbf16>, vector<512x512xbf16>, vector<16x512xf32> -> vector<16x512xf32>
    %c0_13 = arith.constant 0 : index
    %c0_14 = arith.constant 0 : index
    %45 = vector.load %arg6[%c0_13, %c0_14] : memref<1x512xf32, #tpu.memory_space<vmem>>, vector<1x512xf32>
    %46 = vector.broadcast %45 : vector<1x512xf32> to vector<16x512xf32>
    %47 = arith.addf %44, %46 : vector<16x512xf32>
    %cst_15 = arith.constant 0.000000e+00 : f32
    %48 = vector.broadcast %cst_15 : f32 to vector<16x512xf32>
    %49 = arith.maximumf %47, %48 : vector<16x512xf32>
    %c16_i32_16 = arith.constant 16 : i32
    %50 = arith.muli %arg0, %c16_i32_16 : i32
    %c-1640531535_i32_17 = arith.constant -1640531535 : i32
    %51 = arith.muli %0, %c-1640531535_i32_17 : i32
    %52 = arith.addi %50, %51 : i32
    %53 = tpu.iota {dimensions = array<i32: 0>} : vector<16x512xi32>
    %54 = vector.broadcast %52 : i32 to vector<16x512xi32>
    %55 = arith.addi %53, %54 : vector<16x512xi32>
    %56 = tpu.iota {dimensions = array<i32: 1>} : vector<16x512xi32>
    %c-2048144777_i32_18 = arith.constant -2048144777 : i32
    %57 = vector.broadcast %c-2048144777_i32_18 : i32 to vector<16x512xi32>
    %58 = arith.muli %55, %57 : vector<16x512xi32>
    %c-1028477379_i32_19 = arith.constant -1028477379 : i32
    %59 = vector.broadcast %c-1028477379_i32_19 : i32 to vector<16x512xi32>
    %60 = arith.muli %56, %59 : vector<16x512xi32>
    %61 = arith.xori %58, %60 : vector<16x512xi32>
    %c1640531527_i32 = arith.constant 1640531527 : i32
    %62 = vector.broadcast %c1640531527_i32 : i32 to vector<16x512xi32>
    %63 = arith.xori %61, %62 : vector<16x512xi32>
    %c16_i32_20 = arith.constant 16 : i32
    %64 = vector.broadcast %c16_i32_20 : i32 to vector<16x512xi32>
    %65 = arith.shrui %63, %64 : vector<16x512xi32>
    %66 = arith.xori %63, %65 : vector<16x512xi32>
    %c2146121005_i32_21 = arith.constant 2146121005 : i32
    %67 = vector.broadcast %c2146121005_i32_21 : i32 to vector<16x512xi32>
    %68 = arith.muli %66, %67 : vector<16x512xi32>
    %c15_i32_22 = arith.constant 15 : i32
    %69 = vector.broadcast %c15_i32_22 : i32 to vector<16x512xi32>
    %70 = arith.shrui %68, %69 : vector<16x512xi32>
    %71 = arith.xori %68, %70 : vector<16x512xi32>
    %c-2073254261_i32_23 = arith.constant -2073254261 : i32
    %72 = vector.broadcast %c-2073254261_i32_23 : i32 to vector<16x512xi32>
    %73 = arith.muli %71, %72 : vector<16x512xi32>
    %c16_i32_24 = arith.constant 16 : i32
    %74 = vector.broadcast %c16_i32_24 : i32 to vector<16x512xi32>
    %75 = arith.shrui %73, %74 : vector<16x512xi32>
    %76 = arith.xori %73, %75 : vector<16x512xi32>
    %c8_i32_25 = arith.constant 8 : i32
    %77 = vector.broadcast %c8_i32_25 : i32 to vector<16x512xi32>
    %78 = arith.shrui %76, %77 : vector<16x512xi32>
    %c3355443_i32_26 = arith.constant 3355443 : i32
    %79 = vector.broadcast %c3355443_i32_26 : i32 to vector<16x512xi32>
    %80 = arith.cmpi sge, %78, %79 : vector<16x512xi32>
    %cst_27 = arith.constant 0.000000e+00 : f32
    %81 = vector.broadcast %cst_27 : f32 to vector<16x512xf32>
    %82 = arith.select %80, %49, %81 : vector<16x512xi1>, vector<16x512xf32>
    %83 = arith.truncf %82 : vector<16x512xf32> to vector<16x512xbf16>
    %c0_28 = arith.constant 0 : index
    %c0_29 = arith.constant 0 : index
    %84 = vector.load %arg7[%c0_28, %c0_29] : memref<512x128xbf16, #tpu.memory_space<vmem>>, vector<512x128xbf16>
    %cst_30 = arith.constant dense<0.000000e+00> : vector<16x128xf32>
    %85 = tpu.matmul %83, %84, %cst_30 {dimension_numbers = #tpu.dot_dimension_numbers<[1], [0], [0], [1], [0, 0, 1, 1], [], []>} : vector<16x512xbf16>, vector<512x128xbf16>, vector<16x128xf32> -> vector<16x128xf32>
    %c0_31 = arith.constant 0 : index
    %c0_32 = arith.constant 0 : index
    %86 = vector.load %arg8[%c0_31, %c0_32] : memref<1x128xf32, #tpu.memory_space<vmem>>, vector<1x128xf32>
    %87 = vector.broadcast %86 : vector<1x128xf32> to vector<16x128xf32>
    %88 = arith.addf %85, %87 : vector<16x128xf32>
    %c0_33 = arith.constant 0 : index
    %c0_34 = arith.constant 0 : index
    %89 = vector.load %arg9[%c0_33, %c0_34] : memref<16x128xf32, #tpu.memory_space<vmem>>, vector<16x128xf32>
    tpu.vector_store %arg9[%c0_33, %c0_34], %88 {strides = array<i32>} : memref<16x128xf32, #tpu.memory_space<vmem>>, vector<16x128xf32>,
    return
  }
  func.func @transform_0(%arg0: i32, %arg1: memref<1xi32, #tpu.memory_space<smem>>) -> (i32, i32) {
    %c0_i32 = arith.constant 0 : i32
    %c0_i32_0 = arith.constant 0 : i32
    return %arg0, %c0_i32 : i32, i32
  }
  func.func @transform_1(%arg0: i32, %arg1: memref<1xi32, #tpu.memory_space<smem>>) -> (i32, i32) {
    %c0_i32 = arith.constant 0 : i32
    %c0_i32_0 = arith.constant 0 : i32
    %c0_i32_1 = arith.constant 0 : i32
    return %c0_i32, %c0_i32_0 : i32, i32
  }
  func.func @transform_2(%arg0: i32, %arg1: memref<1xi32, #tpu.memory_space<smem>>) -> (i32, i32) {
    %c0_i32 = arith.constant 0 : i32
    %c0_i32_0 = arith.constant 0 : i32
    %c0_i32_1 = arith.constant 0 : i32
    return %c0_i32, %c0_i32_0 : i32, i32
  }
  func.func @transform_3(%arg0: i32, %arg1: memref<1xi32, #tpu.memory_space<smem>>) -> (i32, i32) {
    %c0_i32 = arith.constant 0 : i32
    %c0_i32_0 = arith.constant 0 : i32
    %c0_i32_1 = arith.constant 0 : i32
    return %c0_i32, %c0_i32_0 : i32, i32
  }
  func.func @transform_4(%arg0: i32, %arg1: memref<1xi32, #tpu.memory_space<smem>>) -> (i32, i32) {
    %c0_i32 = arith.constant 0 : i32
    %c0_i32_0 = arith.constant 0 : i32
    %c0_i32_1 = arith.constant 0 : i32
    return %c0_i32, %c0_i32_0 : i32, i32
  }
  func.func @transform_5(%arg0: i32, %arg1: memref<1xi32, #tpu.memory_space<smem>>) -> (i32, i32) {
    %c0_i32 = arith.constant 0 : i32
    %c0_i32_0 = arith.constant 0 : i32
    %c0_i32_1 = arith.constant 0 : i32
    return %c0_i32, %c0_i32_0 : i32, i32
  }
  func.func @transform_6(%arg0: i32, %arg1: memref<1xi32, #tpu.memory_space<smem>>) -> (i32, i32) {
    %c0_i32 = arith.constant 0 : i32
    %c0_i32_0 = arith.constant 0 : i32
    %c0_i32_1 = arith.constant 0 : i32
    return %c0_i32, %c0_i32_0 : i32, i32
  }
  func.func @transform_7(%arg0: i32, %arg1: memref<1xi32, #tpu.memory_space<smem>>) -> (i32, i32) {
    %c0_i32 = arith.constant 0 : i32
    %c0_i32_0 = arith.constant 0 : i32
    return %arg0, %c0_i32 : i32, i32
  }
}

</mosaic_0001>

<bundles_post_ra>
// kernel: net_forward.1
= control target key start
LH: loop header
LB: loop body
LE: loop exit
PB: predicated region body
PF: predicated region fallthrough
CT: control target
= control target key end

     0   :  { %s7974_s2 = inlined_call_operand.vmem [shape: bf16[896,512], index: 2, kind: input, shape index: {}]   ;;  %s7975_s1 = inlined_call_operand.vmem [shape: bf16[16,896], index: 1, kind: input, shape index: {}]   ;;  %s7976_s0 = inlined_call_operand.<no memory space> [shape: s32[1], index: 0, kind: input, shape index: {}]   ;;  %s7977_s3 = inlined_call_operand.vmem [shape: f32[1,512], index: 3, kind: input, shape index: {}]   ;;  %s7978_s4 = inlined_call_operand.vmem [shape: bf16[512,512], index: 4, kind: input, shape index: {}]   ;;  %s7979_s6 = inlined_call_operand.vmem [shape: bf16[512,128], index: 6, kind: input, shape index: {}]   ;;  %s7980_s7 = inlined_call_operand.vmem [shape: f32[1,128], index: 7, kind: input, shape index: {}]   ;;  %s7981_s5 = inlined_call_operand.vmem [shape: f32[1,512], index: 5, kind: input, shape index: {}]   ;;  %s7982_s8 = inlined_call_operand.vmem [shape: f32[16,128], index: 8, kind: output, shape index: {}]  }
   0x1   :  { %v3529_v0 = vld [vmem:[%s7974_s2 + $0xe0] sm:$0xf]  ;;  %v5048_v1 = vld [vmem:[%s7974_s2 + $0xec] sm:$0xf0]  ;;  %s1828_s26 = smul.u32 2654435761, %s7976_s0 }
   0x2   :  { %v3657_v2 = vld [vmem:[%s7974_s2 + $0x1e0] sm:$0xf]  ;;  %v3530_v3 = vor.u32 %v5048_v1, %v3529_v0  ;;  %v5080_v4 = vld [vmem:[%s7974_s2 + $0x1ec] sm:$0xf0] }
   0x3   :  { %v3785_v5 = vld [vmem:[%s7974_s2 + $0x2e0] sm:$0xf]  ;;  %v5112_v6 = vld [vmem:[%s7974_s2 + $0x2ec] sm:$0xf0]  ;;  %v3658_v7 = vor.u32 %v5080_v4, %v3657_v2 }
   0x4   :  { %v3786_v8 = vor.u32 %v5112_v6, %v3785_v5  ;;  %v3913_v9 = vld [vmem:[%s7974_s2 + $0x3e0] sm:$0xf]  ;;  %v5144_v10 = vld [vmem:[%s7974_s2 + $0x3ec] sm:$0xf0]  ;;  %1427 = vmatpush.bf16.msra.mxu0 %v3530_v3 }
   0x5   :  { %v3513_v11 = vld [vmem:[%s7974_s2 + $0xc0] sm:$0xf]  ;;  %v3914_v12 = vor.u32 %v5144_v10, %v3913_v9  ;;  %v5044_v13 = vld [vmem:[%s7974_s2 + $0xcc] sm:$0xf0]  ;;  %1441 = vmatpush.bf16.msra.mxu1 %v3658_v7 }
   0x6   :  { %v3641_v14 = vld [vmem:[%s7974_s2 + $0x1c0] sm:$0xf]  ;;  %v5076_v15 = vld [vmem:[%s7974_s2 + $0x1cc] sm:$0xf0]  ;;  %1455 = vmatpush.bf16.msra.mxu2 %v3786_v8  ;;  %v3514_v16 = vor.u32 %v5044_v13, %v3513_v11 }
   0x7   :  { %v3642_v17 = vor.u32 %v5076_v15, %v3641_v14  ;;  %v3769_v18 = vld [vmem:[%s7974_s2 + $0x2c0] sm:$0xf]  ;;  %v5108_v19 = vld [vmem:[%s7974_s2 + $0x2cc] sm:$0xf0]  ;;  %1469 = vmatpush.bf16.msra.mxu3 %v3914_v12 }
   0x8   :  { %v3897_v20 = vld [vmem:[%s7974_s2 + $0x3c0] sm:$0xf]  ;;  %v3770_v21 = vor.u32 %v5108_v19, %v3769_v18  ;;  %v5140_v22 = vld [vmem:[%s7974_s2 + $0x3cc] sm:$0xf0]  ;;  %1428 = vmatpush.bf16.msra.mxu0 %v3514_v16 }
   0x9   :  { %v3497_v23 = vld [vmem:[%s7974_s2 + $0xa0] sm:$0xf]  ;;  %v5040_v24 = vld [vmem:[%s7974_s2 + $0xac] sm:$0xf0]  ;;  %v3898_v25 = vor.u32 %v5140_v22, %v3897_v20  ;;  %1442 = vmatpush.bf16.msra.mxu1 %v3642_v17 }
   0xa   :  { %v3625_v26 = vld [vmem:[%s7974_s2 + $0x1a0] sm:$0xf]  ;;  %v5072_v27 = vld [vmem:[%s7974_s2 + $0x1ac] sm:$0xf0]  ;;  %v3498_v29 = vor.u32 %v5040_v24, %v3497_v23  ;;  %1456 = vmatpush.bf16.msra.mxu2 %v3770_v21 }
   0xb   :  { %v3753_v28 = vld [vmem:[%s7974_s2 + $0x2a0] sm:$0xf]  ;;  %v5104_v30 = vld [vmem:[%s7974_s2 + $0x2ac] sm:$0xf0]  ;;  %v3626_v33 = vor.u32 %v5072_v27, %v3625_v26  ;;  %1470 = vmatpush.bf16.msra.mxu3 %v3898_v25 }
   0xc   :  { %v3881_v31 = vld [vmem:[%s7974_s2 + $0x3a0] sm:$0xf]  ;;  %v5136_v32 = vld [vmem:[%s7974_s2 + $0x3ac] sm:$0xf0]  ;;  %v3754_v34 = vor.u32 %v5104_v30, %v3753_v28  ;;  %1429 = vmatpush.bf16.msra.mxu0 %v3498_v29 }
   0xd   :  { %v3481_v35 = vld [vmem:[%s7974_s2 + $0x80] sm:$0xf]  ;;  %v5036_v36 = vld [vmem:[%s7974_s2 + $0x8c] sm:$0xf0]  ;;  %v3882_v38 = vor.u32 %v5136_v32, %v3881_v31  ;;  %1443 = vmatpush.bf16.msra.mxu1 %v3626_v33 }
   0xe   :  { %v3609_v37 = vld [vmem:[%s7974_s2 + $0x180] sm:$0xf]  ;;  %v5068_v39 = vld [vmem:[%s7974_s2 + $0x18c] sm:$0xf0]  ;;  %v3482_v44 = vor.u32 %v5036_v36, %v3481_v35  ;;  %1457 = vmatpush.bf16.msra.mxu2 %v3754_v34 }
   0xf   :  { %v3737_v40 = vld [vmem:[%s7974_s2 + $0x280] sm:$0xf]  ;;  %v5100_v41 = vld [vmem:[%s7974_s2 + $0x28c] sm:$0xf0]  ;;  %v3610_v45 = vor.u32 %v5068_v39, %v3609_v37  ;;  %1471 = vmatpush.bf16.msra.mxu3 %v3882_v38  ;;  %v5046_v37 = vld [vmem:[%s7974_s2 + $0xe4] sm:$0xf] }
  0x10   :  { %v3865_v42 = vld [vmem:[%s7974_s2 + $0x380] sm:$0xf]  ;;  %v5132_v43 = vld [vmem:[%s7974_s2 + $0x38c] sm:$0xf0]  ;;  %v3738_v46 = vor.u32 %v5100_v41, %v3737_v40  ;;  %1430 = vmatpush.bf16.msra.mxu0 %v3482_v44  ;;  %v3531_v38 = vld [vmem:[%s7974_s2 + $0xf0] sm:$0xf0] }
  0x11   :  { %v3465_v47 = vld [vmem:[%s7974_s2 + $0x60] sm:$0xf]  ;;  %v5032_v48 = vld [vmem:[%s7974_s2 + $0x6c] sm:$0xf0]  ;;  %v3866_v50 = vor.u32 %v5132_v43, %v3865_v42  ;;  %1444 = vmatpush.bf16.msra.mxu1 %v3610_v45 }
  0x12   :  { %v3593_v49 = vld [vmem:[%s7974_s2 + $0x160] sm:$0xf]  ;;  %v5064_v51 = vld [vmem:[%s7974_s2 + $0x16c] sm:$0xf0]  ;;  %v3466_v56 = vor.u32 %v5032_v48, %v3465_v47  ;;  %1458 = vmatpush.bf16.msra.mxu2 %v3738_v46  ;;  %v3534_v48 = vor.u32 %v5046_v37, %v3531_v38 }
  0x13   :  { %v3721_v52 = vld [vmem:[%s7974_s2 + $0x260] sm:$0xf]  ;;  %v5096_v53 = vld [vmem:[%s7974_s2 + $0x26c] sm:$0xf0]  ;;  %v3594_v57 = vor.u32 %v5064_v51, %v3593_v49  ;;  %1472 = vmatpush.bf16.msra.mxu3 %v3866_v50  ;;  %v5042_v50 = vld [vmem:[%s7974_s2 + $0xc4] sm:$0xf] }
  0x14   :  { %v3849_v54 = vld [vmem:[%s7974_s2 + $0x360] sm:$0xf]  ;;  %v5128_v55 = vld [vmem:[%s7974_s2 + $0x36c] sm:$0xf0]  ;;  %v3722_v58 = vor.u32 %v5096_v53, %v3721_v52  ;;  %1431 = vmatpush.bf16.msra.mxu0 %v3466_v56  ;;  %v3515_v51 = vld [vmem:[%s7974_s2 + $0xd0] sm:$0xf0] }
  0x15   :  { %v3449_v59 = vld [vmem:[%s7974_s2 + $0x40] sm:$0xf]  ;;  %v5028_v60 = vld [vmem:[%s7974_s2 + $0x4c] sm:$0xf0]  ;;  %v3850_v62 = vor.u32 %v5128_v55, %v3849_v54  ;;  %1445 = vmatpush.bf16.msra.mxu1 %v3594_v57  ;;  %v5014_v53 = vld [vmem:[%s7975_s1 + $0x18] sm:$0xf0] }
  0x16   :  { %v3577_v61 = vld [vmem:[%s7974_s2 + $0x140] sm:$0xf]  ;;  %v5060_v63 = vld [vmem:[%s7974_s2 + $0x14c] sm:$0xf0]  ;;  %v3450_v4 = vor.u32 %v5028_v60, %v3449_v59  ;;  %1459 = vmatpush.bf16.msra.mxu2 %v3722_v58  ;;  %v3397_v54 = vld [vmem:[%s7975_s1 + $0x8] sm:$0xf] }
  0x17   :  { %v3705_v0 = vld [vmem:[%s7974_s2 + $0x240] sm:$0xf]  ;;  %v5092_v1 = vld [vmem:[%s7974_s2 + $0x24c] sm:$0xf0]  ;;  %v3578_v5 = vor.u32 %v5060_v63, %v3577_v61  ;;  %1473 = vmatpush.bf16.msra.mxu3 %v3850_v62  ;;  %v5015_v58 = vld [vmem:[%s7975_s1 + $0x20] sm:$0xf0] }
  0x18   :  { %v3833_v2 = vld [vmem:[%s7974_s2 + $0x340] sm:$0xf]  ;;  %v5124_v3 = vld [vmem:[%s7974_s2 + $0x34c] sm:$0xf0]  ;;  %v3706_v6 = vor.u32 %v5092_v1, %v3705_v0  ;;  %1432 = vmatpush.bf16.msra.mxu0 %v3450_v4  ;;  %v5715_v0 = vor.u32 %v5015_v58, %v3397_v54  ;;  %v3518_v1 = vor.u32 %v5042_v50, %v3515_v51  ;;  %v5038_v4 = vld [vmem:[%s7974_s2 + $0xa4] sm:$0xf] }
  0x19   :  { %v3433_v7 = vld [vmem:[%s7974_s2 + $0x20] sm:$0xf]  ;;  %v5024_v8 = vld [vmem:[%s7974_s2 + $0x2c] sm:$0xf0]  ;;  %v3834_v10 = vor.u32 %v5124_v3, %v3833_v2  ;;  %1446 = vmatpush.bf16.msra.mxu1 %v3578_v5  ;;  %v3499_v5 = vld [vmem:[%s7974_s2 + $0xb0] sm:$0xf0] }
  0x1a   :  { %v3561_v9 = vld [vmem:[%s7974_s2 + $0x120] sm:$0xf]  ;;  %v5056_v11 = vld [vmem:[%s7974_s2 + $0x12c] sm:$0xf0]  ;;  %v3434_v16 = vor.u32 %v5024_v8, %v3433_v7  ;;  %1460 = vmatpush.bf16.msra.mxu2 %v3706_v6  ;;  %v5011_v6 = vld [vmem:[%s7975_s1 + $0x4] sm:$0xf] }
  0x1b   :  { %v3689_v12 = vld [vmem:[%s7974_s2 + $0x220] sm:$0xf]  ;;  %v5088_v13 = vld [vmem:[%s7974_s2 + $0x22c] sm:$0xf0]  ;;  %v3562_v19 = vor.u32 %v5056_v11, %v3561_v9  ;;  %1474 = vmatpush.bf16.msra.mxu3 %v3834_v10 }
  0x1c   :  { %v3817_v14 = vld [vmem:[%s7974_s2 + $0x320] sm:$0xf]  ;;  %v5120_v15 = vld [vmem:[%s7974_s2 + $0x32c] sm:$0xf0]  ;;  %v3690_v20 = vor.u32 %v5088_v13, %v3689_v12  ;;  %1433 = vmatpush.bf16.msra.mxu0 %v3434_v16 }
  0x1d   :  { %v3417_v17 = vld [vmem:[%s7974_s2] sm:$0xf]  ;;  %v5020_v18 = vld [vmem:[%s7974_s2 + $0xc] sm:$0xf0]  ;;  %v3818_v24 = vor.u32 %v5120_v15, %v3817_v14  ;;  %1447 = vmatpush.bf16.msra.mxu1 %v3562_v19  ;;  %v5012_v19 = vld [vmem:[%s7975_s1 + $0xc] sm:$0xf] }
  0x1e   :  { %v3545_v21 = vld [vmem:[%s7974_s2 + $0x100] sm:$0xf]  ;;  %v5052_v22 = vld [vmem:[%s7974_s2 + $0x10c] sm:$0xf0]  ;;  %v3418_v31 = vor.u32 %v5020_v18, %v3417_v17  ;;  %1461 = vmatpush.bf16.msra.mxu2 %v3690_v20  ;;  %v3502_v17 = vor.u32 %v5038_v4, %v3499_v5  ;;  %v3399_v20 = vld [vmem:[%s7975_s1 + $0x24] sm:$0xf0] }
  0x1f   :  { %v3673_v23 = vld [vmem:[%s7974_s2 + $0x200] sm:$0xf]  ;;  %v5084_v25 = vld [vmem:[%s7974_s2 + $0x20c] sm:$0xf0]  ;;  %v3546_v35 = vor.u32 %v5052_v22, %v3545_v21  ;;  %1475 = vmatpush.bf16.msra.mxu3 %v3818_v24  ;;  %v5034_v21 = vld [vmem:[%s7974_s2 + $0x84] sm:$0xf] }
  0x20   :  { %v3801_v26 = vld [vmem:[%s7974_s2 + $0x300] sm:$0xf]  ;;  %v5116_v27 = vld [vmem:[%s7974_s2 + $0x30c] sm:$0xf0]  ;;  %v3674_v36 = vor.u32 %v5084_v25, %v3673_v23  ;;  %1434 = vmatpush.bf16.msra.mxu0 %v3418_v31  ;;  %v3483_v22 = vld [vmem:[%s7974_s2 + $0x90] sm:$0xf0]  ;;  %v5770_v23 = vor.u32 %v5012_v19, %v3399_v20 }
  0x21   :  { %v4041_v28 = vld [vmem:[%s7974_s2 + $0x4e0] sm:$0xf]  ;;  %v5176_v29 = vld [vmem:[%s7974_s2 + $0x4ec] sm:$0xf0]  ;;  %v3802_v39 = vor.u32 %v5116_v27, %v3801_v26  ;;  %1448 = vmatpush.bf16.msra.mxu1 %v3546_v35  ;;  %v3467_v35 = vld [vmem:[%s7974_s2 + $0x70] sm:$0xf0] }
  0x22   :  { %v4169_v30 = vld [vmem:[%s7974_s2 + $0x5e0] sm:$0xf]  ;;  %v5208_v32 = vld [vmem:[%s7974_s2 + $0x5ec] sm:$0xf0]  ;;  %v4042_v40 = vor.u32 %v5176_v29, %v4041_v28  ;;  %1462 = vmatpush.bf16.msra.mxu2 %v3674_v36  ;;  %v4043_v19 = vld [vmem:[%s7974_s2 + $0x4f0] sm:$0xf0] }
  0x23   :  { %v4297_v33 = vld [vmem:[%s7974_s2 + $0x6e0] sm:$0xf]  ;;  %v5240_v34 = vld [vmem:[%s7974_s2 + $0x6ec] sm:$0xf0]  ;;  %v4170_v43 = vor.u32 %v5208_v32, %v4169_v30  ;;  %1476 = vmatpush.bf16.msra.mxu3 %v3802_v39  ;;  %v3486_v30 = vor.u32 %v5034_v21, %v3483_v22 }
  0x24   :  { %v4025_v41 = vld [vmem:[%s7974_s2 + $0x4c0] sm:$0xf]  ;;  %v5172_v42 = vld [vmem:[%s7974_s2 + $0x4cc] sm:$0xf0]  ;;  %v4298_v44 = vor.u32 %v5240_v34, %v4297_v33  ;;  %1483 = vmatpush.bf16.msrb.mxu0 %v4042_v40  ;;  %v5030_v34 = vld [vmem:[%s7974_s2 + $0x64] sm:$0xf] }
  0x25   :  { %v4153_v45 = vld [vmem:[%s7974_s2 + $0x5c0] sm:$0xf]  ;;  %v5204_v46 = vld [vmem:[%s7974_s2 + $0x5cc] sm:$0xf0]  ;;  %v4026_v55 = vor.u32 %v5172_v42, %v4025_v41  ;;  %1497 = vmatpush.bf16.msrb.mxu1 %v4170_v43  ;;  %1463 = vmatmul.bf16.vlgmr.msra.gmra.mxu2 %v5715_v0  ;;  %v3470_v42 = vor.u32 %v5030_v34, %v3467_v35  ;;  %v3643_v34 = vld [vmem:[%s7974_s2 + $0x1d0] sm:$0xf0] }
  0x26   :  { %v4281_v47 = vld [vmem:[%s7974_s2 + $0x6c0] sm:$0xf]  ;;  %v5236_v49 = vld [vmem:[%s7974_s2 + $0x6cc] sm:$0xf0]  ;;  %1511 = vmatpush.bf16.msrb.mxu2 %v4298_v44  ;;  %v4154_v59 = vor.u32 %v5204_v46, %v4153_v45  ;;  %1477 = vmatmul.bf16.vlgmr.msra.gmra.mxu3 %v5770_v23  ;;  %v5026_v46 = vld [vmem:[%s7974_s2 + $0x44] sm:$0xf] }
  0x27   :  { %v3389_v52 = vld [vmem:[%s7975_s1] sm:$0xf]  ;;  %v4282_v60 = vor.u32 %v5236_v49, %v4281_v47  ;;  %v5168_v61 = vld [vmem:[%s7974_s2 + $0x4ac] sm:$0xf0]  ;;  %1525 = vmatpush.bf16.msrb.mxu3 %v3534_v48  ;;  %v3451_v47 = vld [vmem:[%s7974_s2 + $0x50] sm:$0xf0] }
  0x28   :  { %v4009_v56 = vld [vmem:[%s7974_s2 + $0x4a0] sm:$0xf]  ;;  %v5701_v57 = vor.u32 %v5014_v53, %v3389_v52  ;;  %v5200_v63 = vld [vmem:[%s7974_s2 + $0x5ac] sm:$0xf0]  ;;  %1484 = vmatpush.bf16.msrb.mxu0 %v4026_v55  ;;  %v3454_v54 = vor.u32 %v5026_v46, %v3451_v47  ;;  %v5106_v35 = vld [vmem:[%s7974_s2 + $0x2c4] sm:$0xf] }
  0x29   :  { %v4137_v62 = vld [vmem:[%s7974_s2 + $0x5a0] sm:$0xf]  ;;  %v5232_v3 = vld [vmem:[%s7974_s2 + $0x6ac] sm:$0xf0]  ;;  %v4010_v8 = vor.u32 %v5168_v61, %v4009_v56  ;;  %1498 = vmatpush.bf16.msrb.mxu1 %v4154_v59  ;;  %v5022_v59 = vld [vmem:[%s7974_s2 + $0x24] sm:$0xf] }
  0x2a   :  { %v4265_v2 = vld [vmem:[%s7974_s2 + $0x6a0] sm:$0xf]  ;;  %1435 = vmatmul.bf16.vlgmr.msra.gmra.mxu0 %v5701_v57  ;;  %v5164_v10 = vld [vmem:[%s7974_s2 + $0x48c] sm:$0xf0]  ;;  %1512 = vmatpush.bf16.msrb.mxu2 %v4282_v60  ;;  %v4138_v12 = vor.u32 %v5200_v63, %v4137_v62  ;;  %v3435_v60 = vld [vmem:[%s7974_s2 + $0x30] sm:$0xf0] }
  0x2b   :  { %v3391_v7 = vld [vmem:[%s7975_s1 + $0x1c] sm:$0xf0]  ;;  %v4266_v13 = vor.u32 %v5232_v3, %v4265_v2  ;;  %v5196_v15 = vld [vmem:[%s7974_s2 + $0x58c] sm:$0xf0]  ;;  %1526 = vmatpush.bf16.msrb.mxu3 %v3518_v1 }
  0x2c   :  { %v3993_v9 = vld [vmem:[%s7974_s2 + $0x480] sm:$0xf]  ;;  %v5743_v11 = vor.u32 %v5011_v6, %v3391_v7  ;;  %v5228_v18 = vld [vmem:[%s7974_s2 + $0x68c] sm:$0xf0]  ;;  %1485 = vmatpush.bf16.msrb.mxu0 %v4010_v8  ;;  %v5018_v7 = vld [vmem:[%s7974_s2 + $0x4] sm:$0xf]  ;;  %v3438_v8 = vor.u32 %v5022_v59, %v3435_v60 }
  0x2d   :  { %v4121_v14 = vld [vmem:[%s7974_s2 + $0x580] sm:$0xf]  ;;  %v3994_v24 = vor.u32 %v5164_v10, %v3993_v9  ;;  %1499 = vmatpush.bf16.msrb.mxu1 %v4138_v12  ;;  %v5160_v28 = vld [vmem:[%s7974_s2 + $0x46c] sm:$0xf0]  ;;  %v3419_v9 = vld [vmem:[%s7974_s2 + $0x10] sm:$0xf0] }
  0x2e   :  { %v4249_v16 = vld [vmem:[%s7974_s2 + $0x680] sm:$0xf]  ;;  %1449 = vmatmul.bf16.vlgmr.msra.gmra.mxu1 %v5743_v11  ;;  %1513 = vmatpush.bf16.msrb.mxu2 %v4266_v13  ;;  %v4122_v25 = vor.u32 %v5196_v15, %v4121_v14  ;;  %v5192_v31 = vld [vmem:[%s7974_s2 + $0x56c] sm:$0xf0]  ;;  %v5078_v10 = vld [vmem:[%s7974_s2 + $0x1e4] sm:$0xf] }
  0x2f   :  { %v4250_v26 = vor.u32 %v5228_v18, %v4249_v16  ;;  %v3977_v27 = vld [vmem:[%s7974_s2 + $0x460] sm:$0xf]  ;;  %1527 = vmatpush.bf16.msrb.mxu3 %v3502_v17  ;;  %v5224_v33 = vld [vmem:[%s7974_s2 + $0x66c] sm:$0xf0]  ;;  %v3659_v12 = vld [vmem:[%s7974_s2 + $0x1f0] sm:$0xf0] }
  0x30   :  { %v4105_v29 = vld [vmem:[%s7974_s2 + $0x560] sm:$0xf]  ;;  %1486 = vmatpush.bf16.msrb.mxu0 %v3994_v24  ;;  %v3978_v36 = vor.u32 %v5160_v28, %v3977_v27  ;;  %v5156_v40 = vld [vmem:[%s7974_s2 + $0x44c] sm:$0xf0]  ;;  %v5110_v13 = vld [vmem:[%s7974_s2 + $0x2e4] sm:$0xf]  ;;  %v3662_v27 = vor.u32 %v5078_v10, %v3659_v12 }
  0x31   :  { %v4233_v32 = vld [vmem:[%s7974_s2 + $0x660] sm:$0xf]  ;;  %1500 = vmatpush.bf16.msrb.mxu1 %v4122_v25  ;;  %v4106_v37 = vor.u32 %v5192_v31, %v4105_v29  ;;  %v5188_v43 = vld [vmem:[%s7974_s2 + $0x54c] sm:$0xf0]  ;;  %v3787_v14 = vld [vmem:[%s7974_s2 + $0x2f0] sm:$0xf0] }
  0x32   :  { %1514 = vmatpush.bf16.msrb.mxu2 %v4250_v26  ;;  %v4234_v38 = vor.u32 %v5224_v33, %v4233_v32  ;;  %v3961_v39 = vld [vmem:[%s7974_s2 + $0x440] sm:$0xf]  ;;  %v5220_v45 = vld [vmem:[%s7974_s2 + $0x64c] sm:$0xf0]  ;;  %v5142_v15 = vld [vmem:[%s7974_s2 + $0x3e4] sm:$0xf]  ;;  %v3422_v26 = vor.u32 %v5018_v7, %v3419_v9  ;;  %v3790_v31 = vor.u32 %v5110_v13, %v3787_v14 }
  0x33   :  { %v4089_v41 = vld [vmem:[%s7974_s2 + $0x540] sm:$0xf]  ;;  %1528 = vmatpush.bf16.msrb.mxu3 %v3486_v30  ;;  %v3962_v48 = vor.u32 %v5156_v40, %v3961_v39  ;;  %v5152_v52 = vld [vmem:[%s7974_s2 + $0x42c] sm:$0xf0]  ;;  %v3915_v17 = vld [vmem:[%s7974_s2 + $0x3f0] sm:$0xf0] }
  0x34   :  { %v4217_v44 = vld [vmem:[%s7974_s2 + $0x640] sm:$0xf]  ;;  %1487 = vmatpush.bf16.msrb.mxu0 %v3978_v36  ;;  %v4090_v49 = vor.u32 %v5188_v43, %v4089_v41  ;;  %v5184_v55 = vld [vmem:[%s7974_s2 + $0x52c] sm:$0xf0]  ;;  %v5174_v18 = vld [vmem:[%s7974_s2 + $0x4e4] sm:$0xf]  ;;  %v3918_v32 = vor.u32 %v5142_v15, %v3915_v17 }
  0x35   :  { %1501 = vmatpush.bf16.msrb.mxu1 %v4106_v37  ;;  %v4218_v50 = vor.u32 %v5220_v45, %v4217_v44  ;;  %v3945_v51 = vld [vmem:[%s7974_s2 + $0x420] sm:$0xf]  ;;  %v5216_v58 = vld [vmem:[%s7974_s2 + $0x62c] sm:$0xf0]  ;;  %v5016_v24 = vld [vmem:[%s7975_s1 + $0x28] sm:$0xf0]  ;;  %v4046_v36 = vor.u32 %v5174_v18, %v4043_v19 }
  0x36   :  { %1515 = vmatpush.bf16.msrb.mxu2 %v4234_v38  ;;  %v4073_v53 = vld [vmem:[%s7974_s2 + $0x520] sm:$0xf]  ;;  %v3946_v62 = vor.u32 %v5152_v52, %v3945_v51  ;;  %v5148_v63 = vld [vmem:[%s7974_s2 + $0x40c] sm:$0xf0]  ;;  %v3413_v25 = vld [vmem:[%s7975_s1 + $0x18] sm:$0xf] }
  0x37   :  { %1529 = vmatpush.bf16.msrb.mxu3 %v3470_v42  ;;  %v4201_v56 = vld [vmem:[%s7974_s2 + $0x620] sm:$0xf]  ;;  %v5180_v2 = vld [vmem:[%s7974_s2 + $0x50c] sm:$0xf0]  ;;  %v4074_v3 = vor.u32 %v5184_v55, %v4073_v53  ;;  %v5017_v28 = vld [vmem:[%s7975_s1 + $0x30] sm:$0xf0] }
  0x38   :  { %v3929_v61 = vld [vmem:[%s7974_s2 + $0x400] sm:$0xf]  ;;  %1488 = vmatpush.bf16.msrb.mxu0 %v3962_v48  ;;  %v4202_v4 = vor.u32 %v5216_v58, %v4201_v56  ;;  %v5212_v6 = vld [vmem:[%s7974_s2 + $0x60c] sm:$0xf0]  ;;  %v5013_v29 = vld [vmem:[%s7975_s1 + $0x14] sm:$0xf]  ;;  %v5931_v41 = vor.u32 %v5017_v28, %v3413_v25 }
  0x39   :  { %v4057_v1 = vld [vmem:[%s7974_s2 + $0x500] sm:$0xf]  ;;  %1502 = vmatpush.bf16.msrb.mxu1 %v4090_v49  ;;  %v3930_v16 = vor.u32 %v5148_v63, %v3929_v61  ;;  %v3405_v22 = vld [vmem:[%s7975_s1 + $0x10] sm:$0xf]  ;;  %v5074_v33 = vld [vmem:[%s7974_s2 + $0x1c4] sm:$0xf] }
  0x3a   :  { %1516 = vmatpush.bf16.msrb.mxu2 %v4218_v50  ;;  %v4185_v5 = vld [vmem:[%s7974_s2 + $0x600] sm:$0xf]  ;;  %v4058_v20 = vor.u32 %v5180_v2, %v4057_v1  ;;  %v3407_v30 = vld [vmem:[%s7975_s1 + $0x2c] sm:$0xf0]  ;;  %v5920_v37 = vor.u32 %v5016_v24, %v3405_v22  ;;  %v3771_v38 = vld [vmem:[%s7974_s2 + $0x2d0] sm:$0xf0]  ;;  %v3646_v45 = vor.u32 %v5074_v33, %v3643_v34 }
  0x3b   :  { %1530 = vmatpush.bf16.msrb.mxu3 %v3454_v54  ;;  %v4186_v21 = vor.u32 %v5212_v6, %v4185_v5  ;;  %v5138_v39 = vld [vmem:[%s7974_s2 + $0x3c4] sm:$0xf]  ;;  %v3899_v40 = vld [vmem:[%s7974_s2 + $0x3d0] sm:$0xf0]  ;;  %v5933_v42 = vor.u32 %v5013_v29, %v3407_v30  ;;  %v3774_v46 = vor.u32 %v5106_v35, %v3771_v38 }
  0x3c   :  { %1489 = vmatpush.bf16.msrb.mxu0 %v3946_v62  ;;  %v5170_v43 = vld [vmem:[%s7974_s2 + $0x4c4] sm:$0xf]  ;;  %v4027_v44 = vld [vmem:[%s7974_s2 + $0x4d0] sm:$0xf0]  ;;  %v3902_v47 = vor.u32 %v5138_v39, %v3899_v40 }
  0x3d   :  { %1503 = vmatpush.bf16.msrb.mxu1 %v4074_v3  ;;  %v5070_v48 = vld [vmem:[%s7974_s2 + $0x1a4] sm:$0xf]  ;;  %v3627_v49 = vld [vmem:[%s7974_s2 + $0x1b0] sm:$0xf0]  ;;  %v4030_v51 = vor.u32 %v5170_v43, %v4027_v44 }
  0x3e   :  { %1517 = vmatpush.bf16.msrb.mxu2 %v4202_v4  ;;  %v5102_v50 = vld [vmem:[%s7974_s2 + $0x2a4] sm:$0xf]  ;;  %v3755_v52 = vld [vmem:[%s7974_s2 + $0x2b0] sm:$0xf0]  ;;  %v3630_v58 = vor.u32 %v5070_v48, %v3627_v49 }
  0x3f   :  { %1531 = vmatpush.bf16.msrb.mxu3 %v3438_v8  ;;  %v5134_v53 = vld [vmem:[%s7974_s2 + $0x3a4] sm:$0xf]  ;;  %v3883_v54 = vld [vmem:[%s7974_s2 + $0x3b0] sm:$0xf0]  ;;  %v3758_v59 = vor.u32 %v5102_v50, %v3755_v52 }
  0x40   :  { %1490 = vmatpush.bf16.msrb.mxu0 %v3930_v16  ;;  %v5166_v55 = vld [vmem:[%s7974_s2 + $0x4a4] sm:$0xf]  ;;  %v4011_v56 = vld [vmem:[%s7974_s2 + $0x4b0] sm:$0xf0]  ;;  %v3886_v60 = vor.u32 %v5134_v53, %v3883_v54 }
  0x41   :  { %1504 = vmatpush.bf16.msrb.mxu1 %v4058_v20  ;;  %v5066_v61 = vld [vmem:[%s7974_s2 + $0x184] sm:$0xf]  ;;  %v3611_v62 = vld [vmem:[%s7974_s2 + $0x190] sm:$0xf0]  ;;  %v4014_v1 = vor.u32 %v5166_v55, %v4011_v56 }
  0x42   :  { %1518 = vmatpush.bf16.msrb.mxu2 %v4186_v21  ;;  %v5098_v63 = vld [vmem:[%s7974_s2 + $0x284] sm:$0xf]  ;;  %v3739_v2 = vld [vmem:[%s7974_s2 + $0x290] sm:$0xf0]  ;;  %v3614_v7 = vor.u32 %v5066_v61, %v3611_v62 }
  0x43   :  { %1532 = vmatpush.bf16.msrb.mxu3 %v3422_v26  ;;  %1491 = vmatmul.bf16.vlgmr.msrb.gmra.mxu0 %v5920_v37  ;;  %v5130_v3 = vld [vmem:[%s7974_s2 + $0x384] sm:$0xf]  ;;  %v3867_v4 = vld [vmem:[%s7974_s2 + $0x390] sm:$0xf0]  ;;  %v3742_v8 = vor.u32 %v5098_v63, %v3739_v2 }
  0x44   :  { %1539 = vmatpush.bf16.msra.mxu0 %v3662_v27  ;;  %1505 = vmatmul.bf16.vlgmr.msrb.gmra.mxu1 %v5933_v42  ;;  %v5162_v5 = vld [vmem:[%s7974_s2 + $0x484] sm:$0xf]  ;;  %v3995_v6 = vld [vmem:[%s7974_s2 + $0x490] sm:$0xf0]  ;;  %v3870_v9 = vor.u32 %v5130_v3, %v3867_v4  ;;  %v3537_v3 = vld [vmem:[%s7974_s2 + $0xe8] sm:$0xf] }
  0x45   :  { %1553 = vmatpush.bf16.msra.mxu1 %v3790_v31  ;;  %1519 = vmatmul.bf16.vlgmr.msrb.gmra.mxu2 %v5931_v41  ;;  %v5062_v10 = vld [vmem:[%s7974_s2 + $0x164] sm:$0xf]  ;;  %v3595_v12 = vld [vmem:[%s7974_s2 + $0x170] sm:$0xf0]  ;;  %v3998_v14 = vor.u32 %v5162_v5, %v3995_v6  ;;  %v5049_v4 = vld [vmem:[%s7974_s2 + $0xf4] sm:$0xf0] }
  0x46   :  { %1567 = vmatpush.bf16.msra.mxu2 %v3918_v32  ;;  %1533 = vmatmul.bf16.vlgmr.msrb.gmra.mxu3 %v5701_v57  ;;  %v5094_v13 = vld [vmem:[%s7974_s2 + $0x264] sm:$0xf]  ;;  %v3723_v15 = vld [vmem:[%s7974_s2 + $0x270] sm:$0xf0]  ;;  %v3598_v20 = vor.u32 %v5062_v10, %v3595_v12 }
  0x47   :  { %1581 = vmatpush.bf16.msra.mxu3 %v4046_v36  ;;  %v5126_v16 = vld [vmem:[%s7974_s2 + $0x364] sm:$0xf]  ;;  %v3851_v17 = vld [vmem:[%s7974_s2 + $0x370] sm:$0xf0]  ;;  %v3726_v21 = vor.u32 %v5094_v13, %v3723_v15  ;;  %v3538_v13 = vor.u32 %v5049_v4, %v3537_v3 }
  0x48   :  { %1540 = vmatpush.bf16.msra.mxu0 %v3646_v45  ;;  %v5158_v18 = vld [vmem:[%s7974_s2 + $0x464] sm:$0xf]  ;;  %v3979_v19 = vld [vmem:[%s7974_s2 + $0x470] sm:$0xf0]  ;;  %v3854_v22 = vor.u32 %v5126_v16, %v3851_v17 }
  0x49   :  { %1554 = vmatpush.bf16.msra.mxu1 %v3774_v46  ;;  %v5058_v24 = vld [vmem:[%s7974_s2 + $0x144] sm:$0xf]  ;;  %v3579_v25 = vld [vmem:[%s7974_s2 + $0x150] sm:$0xf0]  ;;  %v3982_v27 = vor.u32 %v5158_v18, %v3979_v19  ;;  %v3521_v19 = vld [vmem:[%s7974_s2 + $0xc8] sm:$0xf] }
  0x4a   :  { %1568 = vmatpush.bf16.msra.mxu2 %v3902_v47  ;;  %v5090_v26 = vld [vmem:[%s7974_s2 + $0x244] sm:$0xf]  ;;  %v3707_v28 = vld [vmem:[%s7974_s2 + $0x250] sm:$0xf0]  ;;  %v3582_v33 = vor.u32 %v5058_v24, %v3579_v25 }
  0x4b   :  { %1582 = vmatpush.bf16.msra.mxu3 %v4030_v51  ;;  %v5122_v29 = vld [vmem:[%s7974_s2 + $0x344] sm:$0xf]  ;;  %v3835_v30 = vld [vmem:[%s7974_s2 + $0x350] sm:$0xf0]  ;;  %v3710_v34 = vor.u32 %v5090_v26, %v3707_v28 }
  0x4c   :  { %1541 = vmatpush.bf16.msra.mxu0 %v3630_v58  ;;  %v5154_v31 = vld [vmem:[%s7974_s2 + $0x444] sm:$0xf]  ;;  %v3963_v32 = vld [vmem:[%s7974_s2 + $0x450] sm:$0xf0]  ;;  %v3838_v35 = vor.u32 %v5122_v29, %v3835_v30 }
  0x4d   :  { %1555 = vmatpush.bf16.msra.mxu1 %v3758_v59  ;;  %v5054_v36 = vld [vmem:[%s7974_s2 + $0x124] sm:$0xf]  ;;  %v3563_v38 = vld [vmem:[%s7974_s2 + $0x130] sm:$0xf0]  ;;  %v3966_v40 = vor.u32 %v5154_v31, %v3963_v32  ;;  %v3505_v32 = vld [vmem:[%s7974_s2 + $0xa8] sm:$0xf] }
  0x4e   :  { %1569 = vmatpush.bf16.msra.mxu2 %v3886_v60  ;;  %v5086_v39 = vld [vmem:[%s7974_s2 + $0x224] sm:$0xf]  ;;  %v3691_v43 = vld [vmem:[%s7974_s2 + $0x230] sm:$0xf0]  ;;  %v3566_v48 = vor.u32 %v5054_v36, %v3563_v38 }
  0x4f   :  { %1583 = vmatpush.bf16.msra.mxu3 %v4014_v1  ;;  %v5118_v44 = vld [vmem:[%s7974_s2 + $0x324] sm:$0xf]  ;;  %v3819_v45 = vld [vmem:[%s7974_s2 + $0x330] sm:$0xf0]  ;;  %v3694_v51 = vor.u32 %v5086_v39, %v3691_v43 }
  0x50   :  { %1542 = vmatpush.bf16.msra.mxu0 %v3614_v7  ;;  %v5150_v46 = vld [vmem:[%s7974_s2 + $0x424] sm:$0xf]  ;;  %v3947_v47 = vld [vmem:[%s7974_s2 + $0x430] sm:$0xf0]  ;;  %v3822_v52 = vor.u32 %v5118_v44, %v3819_v45  ;;  %v3665_v7 = vld [vmem:[%s7974_s2 + $0x1e8] sm:$0xf] }
  0x51   :  { %1556 = vmatpush.bf16.msra.mxu1 %v3742_v8  ;;  %v5050_v49 = vld [vmem:[%s7974_s2 + $0x104] sm:$0xf]  ;;  %v3547_v50 = vld [vmem:[%s7974_s2 + $0x110] sm:$0xf0]  ;;  %v3950_v56 = vor.u32 %v5150_v46, %v3947_v47  ;;  %v5081_v8 = vld [vmem:[%s7974_s2 + $0x1f4] sm:$0xf0] }
  0x52   :  { %1570 = vmatpush.bf16.msra.mxu2 %v3870_v9  ;;  %v5082_v53 = vld [vmem:[%s7974_s2 + $0x204] sm:$0xf]  ;;  %v3675_v54 = vld [vmem:[%s7974_s2 + $0x210] sm:$0xf0]  ;;  %v3550_v1 = vor.u32 %v5050_v49, %v3547_v50  ;;  %v3666_v17 = vor.u32 %v5081_v8, %v3665_v7  ;;  %v3489_v47 = vld [vmem:[%s7974_s2 + $0x88] sm:$0xf] }
  0x53   :  { %1584 = vmatpush.bf16.msra.mxu3 %v3998_v14  ;;  %v5114_v55 = vld [vmem:[%s7974_s2 + $0x304] sm:$0xf]  ;;  %v3803_v58 = vld [vmem:[%s7974_s2 + $0x310] sm:$0xf0]  ;;  %v3678_v5 = vor.u32 %v5082_v53, %v3675_v54  ;;  %v3617_v49 = vld [vmem:[%s7974_s2 + $0x188] sm:$0xf] }
  0x54   :  { %1543 = vmatpush.bf16.msra.mxu0 %v3598_v20  ;;  %v5146_v59 = vld [vmem:[%s7974_s2 + $0x404] sm:$0xf]  ;;  %v3931_v60 = vld [vmem:[%s7974_s2 + $0x410] sm:$0xf0]  ;;  %v3806_v6 = vor.u32 %v5114_v55, %v3803_v58  ;;  %v5045_v20 = vld [vmem:[%s7974_s2 + $0xd4] sm:$0xf0] }
  0x55   :  { %1557 = vmatpush.bf16.msra.mxu1 %v3726_v21  ;;  %v5206_v61 = vld [vmem:[%s7974_s2 + $0x5e4] sm:$0xf]  ;;  %v4171_v62 = vld [vmem:[%s7974_s2 + $0x5f0] sm:$0xf0]  ;;  %v3934_v9 = vor.u32 %v5146_v59, %v3931_v60  ;;  %v3649_v21 = vld [vmem:[%s7974_s2 + $0x1c8] sm:$0xf]  ;;  %v3522_v26 = vor.u32 %v5045_v20, %v3521_v19 }
  0x56   :  { %1571 = vmatpush.bf16.msra.mxu2 %v3854_v22  ;;  %v5238_v63 = vld [vmem:[%s7974_s2 + $0x6e4] sm:$0xf]  ;;  %v4299_v2 = vld [vmem:[%s7974_s2 + $0x6f0] sm:$0xf0]  ;;  %v4174_v10 = vor.u32 %v5206_v61, %v4171_v62  ;;  %v5077_v22 = vld [vmem:[%s7974_s2 + $0x1d4] sm:$0xf0] }
  0x57   :  { %1585 = vmatpush.bf16.msra.mxu3 %v3982_v27  ;;  %v4302_v12 = vor.u32 %v5238_v63, %v4299_v2  ;;  %v5202_v14 = vld [vmem:[%s7974_s2 + $0x5c4] sm:$0xf]  ;;  %v4155_v15 = vld [vmem:[%s7974_s2 + $0x5d0] sm:$0xf0]  ;;  %v3650_v30 = vor.u32 %v5077_v22, %v3649_v21  ;;  %v5069_v50 = vld [vmem:[%s7974_s2 + $0x194] sm:$0xf0] }
  0x58   :  { %1544 = vmatpush.bf16.msra.mxu0 %v3582_v33  ;;  %v5234_v16 = vld [vmem:[%s7974_s2 + $0x6c4] sm:$0xf]  ;;  %v4283_v18 = vld [vmem:[%s7974_s2 + $0x6d0] sm:$0xf0]  ;;  %v4158_v24 = vor.u32 %v5202_v14, %v4155_v15  ;;  %v5041_v33 = vld [vmem:[%s7974_s2 + $0xb4] sm:$0xf0]  ;;  %v3618_v58 = vor.u32 %v5069_v50, %v3617_v49 }
  0x59   :  { %1558 = vmatpush.bf16.msra.mxu1 %v3710_v34  ;;  %v4286_v25 = vor.u32 %v5234_v16, %v4283_v18  ;;  %v5198_v27 = vld [vmem:[%s7974_s2 + $0x5a4] sm:$0xf]  ;;  %v4139_v28 = vld [vmem:[%s7974_s2 + $0x5b0] sm:$0xf0]  ;;  %v3633_v34 = vld [vmem:[%s7974_s2 + $0x1a8] sm:$0xf]  ;;  %v3506_v39 = vor.u32 %v5041_v33, %v3505_v32 }
  0x5a   :  { %1572 = vmatpush.bf16.msra.mxu2 %v3838_v35  ;;  %v5230_v29 = vld [vmem:[%s7974_s2 + $0x6a4] sm:$0xf]  ;;  %v4267_v31 = vld [vmem:[%s7974_s2 + $0x6b0] sm:$0xf0]  ;;  %v5073_v35 = vld [vmem:[%s7974_s2 + $0x1b4] sm:$0xf0]  ;;  %v4142_v36 = vor.u32 %v5198_v27, %v4139_v28 }
  0x5b   :  { %1586 = vmatpush.bf16.msra.mxu3 %v3966_v40  ;;  %v4270_v38 = vor.u32 %v5230_v29, %v4267_v31  ;;  %v5194_v40 = vld [vmem:[%s7974_s2 + $0x584] sm:$0xf]  ;;  %v4123_v43 = vld [vmem:[%s7974_s2 + $0x590] sm:$0xf0]  ;;  %v3634_v45 = vor.u32 %v5073_v35, %v3633_v34  ;;  %v3473_v60 = vld [vmem:[%s7974_s2 + $0x68] sm:$0xf] }
  0x5c   :  { %1545 = vmatpush.bf16.msra.mxu0 %v3566_v48  ;;  %v5226_v44 = vld [vmem:[%s7974_s2 + $0x684] sm:$0xf]  ;;  %v4251_v46 = vld [vmem:[%s7974_s2 + $0x690] sm:$0xf0]  ;;  %v5037_v48 = vld [vmem:[%s7974_s2 + $0x94] sm:$0xf0] }
  0x5d   :  { %1559 = vmatpush.bf16.msra.mxu1 %v3694_v51  ;;  %v4126_v51 = vor.u32 %v5194_v40, %v4123_v43  ;;  %v3490_v53 = vor.u32 %v5037_v48, %v3489_v47  ;;  %v5190_v54 = vld [vmem:[%s7974_s2 + $0x564] sm:$0xf]  ;;  %v4107_v55 = vld [vmem:[%s7974_s2 + $0x570] sm:$0xf0]  ;;  %v5033_v61 = vld [vmem:[%s7974_s2 + $0x74] sm:$0xf0] }
  0x5e   :  { %1573 = vmatpush.bf16.msra.mxu2 %v3822_v52  ;;  %v4254_v52 = vor.u32 %v5226_v44, %v4251_v46  ;;  %v4235_v59 = vld [vmem:[%s7974_s2 + $0x670] sm:$0xf0]  ;;  %v3601_v62 = vld [vmem:[%s7974_s2 + $0x168] sm:$0xf]  ;;  %v5065_v63 = vld [vmem:[%s7974_s2 + $0x174] sm:$0xf0]  ;;  %v3474_v3 = vor.u32 %v5033_v61, %v3473_v60 }
  0x5f   :  { %1587 = vmatpush.bf16.msra.mxu3 %v3950_v56  ;;  %v5222_v56 = vld [vmem:[%s7974_s2 + $0x664] sm:$0xf]  ;;  %v3602_v7 = vor.u32 %v5065_v63, %v3601_v62  ;;  %v4219_v8 = vld [vmem:[%s7974_s2 + $0x650] sm:$0xf0]  ;;  %v3441_v22 = vld [vmem:[%s7974_s2 + $0x28] sm:$0xf] }
  0x60   :  { %1546 = vmatpush.bf16.msra.mxu0 %v3550_v1  ;;  %v4110_v1 = vor.u32 %v5190_v54, %v4107_v55  ;;  %v4238_v2 = vor.u32 %v5222_v56, %v4235_v59  ;;  %v5186_v4 = vld [vmem:[%s7974_s2 + $0x544] sm:$0xf]  ;;  %v4075_v18 = vld [vmem:[%s7974_s2 + $0x530] sm:$0xf0]  ;;  %v3425_v34 = vld [vmem:[%s7974_s2 + $0x8] sm:$0xf] }
  0x61   :  { %1560 = vmatpush.bf16.msra.mxu1 %v3678_v5  ;;  %v4091_v5 = vld [vmem:[%s7974_s2 + $0x550] sm:$0xf0]  ;;  %v5214_v19 = vld [vmem:[%s7974_s2 + $0x624] sm:$0xf]  ;;  %v3793_v40 = vld [vmem:[%s7974_s2 + $0x2e8] sm:$0xf] }
  0x62   :  { %1574 = vmatpush.bf16.msra.mxu2 %v3806_v6  ;;  %v5218_v6 = vld [vmem:[%s7974_s2 + $0x644] sm:$0xf]  ;;  %v4094_v14 = vor.u32 %v5186_v4, %v4091_v5  ;;  %v4203_v21 = vld [vmem:[%s7974_s2 + $0x630] sm:$0xf0]  ;;  %v5113_v43 = vld [vmem:[%s7974_s2 + $0x2f4] sm:$0xf0] }
  0x63   :  { %1588 = vmatpush.bf16.msra.mxu3 %v3934_v9  ;;  %1547 = vmatmul.bf16.vlgmr.msra.gmra.mxu0 %v5743_v11  ;;  %v3457_v9 = vld [vmem:[%s7974_s2 + $0x48] sm:$0xf]  ;;  %v4222_v15 = vor.u32 %v5218_v6, %v4219_v8  ;;  %v5178_v28 = vld [vmem:[%s7974_s2 + $0x504] sm:$0xf]  ;;  %v4059_v29 = vld [vmem:[%s7974_s2 + $0x510] sm:$0xf0]  ;;  %v3794_v54 = vor.u32 %v5113_v43, %v3793_v40 }
  0x64   :  { %1595 = vmatpush.bf16.msrb.mxu0 %v4174_v10  ;;  %1561 = vmatmul.bf16.vlgmr.msra.gmra.mxu1 %v5715_v0  ;;  %v5029_v10 = vld [vmem:[%s7974_s2 + $0x54] sm:$0xf0]  ;;  %v5210_v32 = vld [vmem:[%s7974_s2 + $0x604] sm:$0xf]  ;;  %v4187_v33 = vld [vmem:[%s7974_s2 + $0x610] sm:$0xf0] }
  0x65   :  { %1609 = vmatpush.bf16.msrb.mxu1 %v4302_v12  ;;  %1575 = vmatmul.bf16.vlgmr.msra.gmra.mxu2 %v5770_v23  ;;  %v3585_v12 = vld [vmem:[%s7974_s2 + $0x148] sm:$0xf]  ;;  %v3458_v16 = vor.u32 %v5029_v10, %v3457_v9  ;;  %v5145_v46 = vld [vmem:[%s7974_s2 + $0x3f4] sm:$0xf0]  ;;  %v4190_v49 = vor.u32 %v5210_v32, %v4187_v33 }
  0x66   :  { %1623 = vmatpush.bf16.msrb.mxu2 %v3538_v13  ;;  %1589 = vmatmul.bf16.vlgmr.msra.gmra.mxu3 %v5920_v37  ;;  %v5061_v13 = vld [vmem:[%s7974_s2 + $0x154] sm:$0xf0]  ;;  %v3921_v44 = vld [vmem:[%s7974_s2 + $0x3e8] sm:$0xf] }
  0x67   :  { %1637 = vmatpush.bf16.msrb.mxu3 %v3666_v17  ;;  %v5182_v17 = vld [vmem:[%s7974_s2 + $0x524] sm:$0xf]  ;;  %v3586_v20 = vor.u32 %v5061_v13, %v3585_v12  ;;  %v4049_v47 = vld [vmem:[%s7974_s2 + $0x4e8] sm:$0xf]  ;;  %v5177_v48 = vld [vmem:[%s7974_s2 + $0x4f4] sm:$0xf0]  ;;  %v3922_v55 = vor.u32 %v5145_v46, %v3921_v44 }
  0x68   :  { %1596 = vmatpush.bf16.msrb.mxu0 %v4158_v24  ;;  %v5025_v24 = vld [vmem:[%s7974_s2 + $0x34] sm:$0xf0]  ;;  %v4078_v27 = vor.u32 %v5182_v17, %v4075_v18  ;;  %v4050_v56 = vor.u32 %v5177_v48, %v4049_v47  ;;  %v3905_v60 = vld [vmem:[%s7974_s2 + $0x3c8] sm:$0xf] }
  0x69   :  { %1610 = vmatpush.bf16.msrb.mxu1 %v4286_v25  ;;  %v3569_v25 = vld [vmem:[%s7974_s2 + $0x128] sm:$0xf]  ;;  %v3442_v31 = vor.u32 %v5025_v24, %v3441_v22  ;;  %v5109_v59 = vld [vmem:[%s7974_s2 + $0x2d4] sm:$0xf0] }
  0x6a   :  { %1624 = vmatpush.bf16.msrb.mxu2 %v3522_v26  ;;  %v5057_v26 = vld [vmem:[%s7974_s2 + $0x134] sm:$0xf0]  ;;  %v4033_v63 = vld [vmem:[%s7974_s2 + $0x4c8] sm:$0xf] }
  0x6b   :  { %1638 = vmatpush.bf16.msrb.mxu3 %v3650_v30  ;;  %v4206_v30 = vor.u32 %v5214_v19, %v4203_v21  ;;  %v3570_v35 = vor.u32 %v5057_v26, %v3569_v25  ;;  %v5141_v62 = vld [vmem:[%s7974_s2 + $0x3d4] sm:$0xf0]  ;;  %v3889_v9 = vld [vmem:[%s7974_s2 + $0x3a8] sm:$0xf] }
  0x6c   :  { %1597 = vmatpush.bf16.msrb.mxu0 %v4142_v36  ;;  %v5021_v36 = vld [vmem:[%s7974_s2 + $0x14] sm:$0xf0]  ;;  %v3906_v5 = vor.u32 %v5141_v62, %v3905_v60  ;;  %v4017_v13 = vld [vmem:[%s7974_s2 + $0x4a8] sm:$0xf] }
  0x6d   :  { %1611 = vmatpush.bf16.msrb.mxu1 %v4270_v38  ;;  %v3553_v38 = vld [vmem:[%s7974_s2 + $0x108] sm:$0xf]  ;;  %v3426_v50 = vor.u32 %v5021_v36, %v3425_v34  ;;  %v5105_v8 = vld [vmem:[%s7974_s2 + $0x2b4] sm:$0xf0] }
  0x6e   :  { %1625 = vmatpush.bf16.msrb.mxu2 %v3506_v39  ;;  %v5053_v39 = vld [vmem:[%s7974_s2 + $0x114] sm:$0xf0]  ;;  %v3873_v22 = vld [vmem:[%s7974_s2 + $0x388] sm:$0xf] }
  0x6f   :  { %1639 = vmatpush.bf16.msrb.mxu3 %v3634_v45  ;;  %v4062_v45 = vor.u32 %v5178_v28, %v4059_v29  ;;  %v5137_v12 = vld [vmem:[%s7974_s2 + $0x3b4] sm:$0xf0]  ;;  %v4001_v26 = vld [vmem:[%s7974_s2 + $0x488] sm:$0xf] }
  0x70   :  { %1598 = vmatpush.bf16.msrb.mxu0 %v4126_v51  ;;  %v4177_v51 = vld [vmem:[%s7974_s2 + $0x5e8] sm:$0xf]  ;;  %v3890_v18 = vor.u32 %v5137_v12, %v3889_v9  ;;  %v5101_v21 = vld [vmem:[%s7974_s2 + $0x294] sm:$0xf0] }
  0x71   :  { %1612 = vmatpush.bf16.msrb.mxu1 %v4254_v52  ;;  %v5209_v52 = vld [vmem:[%s7974_s2 + $0x5f4] sm:$0xf0]  ;;  %v4129_v28 = vld [vmem:[%s7974_s2 + $0x588] sm:$0xf] }
  0x72   :  { %1626 = vmatpush.bf16.msrb.mxu2 %v3490_v53  ;;  %v3554_v53 = vor.u32 %v5053_v39, %v3553_v38  ;;  %v4178_v61 = vor.u32 %v5209_v52, %v4177_v51  ;;  %v5133_v25 = vld [vmem:[%s7974_s2 + $0x394] sm:$0xf0]  ;;  %v3729_v33 = vld [vmem:[%s7974_s2 + $0x268] sm:$0xf] }
  0x73   :  { %1640 = vmatpush.bf16.msrb.mxu3 %v3618_v58  ;;  %v3777_v58 = vld [vmem:[%s7974_s2 + $0x2c8] sm:$0xf]  ;;  %v5197_v29 = vld [vmem:[%s7974_s2 + $0x594] sm:$0xf0] }
  0x74   :  { %1599 = vmatpush.bf16.msrb.mxu0 %v4110_v1  ;;  %v5173_v1 = vld [vmem:[%s7974_s2 + $0x4d4] sm:$0xf0]  ;;  %v3778_v4 = vor.u32 %v5109_v59, %v3777_v58  ;;  %v4130_v36 = vor.u32 %v5197_v29, %v4129_v28  ;;  %v3985_v39 = vld [vmem:[%s7974_s2 + $0x468] sm:$0xf] }
  0x75   :  { %1613 = vmatpush.bf16.msrb.mxu1 %v4238_v2  ;;  %v4161_v2 = vld [vmem:[%s7974_s2 + $0x5c8] sm:$0xf]  ;;  %v4034_v6 = vor.u32 %v5173_v1, %v4033_v63  ;;  %v5097_v34 = vld [vmem:[%s7974_s2 + $0x274] sm:$0xf0] }
  0x76   :  { %1627 = vmatpush.bf16.msrb.mxu2 %v3474_v3  ;;  %v5205_v3 = vld [vmem:[%s7974_s2 + $0x5d4] sm:$0xf0]  ;;  %v4113_v43 = vld [vmem:[%s7974_s2 + $0x568] sm:$0xf] }
  0x77   :  { %1641 = vmatpush.bf16.msrb.mxu3 %v3602_v7  ;;  %v3761_v7 = vld [vmem:[%s7974_s2 + $0x2a8] sm:$0xf]  ;;  %v4162_v10 = vor.u32 %v5205_v3, %v4161_v2  ;;  %v5129_v38 = vld [vmem:[%s7974_s2 + $0x374] sm:$0xf0] }
  0x78   :  { %1600 = vmatpush.bf16.msrb.mxu0 %v4094_v14  ;;  %v5169_v14 = vld [vmem:[%s7974_s2 + $0x4b4] sm:$0xf0]  ;;  %v3762_v17 = vor.u32 %v5105_v8, %v3761_v7  ;;  %v3713_v48 = vld [vmem:[%s7974_s2 + $0x248] sm:$0xf] }
  0x79   :  { %1614 = vmatpush.bf16.msrb.mxu1 %v4222_v15  ;;  %v4145_v15 = vld [vmem:[%s7974_s2 + $0x5a8] sm:$0xf]  ;;  %v4018_v19 = vor.u32 %v5169_v14, %v4017_v13  ;;  %v5161_v40 = vld [vmem:[%s7974_s2 + $0x474] sm:$0xf0] }
  0x7a   :  { %1628 = vmatpush.bf16.msrb.mxu2 %v3458_v16  ;;  %v5201_v16 = vld [vmem:[%s7974_s2 + $0x5b4] sm:$0xf0]  ;;  %v3986_v47 = vor.u32 %v5161_v40, %v3985_v39  ;;  %v3825_v63 = vld [vmem:[%s7974_s2 + $0x328] sm:$0xf]  ;;  %v5043_v39 = vld [vmem:[%s7974_s2 + $0xcc] sm:$0xf] }
  0x7b   :  { %1642 = vmatpush.bf16.msrb.mxu3 %v3586_v20  ;;  %v3745_v20 = vld [vmem:[%s7974_s2 + $0x288] sm:$0xf]  ;;  %v4146_v24 = vor.u32 %v5201_v16, %v4145_v15  ;;  %v5193_v44 = vld [vmem:[%s7974_s2 + $0x574] sm:$0xf0] }
  0x7c   :  { %1601 = vmatpush.bf16.msrb.mxu0 %v4078_v27  ;;  %v5165_v27 = vld [vmem:[%s7974_s2 + $0x494] sm:$0xf0]  ;;  %v4114_v51 = vor.u32 %v5193_v44, %v4113_v43  ;;  %v3953_v3 = vld [vmem:[%s7974_s2 + $0x428] sm:$0xf]  ;;  %v3523_v43 = vld [vmem:[%s7974_s2 + $0xd8] sm:$0xf0] }
  0x7d   :  { %1615 = vmatpush.bf16.msrb.mxu1 %v4206_v30  ;;  %v3746_v30 = vor.u32 %v5101_v21, %v3745_v20  ;;  %v4002_v32 = vor.u32 %v5165_v27, %v4001_v26  ;;  %v5125_v52 = vld [vmem:[%s7974_s2 + $0x354] sm:$0xf0]  ;;  %v3681_v8 = vld [vmem:[%s7974_s2 + $0x208] sm:$0xf]  ;;  %v5079_v26 = vld [vmem:[%s7974_s2 + $0x1ec] sm:$0xf] }
  0x7e   :  { %1629 = vmatpush.bf16.msrb.mxu2 %v3442_v31  ;;  %v3874_v31 = vor.u32 %v5133_v25, %v3873_v22  ;;  %v5089_v62 = vld [vmem:[%s7974_s2 + $0x234] sm:$0xf0]  ;;  %v3809_v13 = vld [vmem:[%s7974_s2 + $0x308] sm:$0xf]  ;;  %v5047_v22 = vld [vmem:[%s7974_s2 + $0xec] sm:$0xf] }
  0x7f   :  { %1643 = vmatpush.bf16.msrb.mxu3 %v3570_v35  ;;  %v3857_v35 = vld [vmem:[%s7974_s2 + $0x368] sm:$0xf]  ;;  %v5121_v2 = vld [vmem:[%s7974_s2 + $0x334] sm:$0xf0]  ;;  %v3539_v25 = vld [vmem:[%s7974_s2 + $0xf8] sm:$0xf0] }
  0x80   :  { %1602 = vmatpush.bf16.msrb.mxu0 %v4062_v45  ;;  %v3730_v45 = vor.u32 %v5097_v34, %v3729_v33  ;;  %v3858_v46 = vor.u32 %v5129_v38, %v3857_v35  ;;  %v5085_v9 = vld [vmem:[%s7974_s2 + $0x214] sm:$0xf0]  ;;  %v3937_v15 = vld [vmem:[%s7974_s2 + $0x408] sm:$0xf]  ;;  %v3667_v27 = vld [vmem:[%s7974_s2 + $0x1f8] sm:$0xf0]  ;;  %v3542_v34 = vor.u32 %v5047_v22, %v3539_v25 }
  0x81   :  { %1616 = vmatpush.bf16.msrb.mxu1 %v4190_v49  ;;  %v5093_v49 = vld [vmem:[%s7974_s2 + $0x254] sm:$0xf0]  ;;  %v4305_v20 = vld [vmem:[%s7974_s2 + $0x6e8] sm:$0xf]  ;;  %v3670_v35 = vor.u32 %v5079_v26, %v3667_v27  ;;  %v5075_v44 = vld [vmem:[%s7974_s2 + $0x1cc] sm:$0xf] }
  0x82   :  { %1630 = vmatpush.bf16.msrb.mxu2 %v3426_v50  ;;  %v3841_v50 = vld [vmem:[%s7974_s2 + $0x348] sm:$0xf]  ;;  %v3714_v58 = vor.u32 %v5093_v49, %v3713_v48  ;;  %v5117_v14 = vld [vmem:[%s7974_s2 + $0x314] sm:$0xf0]  ;;  %v3526_v49 = vor.u32 %v5043_v39, %v3523_v43  ;;  %v3731_v22 = vld [vmem:[%s7974_s2 + $0x278] sm:$0xf0] }
  0x83   :  { %1644 = vmatpush.bf16.msrb.mxu3 %v3554_v53  ;;  %1603 = vmatmul.bf16.vlgmr.msrb.gmra.mxu0 %v5933_v42  ;;  %v3969_v53 = vld [vmem:[%s7974_s2 + $0x448] sm:$0xf]  ;;  %v3842_v59 = vor.u32 %v5125_v52, %v3841_v50  ;;  %v5241_v21 = vld [vmem:[%s7974_s2 + $0x6f4] sm:$0xf0]  ;;  %v3810_v28 = vor.u32 %v5117_v14, %v3809_v13 }
  0x84   :  { %1651 = vmatpush.bf16.msra.mxu0 %v3794_v54  ;;  %1617 = vmatmul.bf16.vlgmr.msrb.gmra.mxu1 %v5931_v41  ;;  %v5157_v54 = vld [vmem:[%s7974_s2 + $0x454] sm:$0xf0]  ;;  %v4306_v33 = vor.u32 %v5241_v21, %v4305_v20  ;;  %v4241_v14 = vld [vmem:[%s7974_s2 + $0x668] sm:$0xf]  ;;  %v3603_v20 = vld [vmem:[%s7974_s2 + $0x178] sm:$0xf0] }
  0x85   :  { %1665 = vmatpush.bf16.msra.mxu1 %v3922_v55  ;;  %1631 = vmatmul.bf16.vlgmr.msrb.gmra.mxu2 %v5701_v57  ;;  %v4097_v55 = vld [vmem:[%s7974_s2 + $0x548] sm:$0xf]  ;;  %v3970_v60 = vor.u32 %v5157_v54, %v3969_v53  ;;  %v5237_v38 = vld [vmem:[%s7974_s2 + $0x6d4] sm:$0xf0]  ;;  %v5039_v53 = vld [vmem:[%s7974_s2 + $0xac] sm:$0xf] }
  0x86   :  { %1679 = vmatpush.bf16.msra.mxu2 %v4050_v56  ;;  %1645 = vmatmul.bf16.vlgmr.msrb.gmra.mxu3 %v5743_v11  ;;  %v5189_v56 = vld [vmem:[%s7974_s2 + $0x554] sm:$0xf0]  ;;  %v5095_v21 = vld [vmem:[%s7974_s2 + $0x26c] sm:$0xf]  ;;  %v4225_v27 = vld [vmem:[%s7974_s2 + $0x648] sm:$0xf] }
  0x87   :  { %1693 = vmatpush.bf16.msra.mxu3 %v4178_v61  ;;  %v3697_v61 = vld [vmem:[%s7974_s2 + $0x228] sm:$0xf]  ;;  %v4098_v1 = vor.u32 %v5189_v56, %v4097_v55  ;;  %v5233_v52 = vld [vmem:[%s7974_s2 + $0x6b4] sm:$0xf0]  ;;  %v3507_v55 = vld [vmem:[%s7974_s2 + $0xb8] sm:$0xf0] }
  0x88   :  { %1652 = vmatpush.bf16.msra.mxu0 %v3778_v4  ;;  %v5153_v4 = vld [vmem:[%s7974_s2 + $0x434] sm:$0xf0]  ;;  %v3698_v7 = vor.u32 %v5089_v62, %v3697_v61  ;;  %v5071_v56 = vld [vmem:[%s7974_s2 + $0x1ac] sm:$0xf]  ;;  %v3510_v62 = vor.u32 %v5039_v53, %v3507_v55 }
  0x89   :  { %1666 = vmatpush.bf16.msra.mxu1 %v3906_v5  ;;  %v4081_v5 = vld [vmem:[%s7974_s2 + $0x528] sm:$0xf]  ;;  %v3954_v12 = vor.u32 %v5153_v4, %v3953_v3  ;;  %v5035_v3 = vld [vmem:[%s7974_s2 + $0x8c] sm:$0xf]  ;;  %v5217_v43 = vld [vmem:[%s7974_s2 + $0x634] sm:$0xf0] }
  0x8a   :  { %1680 = vmatpush.bf16.msra.mxu2 %v4034_v6  ;;  %v5185_v6 = vld [vmem:[%s7974_s2 + $0x534] sm:$0xf0] }
  0x8b   :  { %1694 = vmatpush.bf16.msra.mxu3 %v4162_v10  ;;  %v3826_v10 = vor.u32 %v5121_v2, %v3825_v63  ;;  %v4082_v16 = vor.u32 %v5185_v6, %v4081_v5  ;;  %v5229_v2 = vld [vmem:[%s7974_s2 + $0x694] sm:$0xf0]  ;;  %v3491_v5 = vld [vmem:[%s7974_s2 + $0x98] sm:$0xf0]  ;;  %v5067_v6 = vld [vmem:[%s7974_s2 + $0x18c] sm:$0xf] }
  0x8c   :  { %1653 = vmatpush.bf16.msra.mxu0 %v3762_v17  ;;  %v5149_v17 = vld [vmem:[%s7974_s2 + $0x414] sm:$0xf0] }
  0x8d   :  { %1667 = vmatpush.bf16.msra.mxu1 %v3890_v18  ;;  %v4065_v18 = vld [vmem:[%s7974_s2 + $0x508] sm:$0xf]  ;;  %v3938_v29 = vor.u32 %v5149_v17, %v3937_v15  ;;  %v5225_v15 = vld [vmem:[%s7974_s2 + $0x674] sm:$0xf0] }
  0x8e   :  { %1681 = vmatpush.bf16.msra.mxu2 %v4018_v19  ;;  %v5181_v19 = vld [vmem:[%s7974_s2 + $0x514] sm:$0xf0] }
  0x8f   :  { %1695 = vmatpush.bf16.msra.mxu3 %v4146_v24  ;;  %v3682_v24 = vor.u32 %v5085_v9, %v3681_v8  ;;  %v5099_v8 = vld [vmem:[%s7974_s2 + $0x28c] sm:$0xf]  ;;  %v3747_v9 = vld [vmem:[%s7974_s2 + $0x298] sm:$0xf0]  ;;  %v5213_v53 = vld [vmem:[%s7974_s2 + $0x614] sm:$0xf0] }
  0x90   :  { %1654 = vmatpush.bf16.msra.mxu0 %v3746_v30  ;;  %v5111_v30 = vld [vmem:[%s7974_s2 + $0x2ec] sm:$0xf]  ;;  %v3750_v17 = vor.u32 %v5099_v8, %v3747_v9 }
  0x91   :  { %1668 = vmatpush.bf16.msra.mxu1 %v3874_v31  ;;  %v3795_v31 = vld [vmem:[%s7974_s2 + $0x2f8] sm:$0xf0] }
  0x92   :  { %1682 = vmatpush.bf16.msra.mxu2 %v4002_v32  ;;  %v4066_v32 = vor.u32 %v5181_v19, %v4065_v18  ;;  %v3798_v40 = vor.u32 %v5111_v30, %v3795_v31  ;;  %v3475_v18 = vld [vmem:[%s7974_s2 + $0x78] sm:$0xf0]  ;;  %v5063_v19 = vld [vmem:[%s7974_s2 + $0x16c] sm:$0xf]  ;;  %v3734_v30 = vor.u32 %v5095_v21, %v3731_v22 }
  0x93   :  { %1696 = vmatpush.bf16.msra.mxu3 %v4130_v36  ;;  %v4289_v36 = vld [vmem:[%s7974_s2 + $0x6c8] sm:$0xf]  ;;  %v3606_v26 = vor.u32 %v5063_v19, %v3603_v20  ;;  %v3459_v31 = vld [vmem:[%s7974_s2 + $0x58] sm:$0xf0]  ;;  %v5171_v20 = vld [vmem:[%s7974_s2 + $0x4cc] sm:$0xf] }
  0x94   :  { %1655 = vmatpush.bf16.msra.mxu0 %v3730_v45  ;;  %v3651_v45 = vld [vmem:[%s7974_s2 + $0x1d8] sm:$0xf0]  ;;  %v4290_v48 = vor.u32 %v5237_v38, %v4289_v36 }
  0x95   :  { %1669 = vmatpush.bf16.msra.mxu1 %v3858_v46  ;;  %v5107_v46 = vld [vmem:[%s7974_s2 + $0x2cc] sm:$0xf]  ;;  %v3654_v50 = vor.u32 %v5075_v44, %v3651_v45  ;;  %v3907_v19 = vld [vmem:[%s7974_s2 + $0x3d8] sm:$0xf0] }
  0x96   :  { %1683 = vmatpush.bf16.msra.mxu2 %v3986_v47  ;;  %v3779_v47 = vld [vmem:[%s7974_s2 + $0x2d8] sm:$0xf0]  ;;  %v5023_v44 = vld [vmem:[%s7974_s2 + $0x2c] sm:$0xf] }
  0x97   :  { %1697 = vmatpush.bf16.msra.mxu3 %v4114_v51  ;;  %v4273_v51 = vld [vmem:[%s7974_s2 + $0x6a8] sm:$0xf]  ;;  %v3782_v54 = vor.u32 %v5107_v46, %v3779_v47  ;;  %v3443_v46 = vld [vmem:[%s7974_s2 + $0x38] sm:$0xf0]  ;;  %v5055_v47 = vld [vmem:[%s7974_s2 + $0x12c] sm:$0xf] }
  0x98   :  { %1656 = vmatpush.bf16.msra.mxu0 %v3714_v58  ;;  %v3635_v58 = vld [vmem:[%s7974_s2 + $0x1b8] sm:$0xf0]  ;;  %v4274_v61 = vor.u32 %v5233_v52, %v4273_v51  ;;  %v4193_v52 = vld [vmem:[%s7974_s2 + $0x608] sm:$0xf] }
  0x99   :  { %1670 = vmatpush.bf16.msra.mxu1 %v3842_v59  ;;  %v5103_v59 = vld [vmem:[%s7974_s2 + $0x2ac] sm:$0xf]  ;;  %v3638_v63 = vor.u32 %v5071_v56, %v3635_v58  ;;  %v3427_v58 = vld [vmem:[%s7974_s2 + $0x18] sm:$0xf0] }
  0x9a   :  { %1684 = vmatpush.bf16.msra.mxu2 %v3970_v60  ;;  %v3763_v60 = vld [vmem:[%s7974_s2 + $0x2b8] sm:$0xf0]  ;;  %v5019_v56 = vld [vmem:[%s7974_s2 + $0xc] sm:$0xf] }
  0x9b   :  { %1698 = vmatpush.bf16.msra.mxu3 %v4098_v1  ;;  %v4257_v1 = vld [vmem:[%s7974_s2 + $0x688] sm:$0xf]  ;;  %v3766_v4 = vor.u32 %v5103_v59, %v3763_v60  ;;  %v5051_v59 = vld [vmem:[%s7974_s2 + $0x10c] sm:$0xf]  ;;  %v3430_v8 = vor.u32 %v5019_v56, %v3427_v58  ;;  %v4035_v22 = vld [vmem:[%s7974_s2 + $0x4d8] sm:$0xf0] }
  0x9c   :  { %1657 = vmatpush.bf16.msra.mxu0 %v3698_v7  ;;  %v3619_v7 = vld [vmem:[%s7974_s2 + $0x198] sm:$0xf0] }
  0x9d   :  { %1671 = vmatpush.bf16.msra.mxu1 %v3826_v10  ;;  %v4258_v10 = vor.u32 %v5229_v2, %v4257_v1  ;;  %v3622_v13 = vor.u32 %v5067_v6, %v3619_v7  ;;  %v5143_v1 = vld [vmem:[%s7974_s2 + $0x3ec] sm:$0xf]  ;;  %v3923_v2 = vld [vmem:[%s7974_s2 + $0x3f8] sm:$0xf0] }
  0x9e   :  { %1685 = vmatpush.bf16.msra.mxu2 %v3954_v12  ;;  %v3494_v12 = vor.u32 %v5035_v3, %v3491_v5  ;;  %v5175_v3 = vld [vmem:[%s7974_s2 + $0x4ec] sm:$0xf]  ;;  %v4051_v5 = vld [vmem:[%s7974_s2 + $0x4f8] sm:$0xf0] }
  0x9f   :  { %1699 = vmatpush.bf16.msra.mxu3 %v4082_v16  ;;  %v5031_v16 = vld [vmem:[%s7974_s2 + $0x6c] sm:$0xf]  ;;  %v4179_v7 = vld [vmem:[%s7974_s2 + $0x5f8] sm:$0xf0] }
  0xa0   :  { %1658 = vmatpush.bf16.msra.mxu0 %v3682_v24  ;;  %v4242_v24 = vor.u32 %v5225_v15, %v4241_v14  ;;  %v3478_v25 = vor.u32 %v5031_v16, %v3475_v18  ;;  %v5207_v6 = vld [vmem:[%s7974_s2 + $0x5ec] sm:$0xf]  ;;  %v3926_v14 = vor.u32 %v5143_v1, %v3923_v2  ;;  %v1830_v15 = vlaneseq }
  0xa1   :  { %1672 = vmatpush.bf16.msra.mxu1 %v3810_v28  ;;  %v5221_v28 = vld [vmem:[%s7974_s2 + $0x654] sm:$0xf0]  ;;  %v4054_v16 = vor.u32 %v5175_v3, %v4051_v5  ;;  %v5139_v18 = vld [vmem:[%s7974_s2 + $0x3cc] sm:$0xf]  ;;  %v3859_v3 = vld [vmem:[%s7974_s2 + $0x378] sm:$0xf0] }
  0xa2   :  { %1686 = vmatpush.bf16.msra.mxu2 %v3938_v29  ;;  %v5027_v29 = vld [vmem:[%s7974_s2 + $0x4c] sm:$0xf]  ;;  %v4226_v36 = vor.u32 %v5221_v28, %v4225_v27  ;;  %v4291_v27 = vld [vmem:[%s7974_s2 + $0x6d8] sm:$0xf0]  ;;  %v1831_v28 = vshrl.u32 %v1830_v15, 7 }
  0xa3   :  { %1700 = vmatpush.bf16.msra.mxu3 %v4066_v32  ;;  %1659 = vmatmul.bf16.vlgmr.msra.gmra.mxu0 %v5715_v0  ;;  %v5059_v32 = vld [vmem:[%s7974_s2 + $0x14c] sm:$0xf]  ;;  %v3462_v38 = vor.u32 %v5027_v29, %v3459_v31  ;;  %v3910_v29 = vor.u32 %v5139_v18, %v3907_v19  ;;  %v3891_v31 = vld [vmem:[%s7974_s2 + $0x3b8] sm:$0xf0] }
  0xa4   :  { %1707 = vmatpush.bf16.msrb.mxu0 %v4306_v33  ;;  %1673 = vmatmul.bf16.vlgmr.msra.gmra.mxu1 %v5770_v23  ;;  %v3587_v33 = vld [vmem:[%s7974_s2 + $0x158] sm:$0xf0]  ;;  %v5127_v2 = vld [vmem:[%s7974_s2 + $0x36c] sm:$0xf] }
  0xa5   :  { %1721 = vmatpush.bf16.msrb.mxu1 %v3542_v34  ;;  %1687 = vmatmul.bf16.vlgmr.msra.gmra.mxu2 %v5920_v37  ;;  %v5091_v34 = vld [vmem:[%s7974_s2 + $0x24c] sm:$0xf]  ;;  %v3590_v39 = vor.u32 %v5059_v32, %v3587_v33  ;;  %v4038_v32 = vor.u32 %v5171_v20, %v4035_v22  ;;  %v3843_v18 = vld [vmem:[%s7974_s2 + $0x358] sm:$0xf0] }
  0xa6   :  { %1735 = vmatpush.bf16.msrb.mxu2 %v3670_v35  ;;  %1701 = vmatmul.bf16.vlgmr.msra.gmra.mxu3 %v5933_v42  ;;  %v3715_v35 = vld [vmem:[%s7974_s2 + $0x258] sm:$0xf0] }
  0xa7   :  { %1749 = vmatpush.bf16.msrb.mxu3 %v3798_v40  ;;  %v4209_v40 = vld [vmem:[%s7974_s2 + $0x628] sm:$0xf]  ;;  %v3718_v45 = vor.u32 %v5091_v34, %v3715_v35  ;;  %v5167_v34 = vld [vmem:[%s7974_s2 + $0x4ac] sm:$0xf]  ;;  %v4019_v35 = vld [vmem:[%s7974_s2 + $0x4b8] sm:$0xf0] }
  0xa8   :  { %1708 = vmatpush.bf16.msrb.mxu0 %v4290_v48  ;;  %v3571_v48 = vld [vmem:[%s7974_s2 + $0x138] sm:$0xf0]  ;;  %v4210_v51 = vor.u32 %v5217_v43, %v4209_v40  ;;  %v1833_v43 = vstv %s1828_s26 }
  0xa9   :  { %1722 = vmatpush.bf16.msrb.mxu1 %v3526_v49  ;;  %v5087_v49 = vld [vmem:[%s7974_s2 + $0x22c] sm:$0xf]  ;;  %v3574_v55 = vor.u32 %v5055_v47, %v3571_v48  ;;  %v4147_v40 = vld [vmem:[%s7974_s2 + $0x5b8] sm:$0xf0]  ;;  %v1834_v47 = vadd.s32 %v1833_v43, %v1831_v28 }
  0xaa   :  { %1736 = vmatpush.bf16.msrb.mxu2 %v3654_v50  ;;  %v3699_v50 = vld [vmem:[%s7974_s2 + $0x238] sm:$0xf0] }
  0xab   :  { %1750 = vmatpush.bf16.msrb.mxu3 %v3782_v54  ;;  %v3446_v54 = vor.u32 %v5023_v44, %v3443_v46  ;;  %v3702_v60 = vor.u32 %v5087_v49, %v3699_v50  ;;  %v6751_v44 = vand.u32 127, %v1830_v15  ;;  %v4275_v46 = vld [vmem:[%s7974_s2 + $0x6b8] sm:$0xf0]  ;;  %v6780_v56 = vmul.u32 2246822519, %v1834_v47  ;;  %v6823_v15 = vpop.f32.mrf.mxu1 }
  0xac   :  { %1709 = vmatpush.bf16.msrb.mxu0 %v4274_v61  ;;  %v3555_v61 = vld [vmem:[%s7974_s2 + $0x118] sm:$0xf0] }
  0xad   :  { %1723 = vmatpush.bf16.msrb.mxu1 %v3510_v62  ;;  %v5083_v62 = vld [vmem:[%s7974_s2 + $0x20c] sm:$0xf]  ;;  %v3558_v9 = vor.u32 %v5051_v59, %v3555_v61  ;;  %v3875_v50 = vld [vmem:[%s7974_s2 + $0x398] sm:$0xf0]  ;;  %v1843_v59 = vmul.u32 3266489917, %v6751_v44 }
  0xae   :  { %1737 = vmatpush.bf16.msrb.mxu2 %v3638_v63  ;;  %v3683_v63 = vld [vmem:[%s7974_s2 + $0x218] sm:$0xf0] }
  0xaf   :  { %1751 = vmatpush.bf16.msrb.mxu3 %v3766_v4  ;;  %v4194_v4 = vor.u32 %v5213_v53, %v4193_v52  ;;  %v5195_v53 = vld [vmem:[%s7974_s2 + $0x58c] sm:$0xf]  ;;  %v4259_v61 = vld [vmem:[%s7974_s2 + $0x698] sm:$0xf0] }
  0xb0   :  { %1710 = vmatpush.bf16.msrb.mxu0 %v4258_v10  ;;  %v5239_v10 = vld [vmem:[%s7974_s2 + $0x6ec] sm:$0xf]  ;;  %v3971_v22 = vld [vmem:[%s7974_s2 + $0x458] sm:$0xf0] }
  0xb1   :  { %1724 = vmatpush.bf16.msrb.mxu1 %v3494_v12  ;;  %v4307_v12 = vld [vmem:[%s7974_s2 + $0x6f8] sm:$0xf0] }
  0xb2   :  { %1738 = vmatpush.bf16.msrb.mxu2 %v3622_v13  ;;  %v3686_v13 = vor.u32 %v5083_v62, %v3683_v63  ;;  %v4310_v21 = vor.u32 %v5239_v10, %v4307_v12  ;;  %v6815_v12 = vpop.f32.mrf.mxu0 }
  0xb3   :  { %1752 = vmatpush.bf16.msrb.mxu3 %v3750_v17  ;;  %v4182_v17 = vor.u32 %v5207_v6, %v4179_v7  ;;  %v3987_v6 = vld [vmem:[%s7974_s2 + $0x478] sm:$0xf0]  ;;  %v5191_v7 = vld [vmem:[%s7974_s2 + $0x56c] sm:$0xf] }
  0xb4   :  { %1711 = vmatpush.bf16.msrb.mxu0 %v4242_v24  ;;  %v5203_v24 = vld [vmem:[%s7974_s2 + $0x5cc] sm:$0xf] }
  0xb5   :  { %1725 = vmatpush.bf16.msrb.mxu1 %v3478_v25  ;;  %v4163_v25 = vld [vmem:[%s7974_s2 + $0x5d8] sm:$0xf0] }
  0xb6   :  { %1739 = vmatpush.bf16.msrb.mxu2 %v3606_v26  ;;  %v5235_v26 = vld [vmem:[%s7974_s2 + $0x6cc] sm:$0xf]  ;;  %v4166_v33 = vor.u32 %v5203_v24, %v4163_v25 }
  0xb7   :  { %1753 = vmatpush.bf16.msrb.mxu3 %v3734_v30  ;;  %v5135_v30 = vld [vmem:[%s7974_s2 + $0x3ac] sm:$0xf] }
  0xb8   :  { %1712 = vmatpush.bf16.msrb.mxu0 %v4226_v36  ;;  %v1832_v36 = vadd.s32 8, %v1831_v28  ;;  %v3894_v49 = vor.u32 %v5135_v30, %v3891_v31  ;;  %v5187_v24 = vld [vmem:[%s7974_s2 + $0x54c] sm:$0xf]  ;;  %v4227_v30 = vld [vmem:[%s7974_s2 + $0x658] sm:$0xf0] }
  0xb9   :  { %1726 = vmatpush.bf16.msrb.mxu1 %v3462_v38  ;;  %v4294_v38 = vor.u32 %v5235_v26, %v4291_v27  ;;  %v4099_v26 = vld [vmem:[%s7974_s2 + $0x558] sm:$0xf0]  ;;  %v6854_v31 = vld [vmem:[%s7977_s3] sm:$0xf] }
  0xba   :  { %1740 = vmatpush.bf16.msrb.mxu2 %v3590_v39  ;;  %v5199_v39 = vld [vmem:[%s7974_s2 + $0x5ac] sm:$0xf]  ;;  %v1835_v48 = vadd.s32 %v1833_v43, %v1832_v36  ;;  %v4102_v36 = vor.u32 %v5187_v24, %v4099_v26  ;;  %v4409_v26 = vld [vmem:[%s7978_s4 + $0xc0] sm:$0xf] }
  0xbb   :  { %1754 = vmatpush.bf16.msrb.mxu3 %v3718_v45  ;;  %v5231_v45 = vld [vmem:[%s7974_s2 + $0x6ac] sm:$0xf]  ;;  %v4150_v52 = vor.u32 %v5199_v39, %v4147_v40  ;;  %v3955_v40 = vld [vmem:[%s7974_s2 + $0x438] sm:$0xf0] }
  0xbc   :  { %1713 = vmatpush.bf16.msrb.mxu0 %v4210_v51  ;;  %v5163_v51 = vld [vmem:[%s7974_s2 + $0x48c] sm:$0xf]  ;;  %v6782_v58 = vmul.u32 2246822519, %v1835_v48 }
  0xbd   :  { %1727 = vmatpush.bf16.msrb.mxu1 %v3446_v54  ;;  %v4131_v54 = vld [vmem:[%s7974_s2 + $0x598] sm:$0xf0]  ;;  %v5151_v39 = vld [vmem:[%s7974_s2 + $0x42c] sm:$0xf] }
  0xbe   :  { %1741 = vmatpush.bf16.msrb.mxu2 %v3574_v55  ;;  %v4278_v55 = vor.u32 %v5231_v45, %v4275_v46  ;;  %v4134_v1 = vor.u32 %v5195_v53, %v4131_v54  ;;  %v6813_v10 = vxor.u32 %v1843_v59, %v6782_v58  ;;  %v5183_v45 = vld [vmem:[%s7974_s2 + $0x52c] sm:$0xf]  ;;  %v4083_v46 = vld [vmem:[%s7974_s2 + $0x538] sm:$0xf0] }
  0xbf   :  { %1755 = vmatpush.bf16.msrb.mxu3 %v3702_v60  ;;  %v5227_v60 = vld [vmem:[%s7974_s2 + $0x68c] sm:$0xf]  ;;  %v4086_v53 = vor.u32 %v5183_v45, %v4083_v46  ;;  %v3811_v54 = vld [vmem:[%s7974_s2 + $0x318] sm:$0xf0] }
  0xc0   :  { %1714 = vmatpush.bf16.msrb.mxu0 %v4194_v4  ;;  %v5159_v4 = vld [vmem:[%s7974_s2 + $0x46c] sm:$0xf]  ;;  %v4262_v5 = vor.u32 %v5227_v60, %v4259_v61  ;;  %v1859_v28 = vxor.u32 1013904242, %v6813_v10  ;;  %v1452_v60 = vpop.f32.mrf.mxu1 }
  0xc1   :  { %1728 = vmatpush.bf16.msrb.mxu1 %v3430_v8  ;;  %v4115_v8 = vld [vmem:[%s7974_s2 + $0x578] sm:$0xf0]  ;;  %v3990_v19 = vor.u32 %v5159_v4, %v3987_v6  ;;  %v6904_v4 = vpop.f32.mrf.mxu3  ;;  %v4425_v6 = vld [vmem:[%s7978_s4 + $0xe0] sm:$0xf] }
  0xc2   :  { %1742 = vmatpush.bf16.msrb.mxu2 %v3558_v9  ;;  %v6810_v9 = vxor.u32 %v1843_v59, %v6780_v56  ;;  %v4118_v20 = vor.u32 %v5191_v7, %v4115_v8  ;;  %v1867_v48 = vshrl.u32 %v1859_v28, 16  ;;  %v3939_v59 = vld [vmem:[%s7974_s2 + $0x418] sm:$0xf0]  ;;  %v5272_v7 = vld [vmem:[%s7978_s4 + $0xec] sm:$0xf0] }
  0xc3   :  { %1756 = vmatpush.bf16.msrb.mxu3 %v3686_v13  ;;  %1715 = vmatmul.bf16.vlgmr.msrb.gmra.mxu0 %v5931_v41  ;;  %v5223_v13 = vld [vmem:[%s7974_s2 + $0x66c] sm:$0xf] }
  0xc4   :  { %1763 = vmatpush.bf16.msra.mxu0 %v3926_v14  ;;  %1729 = vmatmul.bf16.vlgmr.msrb.gmra.mxu1 %v5701_v57  ;;  %v4003_v57 = vld [vmem:[%s7974_s2 + $0x498] sm:$0xf0]  ;;  %v1855_v27 = vxor.u32 1013904242, %v6810_v9 }
  0xc5   :  { %1777 = vmatpush.bf16.msra.mxu1 %v4054_v16  ;;  %1743 = vmatmul.bf16.vlgmr.msrb.gmra.mxu2 %v5743_v11  ;;  %v5131_v11 = vld [vmem:[%s7974_s2 + $0x38c] sm:$0xf]  ;;  %v4006_v63 = vor.u32 %v5163_v51, %v4003_v57  ;;  %v4243_v14 = vld [vmem:[%s7974_s2 + $0x678] sm:$0xf0]  ;;  %v3862_v16 = vor.u32 %v5127_v2, %v3859_v3  ;;  %v3958_v57 = vor.u32 %v5151_v39, %v3955_v40  ;;  %v4393_v40 = vld [vmem:[%s7978_s4 + $0xa0] sm:$0xf] }
  0xc6   :  { %1791 = vmatpush.bf16.msra.mxu2 %v4182_v17  ;;  %1757 = vmatmul.bf16.vlgmr.msrb.gmra.mxu3 %v5715_v0  ;;  %v4022_v0 = vor.u32 %v5167_v34, %v4019_v35  ;;  %v3878_v62 = vor.u32 %v5131_v11, %v3875_v50  ;;  %v5123_v17 = vld [vmem:[%s7974_s2 + $0x34c] sm:$0xf]  ;;  %v4246_v25 = vor.u32 %v5223_v13, %v4243_v14  ;;  %v6859_v34 = vpop.f32.mrf.mxu2  ;;  %v1863_v47 = vshrl.u32 %v1855_v27, 16  ;;  %v4211_v11 = vld [vmem:[%s7974_s2 + $0x638] sm:$0xf0] }
  0xc7   :  { %1805 = vmatpush.bf16.msra.mxu3 %v4310_v21  ;;  %v5155_v21 = vld [vmem:[%s7974_s2 + $0x44c] sm:$0xf]  ;;  %v263_v50 = vperm.slane %v6854_v31, 0  ;;  %v1875_v3 = vxor.u32 %v1867_v48, %v1859_v28  ;;  %v4553_v13 = vld [vmem:[%s7978_s4 + $0x1e0] sm:$0xf] }
  0xc8   :  { %1764 = vmatpush.bf16.msra.mxu0 %v3910_v29  ;;  %v5219_v29 = vld [vmem:[%s7974_s2 + $0x64c] sm:$0xf]  ;;  %v3974_v35 = vor.u32 %v5155_v21, %v3971_v22  ;;  %v1871_v2 = vxor.u32 %v1863_v47, %v1855_v27  ;;  %v5304_v14 = vld [vmem:[%s7978_s4 + $0x1ec] sm:$0xf0]  ;;  %v4537_v28 = vld [vmem:[%s7978_s4 + $0x1c0] sm:$0xf]  ;;  %v1506_v46 = vpop.f32.mrf.mxu1 }
  0xc9   :  { %1778 = vmatpush.bf16.msra.mxu1 %v4038_v32  ;;  %v3846_v32 = vor.u32 %v5123_v17, %v3843_v18  ;;  %v4230_v43 = vor.u32 %v5219_v29, %v4227_v30  ;;  %v1883_v22 = vmul.u32 2146121005, %v1875_v3  ;;  %v5268_v27 = vld [vmem:[%s7978_s4 + $0xcc] sm:$0xf0]  ;;  %v1838_v30 = vadd.s32 128, %v6751_v44 }
  0xca   :  { %1792 = vmatpush.bf16.msra.mxu2 %v4166_v33  ;;  %v5119_v33 = vld [vmem:[%s7974_s2 + $0x32c] sm:$0xf]  ;;  %v1879_v21 = vmul.u32 2146121005, %v1871_v2  ;;  %v5300_v29 = vld [vmem:[%s7978_s4 + $0x1cc] sm:$0xf0] }
  0xcb   :  { %1806 = vmatpush.bf16.msra.mxu3 %v4294_v38  ;;  %v3827_v38 = vld [vmem:[%s7974_s2 + $0x338] sm:$0xf0]  ;;  %v4538_v39 = vor.u32 %v5300_v29, %v4537_v28  ;;  %v5296_v47 = vld [vmem:[%s7978_s4 + $0x1ac] sm:$0xf0]  ;;  %v4329_v29 = vld [vmem:[%s7978_s4 + $0x20] sm:$0xf] }
  0xcc   :  { %1765 = vmatpush.bf16.msra.mxu0 %v3894_v49  ;;  %v5215_v49 = vld [vmem:[%s7974_s2 + $0x62c] sm:$0xf]  ;;  %v3830_v51 = vor.u32 %v5119_v33, %v3827_v38  ;;  %v4410_v33 = vor.u32 %v5268_v27, %v4409_v26  ;;  %v5256_v2 = vld [vmem:[%s7978_s4 + $0x6c] sm:$0xf0]  ;;  %v4473_v26 = vld [vmem:[%s7978_s4 + $0x140] sm:$0xf] }
  0xcd   :  { %1779 = vmatpush.bf16.msra.mxu1 %v4022_v0  ;;  %v5115_v0 = vld [vmem:[%s7974_s2 + $0x30c] sm:$0xf]  ;;  %v4214_v61 = vor.u32 %v5215_v49, %v4211_v11  ;;  %v1480_v49 = vpop.f32.mrf.mxu3  ;;  %v5284_v27 = vld [vmem:[%s7978_s4 + $0x14c] sm:$0xf0] }
  0xce   :  { %1793 = vmatpush.bf16.msra.mxu2 %v4150_v52  ;;  %v1438_v52 = vpop.f32.mrf.mxu0  ;;  %v3814_v8 = vor.u32 %v5115_v0, %v3811_v54  ;;  %v1466_v24 = vpop.f32.mrf.mxu2  ;;  %v4377_v0 = vld [vmem:[%s7978_s4 + $0x80] sm:$0xf] }
  0xcf   :  { %1807 = vmatpush.bf16.msra.mxu3 %v4278_v55  ;;  %v5147_v55 = vld [vmem:[%s7974_s2 + $0x40c] sm:$0xf] }
  0xd0   :  { %1766 = vmatpush.bf16.msra.mxu0 %v3878_v62  ;;  %v5179_v62 = vld [vmem:[%s7974_s2 + $0x50c] sm:$0xf]  ;;  %v3942_v17 = vor.u32 %v5147_v55, %v3939_v59 }
  0xd1   :  { %1780 = vmatpush.bf16.msra.mxu1 %v4006_v63  ;;  %v4067_v63 = vld [vmem:[%s7974_s2 + $0x518] sm:$0xf0] }
  0xd2   :  { %1794 = vmatpush.bf16.msra.mxu2 %v4134_v1  ;;  %v5211_v1 = vld [vmem:[%s7974_s2 + $0x60c] sm:$0xf]  ;;  %v4070_v18 = vor.u32 %v5179_v62, %v4067_v63 }
  0xd3   :  { %1808 = vmatpush.bf16.msra.mxu3 %v4262_v5  ;;  %v4195_v5 = vld [vmem:[%s7974_s2 + $0x618] sm:$0xf0] }
  0xd4   :  { %1767 = vmatpush.bf16.msra.mxu0 %v3862_v16  ;;  %v1437_v16 = vadd.f32 %v6815_v12, %v263_v50  ;;  %v1439_v12 = vadd.f32 %v1438_v52, %v263_v50 }
  0xd5   :  { %1781 = vmatpush.bf16.msra.mxu1 %v3990_v19  ;;  %v4198_v19 = vor.u32 %v5211_v1, %v4195_v5  ;;  %v4361_v1 = vld [vmem:[%s7978_s4 + $0x60] sm:$0xf] }
  0xd6   :  { %1795 = vmatpush.bf16.msra.mxu2 %v4118_v20  ;;  %v4426_v20 = vor.u32 %v5272_v7, %v4425_v6  ;;  %v1492_v38 = vpop.f32.mrf.mxu0  ;;  %v1453_v45 = vadd.f32 %v1452_v60, %v1439_v12  ;;  %v1520_v55 = vpop.f32.mrf.mxu2  ;;  %v4489_v5 = vld [vmem:[%s7978_s4 + $0x160] sm:$0xf]  ;;  %v5288_v6 = vld [vmem:[%s7978_s4 + $0x16c] sm:$0xf0] }
  0xd7   :  { %1809 = vmatpush.bf16.msra.mxu3 %v4246_v25  ;;  %v4554_v25 = vor.u32 %v5304_v14, %v4553_v13  ;;  %v1534_v13 = vpop.f32.mrf.mxu3  ;;  %v1508_v14 = vpop.f32.mrf.mxu1 }
  0xd8   :  { %1768 = vmatpush.bf16.msra.mxu0 %v3846_v32  ;;  %v1451_v32 = vadd.f32 %v6823_v15, %v1437_v16  ;;  %v5264_v15 = vld [vmem:[%s7978_s4 + $0xac] sm:$0xf0]  ;;  %v4362_v16 = vor.u32 %v5256_v2, %v4361_v1  ;;  %v5302_v2 = vld [vmem:[%s7978_s4 + $0x1e4] sm:$0xf] }
  0xd9   :  { %1782 = vmatpush.bf16.msra.mxu1 %v3974_v35  ;;  %v1887_v35 = vshrl.u32 %v1879_v21, 15  ;;  %v4394_v11 = vor.u32 %v5264_v15, %v4393_v40  ;;  %v264_v15 = vperm.slane %v6854_v31, 1 }
  0xda   :  { %1796 = vmatpush.bf16.msra.mxu2 %v4102_v36  ;;  %v1891_v36 = vshrl.u32 %v1883_v22, 15  ;;  %v1465_v48 = vadd.f32 %v6859_v34, %v1451_v32  ;;  %v5260_v34 = vld [vmem:[%s7978_s4 + $0x8c] sm:$0xf0] }
  0xdb   :  { %1810 = vmatpush.bf16.msra.mxu3 %v4230_v43  ;;  %v1844_v43 = vmul.u32 3266489917, %v1838_v30  ;;  %v1895_v50 = vxor.u32 %v1887_v35, %v1879_v21  ;;  %v4378_v59 = vor.u32 %v5260_v34, %v4377_v0  ;;  %v4345_v21 = vld [vmem:[%s7978_s4 + $0x40] sm:$0xf]  ;;  %v5248_v30 = vld [vmem:[%s7978_s4 + $0x2c] sm:$0xf0]  ;;  %v1535_v1 = vadd.f32 %v1534_v13, %v264_v15 }
  0xdc   :  { %1769 = vmatpush.bf16.msra.mxu0 %v3830_v51  ;;  %v1899_v51 = vxor.u32 %v1891_v36, %v1883_v22  ;;  %v1479_v54 = vadd.f32 %v6904_v4, %v1465_v48  ;;  %v5252_v22 = vld [vmem:[%s7978_s4 + $0x4c] sm:$0xf0]  ;;  %v4313_v48 = vld [vmem:[%s7978_s4] sm:$0xf] }
  0xdd   :  { %1783 = vmatpush.bf16.msra.mxu1 %v3958_v57  ;;  %v6963_v52 = vxor.u32 %v1844_v43, %v6782_v58  ;;  %v4505_v57 = vld [vmem:[%s7978_s4 + $0x180] sm:$0xf]  ;;  %v1903_v60 = vmul.u32 2221713035, %v1895_v50  ;;  %v4346_v28 = vor.u32 %v5252_v22, %v4345_v21  ;;  %v4539_v21 = vld [vmem:[%s7978_s4 + $0x1d0] sm:$0xf0] }
  0xde   :  { %1797 = vmatpush.bf16.msra.mxu2 %v4086_v53  ;;  %v5292_v53 = vld [vmem:[%s7978_s4 + $0x18c] sm:$0xf0]  ;;  %v1493_v7 = vadd.f32 %v1492_v38, %v1479_v54  ;;  %v1522_v36 = vpop.f32.mrf.mxu2  ;;  %v4474_v38 = vor.u32 %v5284_v27, %v4473_v26  ;;  %v4681_v54 = vld [vmem:[%s7978_s4 + $0x2e0] sm:$0xf] }
  0xdf   :  { %1811 = vmatpush.bf16.msra.mxu3 %v4214_v61  ;;  %v1907_v61 = vmul.u32 2221713035, %v1899_v51  ;;  %v4506_v63 = vor.u32 %v5292_v53, %v4505_v57  ;;  %v1860_v3 = vxor.u32 1013904242, %v6963_v52  ;;  %v1536_v57 = vpop.f32.mrf.mxu3  ;;  %v5332_v22 = vld [vmem:[%s7978_s4 + $0x2cc] sm:$0xf0] }
  0xe0   :  { %1770 = vmatpush.bf16.msra.mxu0 %v3814_v8  ;;  %v1494_v8 = vpop.f32.mrf.mxu0  ;;  %v1507_v12 = vadd.f32 %v1506_v46, %v1493_v7 }
  0xe1   :  { %1784 = vmatpush.bf16.msra.mxu1 %v3942_v17  ;;  %v1911_v17 = vshrl.u32 %v1903_v60, 16  ;;  %v7020_v51 = vpop.f32.mrf.mxu1 }
  0xe2   :  { %1798 = vmatpush.bf16.msra.mxu2 %v4070_v18  ;;  %v1915_v18 = vshrl.u32 %v1907_v61, 16  ;;  %v1521_v46 = vadd.f32 %v1520_v55, %v1507_v12  ;;  %v5336_v55 = vld [vmem:[%s7978_s4 + $0x2ec] sm:$0xf0] }
  0xe3   :  { %1812 = vmatpush.bf16.msra.mxu3 %v4198_v19  ;;  %1771 = vmatmul.bf16.vlgmr.msra.gmra.mxu0 %v5770_v23  ;;  %v4521_v23 = vld [vmem:[%s7978_s4 + $0x1a0] sm:$0xf]  ;;  %v1919_v32 = vxor.u32 %v1911_v17, %v1903_v60  ;;  %v5270_v60 = vld [vmem:[%s7978_s4 + $0xe4] sm:$0xf]  ;;  %v4411_v17 = vld [vmem:[%s7978_s4 + $0xd0] sm:$0xf0] }
  0xe4   :  { %2733 = vmatpush.bf16.msrb.mxu0 %v4426_v20  ;;  %1785 = vmatmul.bf16.vlgmr.msra.gmra.mxu1 %v5920_v37  ;;  %v6954_v37 = vxor.u32 %v1844_v43, %v6780_v56  ;;  %v4490_v20 = vor.u32 %v5288_v6, %v4489_v5  ;;  %v4457_v43 = vld [vmem:[%s7978_s4 + $0x120] sm:$0xf] }
  0xe5   :  { %2747 = vmatpush.bf16.msrb.mxu1 %v4554_v25  ;;  %1799 = vmatmul.bf16.vlgmr.msra.gmra.mxu2 %v5933_v42  ;;  %v4522_v42 = vor.u32 %v5296_v47, %v4521_v23  ;;  %v4330_v47 = vor.u32 %v5248_v30, %v4329_v29  ;;  %v1927_v0 = vshrl.u32 %v1919_v32, 8  ;;  %v4649_v32 = vld [vmem:[%s7978_s4 + $0x2a0] sm:$0xf] }
  0xe6   :  { %1813 = vmatmul.bf16.vlgmr.msra.gmra.mxu3 %v5931_v41  ;;  %v1467_v41 = vadd.f32 %v1466_v24, %v1453_v45  ;;  %v1856_v62 = vxor.u32 1013904242, %v6954_v37  ;;  %v1868_v24 = vshrl.u32 %v1860_v3, 16  ;;  %v5280_v45 = vld [vmem:[%s7978_s4 + $0x12c] sm:$0xf0] }
  0xe7   :  { %v4458_v53 = vor.u32 %v5280_v45, %v4457_v43  ;;  %vm1935_vm0 = vcmp.ge.s32.totalorder %v1927_v0, 3355443 }
  0xe8   :  { %2734 = vmatpush.bf16.msrb.mxu0 %v4410_v33  ;;  %v1481_v4 = vadd.f32 %v1480_v49, %v1467_v41  ;;  %v1864_v19 = vshrl.u32 %v1856_v62, 16  ;;  %v1923_v33 = vxor.u32 %v1915_v18, %v1907_v61  ;;  %v1548_v23 = vpop.f32.mrf.mxu0  ;;  %v5244_v49 = vld [vmem:[%s7978_s4 + $0xc] sm:$0xf0]  ;;  %v4427_v61 = vld [vmem:[%s7978_s4 + $0xf0] sm:$0xf0] }
  0xe9   :  { %2748 = vmatpush.bf16.msrb.mxu1 %v4538_v39  ;;  %v1876_v39 = vxor.u32 %v1868_v24, %v1860_v3  ;;  %v4555_v3 = vld [vmem:[%s7978_s4 + $0x1f0] sm:$0xf0]  ;;  %v4314_v5 = vor.u32 %v5244_v49, %v4313_v48  ;;  %v4665_v18 = vld [vmem:[%s7978_s4 + $0x2c0] sm:$0xf]  ;;  %v1549_v24 = vadd.f32 %v1548_v23, %v1535_v1  ;;  %v1590_v45 = vpop.f32.mrf.mxu3  ;;  %v5320_v1 = vld [vmem:[%s7978_s4 + $0x26c] sm:$0xf0] }
  0xea   :  { %v1495_v25 = vadd.f32 %v1494_v8, %v1481_v4  ;;  %v1872_v35 = vxor.u32 %v1864_v19, %v1856_v62  ;;  %v1931_v34 = vshrl.u32 %v1923_v33, 8  ;;  %v4682_v62 = vor.u32 %v5336_v55, %v4681_v54  ;;  %v1576_v19 = vpop.f32.mrf.mxu2  ;;  %v5328_v33 = vld [vmem:[%s7978_s4 + $0x2ac] sm:$0xf0] }
  0xeb   :  { %v4430_v8 = vor.u32 %v5270_v60, %v4427_v61  ;;  %v4558_v13 = vor.u32 %v5302_v2, %v4555_v3  ;;  %v4666_v27 = vor.u32 %v5332_v22, %v4665_v18  ;;  %v4650_v43 = vor.u32 %v5328_v33, %v4649_v32  ;;  %v4601_v22 = vld [vmem:[%s7978_s4 + $0x240] sm:$0xf] }
  0xec   :  { %2735 = vmatpush.bf16.msrb.mxu0 %v4394_v11  ;;  %v1509_v40 = vadd.f32 %v1508_v14, %v1495_v25  ;;  %v4441_v11 = vld [vmem:[%s7978_s4 + $0x100] sm:$0xf]  ;;  %v1880_v41 = vmul.u32 2146121005, %v1872_v35  ;;  %2761 = vmatpush.bf16.msrb.mxu2 %v4682_v62  ;;  %vm1939_vm1 = vcmp.ge.s32.totalorder %v1931_v34, 3355443  ;;  %v1537_v35 = vadd.f32 %v1536_v57, %v264_v15 }
  0xed   :  { %2749 = vmatpush.bf16.msrb.mxu1 %v4522_v42  ;;  %v5276_v42 = vld [vmem:[%s7978_s4 + $0x10c] sm:$0xf0]  ;;  %vm7061_vm2 = vmpackc.low %vm1939_vm1, %vm1935_vm0  ;;  %v5294_v15 = vld [vmem:[%s7978_s4 + $0x1a4] sm:$0xf]  ;;  %v1563_v23 = vadd.f32 %v7020_v51, %v1549_v24 }
  0xee   :  { %v1523_v50 = vadd.f32 %v1522_v36, %v1509_v40  ;;  %v4442_v6 = vor.u32 %v5276_v42, %v4441_v11  ;;  %v1888_v7 = vshrl.u32 %v1880_v41, 15  ;;  %v1564_v36 = vpop.f32.mrf.mxu1  ;;  %v4395_v40 = vld [vmem:[%s7978_s4 + $0xb0] sm:$0xf0]  ;;  %v4633_v11 = vld [vmem:[%s7978_s4 + $0x280] sm:$0xf] }
  0xef   :  { %v5258_v34 = vld [vmem:[%s7978_s4 + $0x84] sm:$0xf]  ;;  %v4379_v51 = vld [vmem:[%s7978_s4 + $0x90] sm:$0xf0]  ;;  %v1577_v54 = vadd.f32 %v1576_v19, %v1563_v23  ;;  %v5316_v24 = vld [vmem:[%s7978_s4 + $0x24c] sm:$0xf0] }
  0xf0   :  { %2736 = vmatpush.bf16.msrb.mxu0 %v4378_v59  ;;  %v1884_v59 = vmul.u32 2146121005, %v1876_v39  ;;  %v1823_v4 = vmax.f32 %v1523_v50, 0.0  ;;  %v1896_v26 = vxor.u32 %v1888_v7, %v1880_v41  ;;  %v5262_v39 = vld [vmem:[%s7978_s4 + $0xa4] sm:$0xf]  ;;  %2762 = vmatpush.bf16.msrb.mxu2 %v4666_v27  ;;  %v4382_v61 = vor.u32 %v5258_v34, %v4379_v51 }
  0xf1   :  { %2750 = vmatpush.bf16.msrb.mxu1 %v4506_v63  ;;  %v1819_v63 = vmax.f32 %v1521_v46, 0.0  ;;  %v4523_v46 = vld [vmem:[%s7978_s4 + $0x1b0] sm:$0xf0]  ;;  %v4398_v48 = vor.u32 %v5262_v39, %v4395_v40  ;;  %v5324_v50 = vld [vmem:[%s7978_s4 + $0x28c] sm:$0xf0]  ;;  %v1592_v18 = vpop.f32.mrf.mxu3  ;;  %v4602_v32 = vor.u32 %v5316_v24, %v4601_v22  ;;  %v1839_v24 = vadd.s32 256, %v6751_v44 }
  0xf2   :  { %v1892_v14 = vshrl.u32 %v1884_v59, 15  ;;  %v4526_v0 = vor.u32 %v5294_v15, %v4523_v46  ;;  %v4634_v41 = vor.u32 %v5324_v50, %v4633_v11  ;;  %v5290_v57 = vld [vmem:[%s7978_s4 + $0x184] sm:$0xf]  ;;  %v4459_v50 = vld [vmem:[%s7978_s4 + $0x130] sm:$0xf0] }
  0xf3   :  { %v7065_v12 = vpack.c.bf16 %v1823_v4, %v1819_v63  ;;  %v4617_v63 = vld [vmem:[%s7978_s4 + $0x260] sm:$0xf]  ;;  %v5278_v11 = vld [vmem:[%s7978_s4 + $0x124] sm:$0xf]  ;;  %v4315_v51 = vld [vmem:[%s7978_s4 + $0x10] sm:$0xf0] }
  0xf4   :  { %2737 = vmatpush.bf16.msrb.mxu0 %v4362_v16  ;;  %v5266_v16 = vld [vmem:[%s7978_s4 + $0xc4] sm:$0xf]  ;;  %v1900_v30 = vxor.u32 %v1892_v14, %v1884_v59  ;;  %2763 = vmatpush.bf16.msrb.mxu2 %v4650_v43  ;;  %v1578_v59 = vpop.f32.mrf.mxu2  ;;  %v4618_v7 = vor.u32 %v5320_v1, %v4617_v63  ;;  %v4491_v14 = vld [vmem:[%s7978_s4 + $0x170] sm:$0xf0]  ;;  %v4585_v43 = vld [vmem:[%s7978_s4 + $0x220] sm:$0xf] }
  0xf5   :  { %2751 = vmatpush.bf16.msrb.mxu1 %v4490_v20  ;;  %v5298_v20 = vld [vmem:[%s7978_s4 + $0x1c4] sm:$0xf]  ;;  %v4414_v29 = vor.u32 %v5266_v16, %v4411_v17  ;;  %v4683_v1 = vld [vmem:[%s7978_s4 + $0x2f0] sm:$0xf0] }
  0xf6   :  { %v1908_v49 = vmul.u32 2221713035, %v1900_v30  ;;  %v4475_v30 = vld [vmem:[%s7978_s4 + $0x150] sm:$0xf0]  ;;  %v5242_v34 = vld [vmem:[%s7978_s4 + $0x4] sm:$0xf] }
  0xf7   :  { %v5334_v63 = vld [vmem:[%s7978_s4 + $0x2e4] sm:$0xf]  ;;  %v4667_v22 = vld [vmem:[%s7978_s4 + $0x2d0] sm:$0xf0] }
  0xf8   :  { %2738 = vmatpush.bf16.msrb.mxu0 %v4346_v28  ;;  %v1550_v28 = vpop.f32.mrf.mxu0  ;;  %v1916_v62 = vshrl.u32 %v1908_v49, 16  ;;  %2764 = vmatpush.bf16.msrb.mxu2 %v4634_v41 }
  0xf9   :  { %2752 = vmatpush.bf16.msrb.mxu1 %v4474_v38  ;;  %v4542_v38 = vor.u32 %v5298_v20, %v4539_v21  ;;  %v1551_v42 = vadd.f32 %v1550_v28, %v1537_v35  ;;  %v5250_v20 = vld [vmem:[%s7978_s4 + $0x44] sm:$0xf]  ;;  %v4347_v28 = vld [vmem:[%s7978_s4 + $0x50] sm:$0xf0] }
  0xfa   :  { %v1924_v21 = vxor.u32 %v1916_v62, %v1908_v49 }
  0xfb   :  { %v1565_v2 = vadd.f32 %v1564_v36, %v1551_v42 }
  0xfc   :  { %2739 = vmatpush.bf16.msrb.mxu0 %v4330_v47  ;;  %v1904_v47 = vmul.u32 2221713035, %v1896_v26  ;;  %2765 = vmatpush.bf16.msrb.mxu2 %v4618_v7  ;;  %v1932_v40 = vshrl.u32 %v1924_v21, 8  ;;  %v5269_v21 = vld [vmem:[%s7978_s4 + $0xd4] sm:$0xf0] }
  0xfd   :  { %2753 = vmatpush.bf16.msrb.mxu1 %v4458_v53  ;;  %v4507_v53 = vld [vmem:[%s7978_s4 + $0x190] sm:$0xf0]  ;;  %v1579_v16 = vadd.f32 %v1578_v59, %v1565_v2 }
  0xfe   :  { %v1912_v55 = vshrl.u32 %v1904_v47, 16  ;;  %v4510_v3 = vor.u32 %v5290_v57, %v4507_v53  ;;  %vm7171_vm4 = vcmp.ge.s32.totalorder %v1932_v40, 3355443  ;;  %v5274_v53 = vld [vmem:[%s7978_s4 + $0x104] sm:$0xf] }
  0xff   :  { %v1593_v33 = vadd.f32 %v1592_v18, %v1579_v16  ;;  %v4443_v2 = vld [vmem:[%s7978_s4 + $0x110] sm:$0xf0]  ;;  %v4417_v18 = vld [vmem:[%s7978_s4 + $0xc8] sm:$0xf] }
 0x100   :  { %2740 = vmatpush.bf16.msrb.mxu0 %v4314_v5  ;;  %v1604_v60 = vpop.f32.mrf.mxu0  ;;  %v5254_v5 = vld [vmem:[%s7978_s4 + $0x64] sm:$0xf]  ;;  %v1920_v17 = vxor.u32 %v1912_v55, %v1904_v47  ;;  %2766 = vmatpush.bf16.msrb.mxu2 %v4602_v32  ;;  %v5308_v55 = vld [vmem:[%s7978_s4 + $0x20c] sm:$0xf0]  ;;  %v4446_v16 = vor.u32 %v5274_v53, %v4443_v2  ;;  %v5265_v32 = vld [vmem:[%s7978_s4 + $0xb4] sm:$0xf0] }
 0x101   :  { %2754 = vmatpush.bf16.msrb.mxu1 %v4442_v6  ;;  %v1618_v4 = vpop.f32.mrf.mxu1  ;;  %v4363_v6 = vld [vmem:[%s7978_s4 + $0x70] sm:$0xf0]  ;;  %v5246_v47 = vld [vmem:[%s7978_s4 + $0x24] sm:$0xf]  ;;  %v4513_v57 = vld [vmem:[%s7978_s4 + $0x188] sm:$0xf] }
 0x102   :  { %v4366_v19 = vor.u32 %v5254_v5, %v4363_v6  ;;  %v1928_v35 = vshrl.u32 %v1920_v17, 8  ;;  %v4686_v5 = vor.u32 %v5334_v63, %v4683_v1  ;;  %v4651_v40 = vld [vmem:[%s7978_s4 + $0x2b0] sm:$0xf0]  ;;  %v5293_v53 = vld [vmem:[%s7978_s4 + $0x194] sm:$0xf0] }
 0x103   :  { %4825 = vmatmul.msk.bf16.vlgmr.msrb.gmra.mxu0 %vm7061_vm2, %v7065_v12  ;;  %v5360_v63 = vld [vmem:[%s7978_s4 + $0x3ac] sm:$0xf0]  ;;  %v4514_v2 = vor.u32 %v5293_v53, %v4513_v57  ;;  %v5245_v57 = vld [vmem:[%s7978_s4 + $0x14] sm:$0xf0] }
 0x104   :  { %2789 = vmatpush.bf16.msra.mxu0 %v4430_v8  ;;  %v5286_v8 = vld [vmem:[%s7978_s4 + $0x164] sm:$0xf]  ;;  %vm7161_vm3 = vcmp.ge.s32.totalorder %v1928_v35, 3355443  ;;  %v5368_v35 = vld [vmem:[%s7978_s4 + $0x3ec] sm:$0xf0] }
 0x105   :  { %2803 = vmatpush.bf16.msra.mxu1 %v4558_v13  ;;  %v1591_v13 = vadd.f32 %v1590_v45, %v1577_v54  ;;  %v4494_v27 = vor.u32 %v5286_v8, %v4491_v14  ;;  %v5312_v45 = vld [vmem:[%s7978_s4 + $0x22c] sm:$0xf0]  ;;  %v4569_v54 = vld [vmem:[%s7978_s4 + $0x200] sm:$0xf]  ;;  %vm7205_vm5 = vmpackc.low %vm7171_vm4, %vm7161_vm3 }
 0x106   :  { %v4586_v49 = vor.u32 %v5312_v45, %v4585_v43  ;;  %v4570_v62 = vor.u32 %v5308_v55, %v4569_v54  ;;  %v4561_v8 = vld [vmem:[%s7978_s4 + $0x1e8] sm:$0xf]  ;;  %v5305_v14 = vld [vmem:[%s7978_s4 + $0x1f4] sm:$0xf0]  ;;  %v1845_v43 = vmul.u32 3266489917, %v1839_v24 }
 0x107   :  { %v1605_v26 = vadd.f32 %v1604_v60, %v1591_v13  ;;  %v4318_v13 = vor.u32 %v5242_v34, %v4315_v51  ;;  %v4529_v45 = vld [vmem:[%s7978_s4 + $0x1a8] sm:$0xf]  ;;  %v5261_v34 = vld [vmem:[%s7978_s4 + $0x94] sm:$0xf0] }
 0x108   :  { %2790 = vmatpush.bf16.msra.mxu0 %v4414_v29  ;;  %v5282_v29 = vld [vmem:[%s7978_s4 + $0x144] sm:$0xf]  ;;  %v1606_v36 = vpop.f32.mrf.mxu0  ;;  %2767 = vmatpush.bf16.msrb.mxu2 %v4586_v49  ;;  %v4793_v49 = vld [vmem:[%s7978_s4 + $0x3c0] sm:$0xf]  ;;  %v7305_v1 = vpop.f32.mrf.mxu2 }
 0x109   :  { %2804 = vmatpush.bf16.msra.mxu1 %v4542_v38  ;;  %v4350_v38 = vor.u32 %v5250_v20, %v4347_v28  ;;  %v4478_v39 = vor.u32 %v5282_v29, %v4475_v30  ;;  %v1619_v15 = vadd.f32 %v1618_v4, %v1605_v26  ;;  %v1607_v46 = vadd.f32 %v1606_v36, %v1593_v33  ;;  %v1620_v23 = vpop.f32.mrf.mxu1  ;;  %v5273_v4 = vld [vmem:[%s7978_s4 + $0xf4] sm:$0xf0]  ;;  %v4545_v26 = vld [vmem:[%s7978_s4 + $0x1c8] sm:$0xf]  ;;  %v4809_v33 = vld [vmem:[%s7978_s4 + $0x3e0] sm:$0xf]  ;;  %v7331_v24 = vpop.f32.mrf.mxu3 }
 0x10a   :  { %v4562_v20 = vor.u32 %v5305_v14, %v4561_v8  ;;  %v4401_v29 = vld [vmem:[%s7978_s4 + $0xa8] sm:$0xf]  ;;  %v4418_v30 = vor.u32 %v5269_v21, %v4417_v18  ;;  %v4619_v8 = vld [vmem:[%s7978_s4 + $0x270] sm:$0xf0]  ;;  %v5356_v21 = vld [vmem:[%s7978_s4 + $0x38c] sm:$0xf0] }
 0x10b   :  { %v1621_v42 = vadd.f32 %v1620_v23, %v1607_v46  ;;  %v1820_v59 = vmax.f32 %v1619_v15, 0.0  ;;  %v5297_v15 = vld [vmem:[%s7978_s4 + $0x1b4] sm:$0xf0]  ;;  %v7265_v23 = vxor.u32 %v1845_v43, %v6780_v56  ;;  %v4497_v14 = vld [vmem:[%s7978_s4 + $0x168] sm:$0xf] }
 0x10c   :  { %2791 = vmatpush.bf16.msra.mxu0 %v4398_v48  ;;  %v4331_v48 = vld [vmem:[%s7978_s4 + $0x30] sm:$0xf0]  ;;  %2768 = vmatpush.bf16.msrb.mxu2 %v4570_v62  ;;  %v4777_v62 = vld [vmem:[%s7978_s4 + $0x3a0] sm:$0xf] }
 0x10d   :  { %2805 = vmatpush.bf16.msra.mxu1 %v4526_v0  ;;  %v4334_v41 = vor.u32 %v5246_v47, %v4331_v48  ;;  %v1824_v60 = vmax.f32 %v1621_v42, 0.0  ;;  %v7268_v47 = vxor.u32 %v1845_v43, %v6782_v58  ;;  %v4402_v48 = vor.u32 %v5265_v32, %v4401_v29  ;;  %v4385_v0 = vld [vmem:[%s7978_s4 + $0x88] sm:$0xf] }
 0x10e   :  { %v4530_v42 = vor.u32 %v5297_v15, %v4529_v45  ;;  %v1857_v55 = vxor.u32 1013904242, %v7265_v23  ;;  %v4481_v32 = vld [vmem:[%s7978_s4 + $0x148] sm:$0xf] }
 0x10f   :  { %v7199_v6 = vpack.c.bf16 %v1824_v60, %v1820_v59  ;;  %v1861_v59 = vxor.u32 1013904242, %v7268_v47  ;;  %v4386_v60 = vor.u32 %v5261_v34, %v4385_v0  ;;  %v265_v34 = vperm.slane %v6854_v31, 2  ;;  %v4729_v31 = vld [vmem:[%s7978_s4 + $0x340] sm:$0xf] }
 0x110   :  { %2792 = vmatpush.bf16.msra.mxu0 %v4382_v61  ;;  %v4462_v61 = vor.u32 %v5278_v11, %v4459_v50  ;;  %2817 = vmatpush.bf16.msra.mxu2 %v4686_v5  ;;  %v5364_v11 = vld [vmem:[%s7978_s4 + $0x3cc] sm:$0xf0]  ;;  %v5322_v50 = vld [vmem:[%s7978_s4 + $0x284] sm:$0xf] }
 0x111   :  { %2806 = vmatpush.bf16.msra.mxu1 %v4510_v3  ;;  %v4433_v3 = vld [vmem:[%s7978_s4 + $0xe8] sm:$0xf]  ;;  %v4794_v51 = vor.u32 %v5364_v11, %v4793_v49  ;;  %v5318_v5 = vld [vmem:[%s7978_s4 + $0x264] sm:$0xf]  ;;  %v1869_v18 = vshrl.u32 %v1861_v59, 16 }
 0x112   :  { %v4434_v17 = vor.u32 %v5273_v4, %v4433_v3  ;;  %4828 = vmatmul.msk.bf16.vlgmr.msrb.gmra.mxu1 %vm7205_vm5, %v7199_v6  ;;  %v5257_v3 = vld [vmem:[%s7978_s4 + $0x74] sm:$0xf0]  ;;  %v4778_v4 = vor.u32 %v5360_v63, %v4777_v62  ;;  %v5310_v49 = vld [vmem:[%s7978_s4 + $0x224] sm:$0xf]  ;;  %v4587_v11 = vld [vmem:[%s7978_s4 + $0x230] sm:$0xf0] }
 0x113   :  { %v1877_v45 = vxor.u32 %v1869_v18, %v1861_v59  ;;  %v4590_v0 = vor.u32 %v5310_v49, %v4587_v11  ;;  %v5348_v62 = vld [vmem:[%s7978_s4 + $0x34c] sm:$0xf0]  ;;  %v5306_v63 = vld [vmem:[%s7978_s4 + $0x204] sm:$0xf]  ;;  %v4563_v18 = vld [vmem:[%s7978_s4 + $0x1f8] sm:$0xf0] }
 0x114   :  { %2793 = vmatpush.bf16.msra.mxu0 %v4366_v19  ;;  %v5330_v19 = vld [vmem:[%s7978_s4 + $0x2c4] sm:$0xf]  ;;  %v4811_v11 = vld [vmem:[%s7978_s4 + $0x3f0] sm:$0xf0] }
 0x115   :  { %2807 = vmatpush.bf16.msra.mxu1 %v4494_v27  ;;  %v5301_v27 = vld [vmem:[%s7978_s4 + $0x1d4] sm:$0xf0]  ;;  %v4670_v28 = vor.u32 %v5330_v19, %v4667_v22  ;;  %v5314_v22 = vld [vmem:[%s7978_s4 + $0x244] sm:$0xf]  ;;  %v1885_v59 = vmul.u32 2146121005, %v1877_v45 }
 0x116   :  { %v4546_v36 = vor.u32 %v5301_v27, %v4545_v26  ;;  %v4353_v27 = vld [vmem:[%s7978_s4 + $0x48] sm:$0xf]  ;;  %v5340_v45 = vld [vmem:[%s7978_s4 + $0x30c] sm:$0xf0]  ;;  %v5366_v49 = vld [vmem:[%s7978_s4 + $0x3e4] sm:$0xf] }
 0x117   :  { %2818 = vmatpush.bf16.msra.mxu2 %v4670_v28  ;;  %v5253_v28 = vld [vmem:[%s7978_s4 + $0x54] sm:$0xf0] }
 0x118   :  { %2794 = vmatpush.bf16.msra.mxu0 %v4350_v38  ;;  %v4810_v38 = vor.u32 %v5368_v35, %v4809_v33  ;;  %v5285_v33 = vld [vmem:[%s7978_s4 + $0x154] sm:$0xf0] }
 0x119   :  { %2808 = vmatpush.bf16.msra.mxu1 %v4478_v39  ;;  %v5326_v39 = vld [vmem:[%s7978_s4 + $0x2a4] sm:$0xf]  ;;  %v4482_v15 = vor.u32 %v5285_v33, %v4481_v32 }
 0x11a   :  { %v4654_v46 = vor.u32 %v5326_v39, %v4651_v40  ;;  %2775 = vmatpush.bf16.msrb.mxu3 %v4810_v38  ;;  %v4337_v38 = vld [vmem:[%s7978_s4 + $0x28] sm:$0xf]  ;;  %v4745_v39 = vld [vmem:[%s7978_s4 + $0x360] sm:$0xf]  ;;  %v5352_v40 = vld [vmem:[%s7978_s4 + $0x36c] sm:$0xf0] }
 0x11c   :  { %2795 = vmatpush.bf16.msra.mxu0 %v4334_v41  ;;  %2819 = vmatpush.bf16.msra.mxu2 %v4654_v46  ;;  %v4635_v41 = vld [vmem:[%s7978_s4 + $0x290] sm:$0xf0]  ;;  %v5249_v46 = vld [vmem:[%s7978_s4 + $0x34] sm:$0xf0] }
 0x11d   :  { %2809 = vmatpush.bf16.msra.mxu1 %v4462_v61  ;;  %v4638_v54 = vor.u32 %v5322_v50, %v4635_v41  ;;  %v4369_v61 = vld [vmem:[%s7978_s4 + $0x68] sm:$0xf]  ;;  %v4338_v53 = vor.u32 %v5249_v46, %v4337_v38  ;;  %v4547_v38 = vld [vmem:[%s7978_s4 + $0x1d8] sm:$0xf0] }
 0x11e   :  { %2776 = vmatpush.bf16.msrb.mxu3 %v4794_v51  ;;  %v4370_v19 = vor.u32 %v5257_v3, %v4369_v61  ;;  %v4465_v50 = vld [vmem:[%s7978_s4 + $0x128] sm:$0xf]  ;;  %v1634_v51 = vpop.f32.mrf.mxu2  ;;  %v5277_v3 = vld [vmem:[%s7978_s4 + $0x114] sm:$0xf0] }
 0x11f   :  { %v4321_v41 = vld [vmem:[%s7978_s4 + $0x8] sm:$0xf] }
 0x120   :  { %2796 = vmatpush.bf16.msra.mxu0 %v4318_v13  ;;  %2820 = vmatpush.bf16.msra.mxu2 %v4638_v54  ;;  %v5289_v13 = vld [vmem:[%s7978_s4 + $0x174] sm:$0xf0]  ;;  %v4449_v54 = vld [vmem:[%s7978_s4 + $0x108] sm:$0xf] }
 0x121   :  { %2810 = vmatpush.bf16.msra.mxu1 %v4446_v16  ;;  %v4622_v16 = vor.u32 %v5318_v5, %v4619_v8  ;;  %v4498_v26 = vor.u32 %v5289_v13, %v4497_v14  ;;  %v4435_v5 = vld [vmem:[%s7978_s4 + $0xf8] sm:$0xf0]  ;;  %v4730_v8 = vor.u32 %v5348_v62, %v4729_v31  ;;  %v1633_v13 = vadd.f32 %v7305_v1, %v265_v34  ;;  %v4713_v1 = vld [vmem:[%s7978_s4 + $0x320] sm:$0xf]  ;;  %v4795_v31 = vld [vmem:[%s7978_s4 + $0x3d0] sm:$0xf0] }
 0x122   :  { %2777 = vmatpush.bf16.msrb.mxu3 %v4778_v4  ;;  %v5271_v4 = vld [vmem:[%s7978_s4 + $0xec] sm:$0xf] }
 0x123   :  { %4837 = vmatmul.msk.bf16.vlgmr.msra.gmra.mxu0 %vm7061_vm2, %v7065_v12  ;;  %v1647_v33 = vadd.f32 %v7331_v24, %v1633_v13  ;;  %v4697_v24 = vld [vmem:[%s7978_s4 + $0x300] sm:$0xf]  ;;  %v4515_v13 = vld [vmem:[%s7978_s4 + $0x198] sm:$0xf0] }
 0x124   :  { %2845 = vmatpush.bf16.msrb.mxu0 %v4434_v17  ;;  %v1865_v17 = vshrl.u32 %v1857_v55, 16  ;;  %2821 = vmatpush.bf16.msra.mxu2 %v4622_v16  ;;  %v1648_v16 = vpop.f32.mrf.mxu3 }
 0x125   :  { %2859 = vmatpush.bf16.msrb.mxu1 %v4562_v20  ;;  %v4761_v20 = vld [vmem:[%s7978_s4 + $0x380] sm:$0xf] }
 0x126   :  { %v4762_v29 = vor.u32 %v5356_v21, %v4761_v20  ;;  %4840 = vmatmul.msk.bf16.vlgmr.msra.gmra.mxu1 %vm7205_vm5, %v7199_v6  ;;  %v1873_v43 = vxor.u32 %v1865_v17, %v1857_v55  ;;  %v5303_v17 = vld [vmem:[%s7978_s4 + $0x1ec] sm:$0xf]  ;;  %v1893_v21 = vshrl.u32 %v1885_v59, 15 }
 0x128   :  { %2846 = vmatpush.bf16.msrb.mxu0 %v4418_v30  ;;  %v4603_v30 = vld [vmem:[%s7978_s4 + $0x250] sm:$0xf0]  ;;  %2778 = vmatpush.bf16.msrb.mxu3 %v4762_v29  ;;  %v1881_v55 = vmul.u32 2146121005, %v1873_v43  ;;  %v5267_v29 = vld [vmem:[%s7978_s4 + $0xcc] sm:$0xf]  ;;  %v7434_v43 = vxor.u32 %v1893_v21, %v1885_v59 }
 0x129   :  { %2860 = vmatpush.bf16.msrb.mxu1 %v4546_v36  ;;  %v4606_v35 = vor.u32 %v5314_v22, %v4603_v30  ;;  %v4354_v36 = vor.u32 %v5253_v28, %v4353_v27  ;;  %v4450_v22 = vor.u32 %v5277_v3, %v4449_v54  ;;  %v5344_v27 = vld [vmem:[%s7978_s4 + $0x32c] sm:$0xf0]  ;;  %v4566_v28 = vor.u32 %v5303_v17, %v4563_v18  ;;  %v4419_v30 = vld [vmem:[%s7978_s4 + $0xd8] sm:$0xf0]  ;;  %v5362_v54 = vld [vmem:[%s7978_s4 + $0x3c4] sm:$0xf] }
 0x12a   :  { %v1889_v20 = vshrl.u32 %v1881_v55, 15  ;;  %v4714_v32 = vor.u32 %v5344_v27, %v4713_v1  ;;  %v4422_v46 = vor.u32 %v5267_v29, %v4419_v30  ;;  %v5259_v3 = vld [vmem:[%s7978_s4 + $0x8c] sm:$0xf] }
 0x12b   :  { %2822 = vmatpush.bf16.msra.mxu2 %v4606_v35  ;;  %v1674_v35 = vpop.f32.mrf.mxu1  ;;  %v5255_v17 = vld [vmem:[%s7978_s4 + $0x6c] sm:$0xf] }
 0x12c   :  { %2847 = vmatpush.bf16.msrb.mxu0 %v4402_v48  ;;  %v4746_v48 = vor.u32 %v5352_v40, %v4745_v39  ;;  %v1635_v39 = vadd.f32 %v1634_v51, %v265_v34  ;;  %v7432_v40 = vxor.u32 %v1889_v20, %v1881_v55  ;;  %v5295_v34 = vld [vmem:[%s7978_s4 + $0x1ac] sm:$0xf]  ;;  %v4814_v51 = vor.u32 %v5366_v49, %v4811_v11  ;;  %v4483_v11 = vld [vmem:[%s7978_s4 + $0x158] sm:$0xf0] }
 0x12d   :  { %2861 = vmatpush.bf16.msrb.mxu1 %v4530_v42  ;;  %v5281_v42 = vld [vmem:[%s7978_s4 + $0x134] sm:$0xf0]  ;;  %v5287_v27 = vld [vmem:[%s7978_s4 + $0x16c] sm:$0xf] }
 0x12e   :  { %2779 = vmatpush.bf16.msrb.mxu3 %v4746_v48  ;;  %v4466_v61 = vor.u32 %v5281_v42, %v4465_v50  ;;  %v4698_v48 = vor.u32 %v5340_v45, %v4697_v24  ;;  %v5263_v42 = vld [vmem:[%s7978_s4 + $0xac] sm:$0xf]  ;;  %v1649_v55 = vadd.f32 %v1648_v16, %v1635_v39  ;;  %v1905_v59 = vmul.u32 2221713035, %v7432_v40  ;;  %v5354_v45 = vld [vmem:[%s7978_s4 + $0x384] sm:$0xf] }
 0x12f   :  { %2823 = vmatpush.bf16.msra.mxu2 %v4590_v0  ;;  %v4403_v0 = vld [vmem:[%s7978_s4 + $0xb8] sm:$0xf0]  ;;  %v5251_v24 = vld [vmem:[%s7978_s4 + $0x4c] sm:$0xf] }
 0x130   :  { %2848 = vmatpush.bf16.msrb.mxu0 %v4386_v60  ;;  %v1660_v60 = vpop.f32.mrf.mxu0  ;;  %v4406_v62 = vor.u32 %v5263_v42, %v4403_v0  ;;  %v1913_v18 = vshrl.u32 %v1905_v59, 16  ;;  %v5283_v49 = vld [vmem:[%s7978_s4 + $0x14c] sm:$0xf] }
 0x131   :  { %2862 = vmatpush.bf16.msrb.mxu1 %v4514_v2  ;;  %v4571_v2 = vld [vmem:[%s7978_s4 + $0x210] sm:$0xf0] }
 0x132   :  { %v4574_v14 = vor.u32 %v5306_v63, %v4571_v2  ;;  %2780 = vmatpush.bf16.msrb.mxu3 %v4730_v8  ;;  %v4798_v63 = vor.u32 %v5362_v54, %v4795_v31 }
 0x133   :  { %v1676_v20 = vpop.f32.mrf.mxu1 }
 0x134   :  { %2849 = vmatpush.bf16.msrb.mxu0 %v4370_v19  ;;  %v4322_v19 = vor.u32 %v5245_v57, %v4321_v41  ;;  %2824 = vmatpush.bf16.msra.mxu2 %v4574_v14  ;;  %v1661_v41 = vadd.f32 %v1660_v60, %v1647_v33  ;;  %v1909_v60 = vmul.u32 2221713035, %v7434_v43  ;;  %v5291_v14 = vld [vmem:[%s7978_s4 + $0x18c] sm:$0xf] }
 0x135   :  { %2863 = vmatpush.bf16.msrb.mxu1 %v4498_v26  ;;  %v4438_v26 = vor.u32 %v5271_v4, %v4435_v5  ;;  %v4387_v4 = vld [vmem:[%s7978_s4 + $0x98] sm:$0xf0]  ;;  %v1840_v5 = vadd.s32 384, %v6751_v44  ;;  %v4518_v1 = vor.u32 %v5291_v14, %v4515_v13 }
 0x136   :  { %2781 = vmatpush.bf16.msrb.mxu3 %v4714_v32  ;;  %v1675_v8 = vadd.f32 %v1674_v35, %v1661_v41  ;;  %v4390_v21 = vor.u32 %v5259_v3, %v4387_v4  ;;  %v4371_v44 = vld [vmem:[%s7978_s4 + $0x78] sm:$0xf0]  ;;  %v5247_v41 = vld [vmem:[%s7978_s4 + $0x2c] sm:$0xf] }
 0x137   :  { %v1846_v30 = vmul.u32 3266489917, %v1840_v5  ;;  %v4374_v40 = vor.u32 %v5255_v17, %v4371_v44  ;;  %v4689_v5 = vld [vmem:[%s7978_s4 + $0x2e8] sm:$0xf]  ;;  %v5243_v17 = vld [vmem:[%s7978_s4 + $0xc] sm:$0xf] }
 0x138   :  { %2850 = vmatpush.bf16.msrb.mxu0 %v4354_v36  ;;  %v5299_v36 = vld [vmem:[%s7978_s4 + $0x1cc] sm:$0xf]  ;;  %v1662_v57 = vpop.f32.mrf.mxu0 }
 0x139   :  { %2864 = vmatpush.bf16.msrb.mxu1 %v4482_v15  ;;  %v1688_v15 = vpop.f32.mrf.mxu2  ;;  %v4550_v50 = vor.u32 %v5299_v36, %v4547_v38  ;;  %v1663_v16 = vadd.f32 %v1662_v57, %v1649_v55  ;;  %v1921_v38 = vxor.u32 %v1913_v18, %v1905_v59  ;;  %v7524_v42 = vxor.u32 %v1846_v30, %v6780_v56  ;;  %v4339_v57 = vld [vmem:[%s7978_s4 + $0x38] sm:$0xf0]  ;;  %v5350_v59 = vld [vmem:[%s7978_s4 + $0x364] sm:$0xf] }
 0x13a   :  { %2782 = vmatpush.bf16.msrb.mxu3 %v4698_v48  ;;  %v1689_v32 = vadd.f32 %v1688_v15, %v1675_v8  ;;  %v4763_v15 = vld [vmem:[%s7978_s4 + $0x390] sm:$0xf0]  ;;  %v4355_v48 = vld [vmem:[%s7978_s4 + $0x58] sm:$0xf0]  ;;  %v7527_v0 = vxor.u32 %v1846_v30, %v6782_v58  ;;  %v4486_v56 = vor.u32 %v5283_v49, %v4483_v11  ;;  %v5279_v58 = vld [vmem:[%s7978_s4 + $0x12c] sm:$0xf] }
 0x13b   :  { %v1677_v36 = vadd.f32 %v1676_v20, %v1663_v16  ;;  %v4358_v55 = vor.u32 %v5251_v24, %v4355_v48  ;;  %v5337_v8 = vld [vmem:[%s7978_s4 + $0x2f4] sm:$0xf0]  ;;  %v4323_v18 = vld [vmem:[%s7978_s4 + $0x18] sm:$0xf0]  ;;  %v5342_v24 = vld [vmem:[%s7978_s4 + $0x324] sm:$0xf] }
 0x13c   :  { %2851 = vmatpush.bf16.msrb.mxu0 %v4338_v53  ;;  %v4531_v53 = vld [vmem:[%s7978_s4 + $0x1b8] sm:$0xf0]  ;;  %v1862_v3 = vxor.u32 1013904242, %v7527_v0  ;;  %v4657_v11 = vld [vmem:[%s7978_s4 + $0x2a8] sm:$0xf] }
 0x13d   :  { %2865 = vmatpush.bf16.msrb.mxu1 %v4466_v61  ;;  %v1702_v61 = vpop.f32.mrf.mxu3  ;;  %v4534_v2 = vor.u32 %v5295_v34, %v4531_v53  ;;  %v1929_v53 = vshrl.u32 %v1921_v38, 8  ;;  %v5333_v38 = vld [vmem:[%s7978_s4 + $0x2d4] sm:$0xf0] }
 0x13e   :  { %2831 = vmatpush.bf16.msra.mxu3 %v4814_v51  ;;  %v1703_v34 = vadd.f32 %v1702_v61, %v1689_v32  ;;  %v1870_v30 = vshrl.u32 %v1862_v3, 16  ;;  %v4803_v32 = vld [vmem:[%s7978_s4 + $0x3d8] sm:$0xf0] }
 0x13f   :  { %vm7555_vm6 = vcmp.ge.s32.totalorder %v1929_v53, 3355443 }
 0x140   :  { %2852 = vmatpush.bf16.msrb.mxu0 %v4322_v19  ;;  %v1917_v19 = vshrl.u32 %v1909_v60, 16  ;;  %v1716_v35 = vpop.f32.mrf.mxu0  ;;  %v1878_v48 = vxor.u32 %v1870_v30, %v1862_v3  ;;  %v5321_v3 = vld [vmem:[%s7978_s4 + $0x274] sm:$0xf0] }
 0x141   :  { %2866 = vmatpush.bf16.msrb.mxu1 %v4450_v22  ;;  %v5358_v22 = vld [vmem:[%s7978_s4 + $0x3a4] sm:$0xf]  ;;  %v1690_v33 = vpop.f32.mrf.mxu2  ;;  %v1717_v31 = vadd.f32 %v1716_v35, %v1703_v34 }
 0x142   :  { %2832 = vmatpush.bf16.msra.mxu3 %v4798_v63  ;;  %v1925_v39 = vxor.u32 %v1917_v19, %v1909_v60  ;;  %v4747_v60 = vld [vmem:[%s7978_s4 + $0x370] sm:$0xf0]  ;;  %v5275_v19 = vld [vmem:[%s7978_s4 + $0x10c] sm:$0xf] }
 0x143   :  { %4849 = vmatmul.msk.bf16.vlgmr.msrb.gmra.mxu0 %vm7061_vm2, %v7065_v12  ;;  %v4750_v63 = vor.u32 %v5350_v59, %v4747_v60  ;;  %v1821_v20 = vmax.f32 %v1717_v31, 0.0  ;;  %v1886_v31 = vmul.u32 2146121005, %v1878_v48  ;;  %v4641_v59 = vld [vmem:[%s7978_s4 + $0x288] sm:$0xf] }
 0x144   :  { %2901 = vmatpush.bf16.msra.mxu0 %v4438_v26  ;;  %4852 = vmatmul.msk.bf16.vlgmr.msrb.gmra.mxu1 %vm7205_vm5, %v7199_v6  ;;  %v4779_v26 = vld [vmem:[%s7978_s4 + $0x3b0] sm:$0xf0]  ;;  %v1933_v54 = vshrl.u32 %v1925_v39, 8  ;;  %v1730_v39 = vpop.f32.mrf.mxu1  ;;  %v5325_v60 = vld [vmem:[%s7978_s4 + $0x294] sm:$0xf0] }
 0x145   :  { %2915 = vmatpush.bf16.msra.mxu1 %v4566_v28  ;;  %v4499_v28 = vld [vmem:[%s7978_s4 + $0x178] sm:$0xf0]  ;;  %v4782_v29 = vor.u32 %v5358_v22, %v4779_v26  ;;  %v1704_v51 = vpop.f32.mrf.mxu3  ;;  %v5346_v22 = vld [vmem:[%s7978_s4 + $0x344] sm:$0xf]  ;;  %v4731_v26 = vld [vmem:[%s7978_s4 + $0x350] sm:$0xf0] }
 0x146   :  { %v4502_v43 = vor.u32 %v5287_v27, %v4499_v28  ;;  %vm7559_vm7 = vcmp.ge.s32.totalorder %v1933_v54, 3355443  ;;  %v4451_v27 = vld [vmem:[%s7978_s4 + $0x118] sm:$0xf0]  ;;  %v4734_v28 = vor.u32 %v5346_v22, %v4731_v26 }
 0x147   :  { %2833 = vmatpush.bf16.msra.mxu3 %v4782_v29  ;;  %vm7585_vm8 = vmpackc.low %vm7559_vm7, %vm7555_vm6 }
 0x148   :  { %2902 = vmatpush.bf16.msra.mxu0 %v4422_v46  ;;  %v1691_v46 = vadd.f32 %v1690_v33, %v1677_v36  ;;  %v1718_v4 = vpop.f32.mrf.mxu0  ;;  %v4690_v33 = vor.u32 %v5337_v8, %v4689_v5  ;;  %v4673_v36 = vld [vmem:[%s7978_s4 + $0x2c8] sm:$0xf] }
 0x149   :  { %2916 = vmatpush.bf16.msra.mxu1 %v4550_v50  ;;  %v4766_v50 = vor.u32 %v5354_v45, %v4763_v15  ;;  %v4715_v45 = vld [vmem:[%s7978_s4 + $0x330] sm:$0xf0]  ;;  %v4674_v49 = vor.u32 %v5333_v38, %v4673_v36  ;;  %v1744_v34 = vpop.f32.mrf.mxu2 }
 0x14a   :  { %v1705_v61 = vadd.f32 %v1704_v51, %v1691_v46  ;;  %v4718_v15 = vor.u32 %v5342_v24, %v4715_v45  ;;  %v5338_v51 = vld [vmem:[%s7978_s4 + $0x304] sm:$0xf]  ;;  %v5309_v24 = vld [vmem:[%s7978_s4 + $0x214] sm:$0xf0]  ;;  %v5335_v45 = vld [vmem:[%s7978_s4 + $0x2ec] sm:$0xf] }
 0x14b   :  { %2834 = vmatpush.bf16.msra.mxu3 %v4766_v50  ;;  %v5329_v50 = vld [vmem:[%s7978_s4 + $0x2b4] sm:$0xf0] }
 0x14c   :  { %2903 = vmatpush.bf16.msra.mxu0 %v4406_v62  ;;  %v4467_v62 = vld [vmem:[%s7978_s4 + $0x138] sm:$0xf0]  ;;  %v1719_v14 = vadd.f32 %v1718_v4, %v1705_v61 }
 0x14d   :  { %2917 = vmatpush.bf16.msra.mxu1 %v4534_v2  ;;  %v1858_v2 = vxor.u32 1013904242, %v7524_v42  ;;  %v4470_v44 = vor.u32 %v5279_v58, %v4467_v62  ;;  %v1894_v62 = vshrl.u32 %v1886_v31, 15 }
 0x14f   :  { %2835 = vmatpush.bf16.msra.mxu3 %v4750_v63  ;;  %v1866_v29 = vshrl.u32 %v1858_v2, 16  ;;  %v1732_v63 = vpop.f32.mrf.mxu1  ;;  %v1902_v5 = vxor.u32 %v1894_v62, %v1886_v31  ;;  %v4817_v62 = vld [vmem:[%s7978_s4 + $0x3e8] sm:$0xf] }
 0x150   :  { %2904 = vmatpush.bf16.msra.mxu0 %v4390_v21  ;;  %v4342_v21 = vor.u32 %v5247_v41, %v4339_v57  ;;  %v4699_v41 = vld [vmem:[%s7978_s4 + $0x310] sm:$0xf0]  ;;  %v1758_v57 = vpop.f32.mrf.mxu3 }
 0x151   :  { %2918 = vmatpush.bf16.msra.mxu1 %v4518_v1  ;;  %v1825_v1 = vmax.f32 %v1719_v14, 0.0  ;;  %v1874_v46 = vxor.u32 %v1866_v29, %v1858_v2  ;;  %v4702_v53 = vor.u32 %v5338_v51, %v4699_v41  ;;  %v4642_v2 = vor.u32 %v5325_v60, %v4641_v59  ;;  %v1746_v8 = vpop.f32.mrf.mxu2 }
 0x153   :  { %v7589_v35 = vpack.c.bf16 %v1825_v1, %v1821_v20  ;;  %2836 = vmatpush.bf16.msra.mxu3 %v4734_v28  ;;  %v1882_v54 = vmul.u32 2146121005, %v1874_v46  ;;  %v1910_v20 = vmul.u32 2221713035, %v1902_v5  ;;  %v4593_v1 = vld [vmem:[%s7978_s4 + $0x228] sm:$0xf] }
 0x154   :  { %2905 = vmatpush.bf16.msra.mxu0 %v4374_v40  ;;  %v4326_v40 = vor.u32 %v5243_v17, %v4323_v18  ;;  %v4609_v17 = vld [vmem:[%s7978_s4 + $0x248] sm:$0xf]  ;;  %v5317_v18 = vld [vmem:[%s7978_s4 + $0x254] sm:$0xf0] }
 0x155   :  { %2919 = vmatpush.bf16.msra.mxu1 %v4502_v43  ;;  %v4454_v43 = vor.u32 %v5275_v19, %v4451_v27  ;;  %4831 = vmatmul.msk.bf16.vlgmr.msrb.gmra.mxu2 %vm7585_vm8, %v7589_v35  ;;  %v1890_v61 = vshrl.u32 %v1882_v54, 15  ;;  %v5313_v27 = vld [vmem:[%s7978_s4 + $0x234] sm:$0xf0]  ;;  %v1918_v30 = vshrl.u32 %v1910_v20, 16 }
 0x156   :  { %2873 = vmatpush.bf16.msrb.mxu2 %v4690_v33  ;;  %v4594_v36 = vor.u32 %v5313_v27, %v4593_v1  ;;  %v5315_v27 = vld [vmem:[%s7978_s4 + $0x24c] sm:$0xf] }
 0x157   :  { %2837 = vmatpush.bf16.msra.mxu3 %v4718_v15  ;;  %v1898_v4 = vxor.u32 %v1890_v61, %v1882_v54  ;;  %v4691_v15 = vld [vmem:[%s7978_s4 + $0x2f8] sm:$0xf0] }
 0x158   :  { %2906 = vmatpush.bf16.msra.mxu0 %v4358_v55  ;;  %v4658_v55 = vor.u32 %v5329_v50, %v4657_v11  ;;  %v1760_v13 = vpop.f32.mrf.mxu3  ;;  %v1926_v11 = vxor.u32 %v1918_v30, %v1910_v20  ;;  %v4694_v51 = vor.u32 %v5335_v45, %v4691_v15  ;;  %v5319_v20 = vld [vmem:[%s7978_s4 + $0x26c] sm:$0xf]  ;;  %v5357_v30 = vld [vmem:[%s7978_s4 + $0x394] sm:$0xf0] }
 0x159   :  { %2920 = vmatpush.bf16.msra.mxu1 %v4486_v56  ;;  %v5403_v56 = vld [vmem:[%s7977_s3] sm:$0xf]  ;;  %v1906_v19 = vmul.u32 2221713035, %v1898_v4  ;;  %v5307_v15 = vld [vmem:[%s7978_s4 + $0x20c] sm:$0xf] }
 0x15a   :  { %2874 = vmatpush.bf16.msrb.mxu2 %v4674_v49  ;;  %v266_v58 = vperm.slane %v5403_v56, 3 }
 0x15b   :  { %2838 = vmatpush.bf16.msra.mxu3 %v4702_v53  ;;  %v1914_v29 = vshrl.u32 %v1906_v19, 16  ;;  %v4675_v53 = vld [vmem:[%s7978_s4 + $0x2d8] sm:$0xf0] }
 0x15c   :  { %2907 = vmatpush.bf16.msra.mxu0 %v4342_v21  ;;  %v1731_v25 = vadd.f32 %v1730_v39, %v266_v58  ;;  %v1733_v14 = vadd.f32 %v1732_v63, %v266_v58  ;;  %v5327_v63 = vld [vmem:[%s7978_s4 + $0x2ac] sm:$0xf] }
 0x15d   :  { %2921 = vmatpush.bf16.msra.mxu1 %v4470_v44  ;;  %v4610_v44 = vor.u32 %v5317_v18, %v4609_v17  ;;  %v1922_v49 = vxor.u32 %v1914_v29, %v1906_v19  ;;  %v5365_v17 = vld [vmem:[%s7978_s4 + $0x3d4] sm:$0xf0]  ;;  %v4769_v29 = vld [vmem:[%s7978_s4 + $0x388] sm:$0xf] }
 0x15e   :  { %2875 = vmatpush.bf16.msrb.mxu2 %v4658_v55  ;;  %v1745_v7 = vadd.f32 %v1744_v34, %v1731_v25  ;;  %v1747_v26 = vadd.f32 %v1746_v8, %v1733_v14  ;;  %v1934_v55 = vshrl.u32 %v1926_v11, 8  ;;  %v4643_v14 = vld [vmem:[%s7978_s4 + $0x298] sm:$0xf0]  ;;  %v5374_v8 = vld [vmem:[%s7979_s6 + $0x20] sm:$0xff] }
 0x15f   :  { %v1930_v31 = vshrl.u32 %v1922_v49, 8  ;;  %v5349_v49 = vld [vmem:[%s7978_s4 + $0x354] sm:$0xf0] }
 0x160   :  { %2908 = vmatpush.bf16.msra.mxu0 %v4326_v40  ;;  %v1772_v16 = vpop.f32.mrf.mxu0  ;;  %v1759_v22 = vadd.f32 %v1758_v57, %v1745_v7  ;;  %v1761_v38 = vadd.f32 %v1760_v13, %v1747_v26  ;;  %v5331_v57 = vld [vmem:[%s7978_s4 + $0x2cc] sm:$0xf]  ;;  %vm1942_vm10 = vcmp.ge.s32.totalorder %v1934_v55, 3355443 }
 0x161   :  { %2922 = vmatpush.bf16.msra.mxu1 %v4454_v43  ;;  %v1786_v21 = vpop.f32.mrf.mxu1  ;;  %v4577_v43 = vld [vmem:[%s7978_s4 + $0x208] sm:$0xf]  ;;  %v4678_v60 = vor.u32 %v5331_v57, %v4675_v53  ;;  %vm1938_vm9 = vcmp.ge.s32.totalorder %v1930_v31, 3355443  ;;  %v5323_v7 = vld [vmem:[%s7978_s4 + $0x28c] sm:$0xf] }
 0x162   :  { %2876 = vmatpush.bf16.msrb.mxu2 %v4642_v2  ;;  %v1773_v28 = vadd.f32 %v1772_v16, %v1759_v22  ;;  %v4578_v50 = vor.u32 %v5309_v24, %v4577_v43  ;;  %v4659_v2 = vld [vmem:[%s7978_s4 + $0x2b8] sm:$0xf0]  ;;  %vm7687_vm11 = vmpackc.low %vm1942_vm10, %vm1938_vm9  ;;  %v4801_v16 = vld [vmem:[%s7978_s4 + $0x3c8] sm:$0xf]  ;;  %v4646_v18 = vor.u32 %v5323_v7, %v4643_v14 }
 0x163   :  { %4861 = vmatmul.msk.bf16.vlgmr.msra.gmra.mxu0 %vm7061_vm2, %v7065_v12  ;;  %v4625_v12 = vld [vmem:[%s7978_s4 + $0x268] sm:$0xf]  ;;  %v4662_v5 = vor.u32 %v5327_v63, %v4659_v2  ;;  %v4802_v19 = vor.u32 %v5365_v17, %v4801_v16  ;;  %v5361_v22 = vld [vmem:[%s7978_s4 + $0x3b4] sm:$0xf0]  ;;  %v4819_v31 = vld [vmem:[%s7978_s4 + $0x3f8] sm:$0xf0] }
 0x164   :  { %4864 = vmatmul.msk.bf16.vlgmr.msra.gmra.mxu1 %vm7205_vm5, %v7199_v6  ;;  %v4626_v6 = vor.u32 %v5321_v3, %v4625_v12  ;;  %v1787_v46 = vadd.f32 %v1786_v21, %v1773_v28  ;;  %v5369_v12 = vld [vmem:[%s7978_s4 + $0x3f4] sm:$0xf0]  ;;  %v4627_v21 = vld [vmem:[%s7978_s4 + $0x278] sm:$0xf0]  ;;  %v4705_v57 = vld [vmem:[%s7978_s4 + $0x308] sm:$0xf] }
 0x165   :  { %4843 = vmatmul.msk.bf16.vlgmr.msra.gmra.mxu2 %vm7585_vm8, %v7589_v35  ;;  %v4630_v26 = vor.u32 %v5319_v20, %v4627_v21  ;;  %v4611_v28 = vld [vmem:[%s7978_s4 + $0x258] sm:$0xf0]  ;;  %v5353_v43 = vld [vmem:[%s7978_s4 + $0x374] sm:$0xf0]  ;;  %v5343_v7 = vld [vmem:[%s7978_s4 + $0x32c] sm:$0xf] }
 0x166   :  { %2877 = vmatpush.bf16.msrb.mxu2 %v4626_v6  ;;  %v4818_v6 = vor.u32 %v5369_v12, %v4817_v62  ;;  %v5341_v53 = vld [vmem:[%s7978_s4 + $0x314] sm:$0xf0]  ;;  %v5355_v62 = vld [vmem:[%s7978_s4 + $0x38c] sm:$0xf]  ;;  %v4771_v63 = vld [vmem:[%s7978_s4 + $0x398] sm:$0xf0] }
 0x167   :  { %v4706_v55 = vor.u32 %v5341_v53, %v4705_v57  ;;  %v4774_v2 = vor.u32 %v5355_v62, %v4771_v63  ;;  %v4755_v12 = vld [vmem:[%s7978_s4 + $0x378] sm:$0xf0]  ;;  %v5339_v17 = vld [vmem:[%s7978_s4 + $0x30c] sm:$0xf]  ;;  %v5376_v21 = vld [vmem:[%s7979_s6 + $0x30] sm:$0xff] }
 0x168   :  { %v1800_v33 = vpop.f32.mrf.mxu2  ;;  %v1774_v40 = vpop.f32.mrf.mxu0  ;;  %v4723_v14 = vld [vmem:[%s7978_s4 + $0x338] sm:$0xf0]  ;;  %v5390_v62 = vld [vmem:[%s7979_s6 + $0xa0] sm:$0xff] }
 0x169   :  { %v1814_v39 = vpop.f32.mrf.mxu3  ;;  %v1775_v48 = vadd.f32 %v1774_v40, %v1761_v38  ;;  %v1801_v34 = vadd.f32 %v1800_v33, %v1787_v46  ;;  %v1788_v41 = vpop.f32.mrf.mxu1  ;;  %v4614_v33 = vor.u32 %v5315_v27, %v4611_v28  ;;  %v5311_v38 = vld [vmem:[%s7978_s4 + $0x22c] sm:$0xf]  ;;  %v4753_v40 = vld [vmem:[%s7978_s4 + $0x368] sm:$0xf]  ;;  %v4579_v46 = vld [vmem:[%s7978_s4 + $0x218] sm:$0xf0]  ;;  %v4726_v16 = vor.u32 %v5343_v7, %v4723_v14 }
 0x16a   :  { %2878 = vmatpush.bf16.msrb.mxu2 %v4610_v44  ;;  %v4785_v44 = vld [vmem:[%s7978_s4 + $0x3a8] sm:$0xf]  ;;  %v4754_v45 = vor.u32 %v5353_v43, %v4753_v40  ;;  %v4582_v11 = vor.u32 %v5307_v15, %v4579_v46  ;;  %v5377_v20 = vld [vmem:[%s7979_s6 + $0x38] sm:$0xff]  ;;  %v5372_v27 = vld [vmem:[%s7979_s6 + $0x10] sm:$0xff] }
 0x16b   :  { %v1789_v54 = vadd.f32 %v1788_v41, %v1775_v48  ;;  %v1815_v58 = vadd.f32 %v1814_v39, %v1801_v34  ;;  %v4786_v1 = vor.u32 %v5361_v22, %v4785_v44  ;;  %v4595_v39 = vld [vmem:[%s7978_s4 + $0x238] sm:$0xf0]  ;;  %v4737_v48 = vld [vmem:[%s7978_s4 + $0x348] sm:$0xf]  ;;  %3325 = vmatpush.bf16.msrb.mxu0 %v5377_v20  ;;  %v5384_v28 = vld [vmem:[%s7979_s6 + $0x70] sm:$0xff] }
 0x16c   :  { %v4598_v24 = vor.u32 %v5311_v38, %v4595_v39  ;;  %v4721_v34 = vld [vmem:[%s7978_s4 + $0x328] sm:$0xf]  ;;  %v5385_v22 = vld [vmem:[%s7979_s6 + $0x78] sm:$0xff]  ;;  %v5370_v38 = vld [vmem:[%s7979_s6] sm:$0xff]  ;;  %v2971_v20 = vxor.u32 1640531527, %v7268_v47 }
 0x16d   :  { %v1822_v3 = vmax.f32 %v1815_v58, 0.0  ;;  %v5363_v58 = vld [vmem:[%s7978_s4 + $0x3cc] sm:$0xf]  ;;  %3339 = vmatpush.bf16.msrb.mxu1 %v5385_v22  ;;  %v5382_v39 = vld [vmem:[%s7979_s6 + $0x60] sm:$0xff] }
 0x16e   :  { %2879 = vmatpush.bf16.msrb.mxu2 %v4594_v36  ;;  %v4770_v36 = vor.u32 %v5357_v30, %v4769_v29  ;;  %v5375_v44 = vld [vmem:[%s7979_s6 + $0x28] sm:$0xff] }
 0x16f   :  { %3326 = vmatpush.bf16.msrb.mxu0 %v5376_v21 }
 0x170   :  { %v1802_v56 = vpop.f32.mrf.mxu2 }
 0x171   :  { %v1803_v59 = vadd.f32 %v1802_v56, %v1789_v54  ;;  %v1816_v61 = vpop.f32.mrf.mxu3  ;;  %v5367_v54 = vld [vmem:[%s7978_s4 + $0x3ec] sm:$0xf]  ;;  %3340 = vmatpush.bf16.msrb.mxu1 %v5384_v28 }
 0x172   :  { %2880 = vmatpush.bf16.msrb.mxu2 %v4578_v50  ;;  %v4738_v50 = vor.u32 %v5349_v49, %v4737_v48  ;;  %v4822_v56 = vor.u32 %v5367_v54, %v4819_v31  ;;  %v2966_v49 = vxor.u32 1640531527, %v6954_v37  ;;  %v5379_v31 = vld [vmem:[%s7979_s6 + $0x48] sm:$0xff] }
 0x173   :  { %v1817_v25 = vadd.f32 %v1816_v61, %v1803_v59  ;;  %v5359_v59 = vld [vmem:[%s7978_s4 + $0x3ac] sm:$0xf]  ;;  %3327 = vmatpush.bf16.msrb.mxu0 %v5375_v44 }
 0x174   :  { %v2974_v54 = vshrl.u32 %v2966_v49, 16 }
 0x175   :  { %4855 = vmatmul.msk.bf16.vlgmr.msrb.gmra.mxu2 %vm7585_vm8, %v7589_v35  ;;  %v1826_v4 = vmax.f32 %v1817_v25, 0.0  ;;  %v5351_v25 = vld [vmem:[%s7978_s4 + $0x36c] sm:$0xf] }
 0x176   :  { %2929 = vmatpush.bf16.msra.mxu2 %v4694_v51  ;;  %v5345_v51 = vld [vmem:[%s7978_s4 + $0x334] sm:$0xf0] }
 0x177   :  { %v7697_v13 = vpack.c.bf16 %v1826_v4, %v1822_v3  ;;  %v4722_v41 = vor.u32 %v5345_v51, %v4721_v34  ;;  %v4758_v3 = vor.u32 %v5351_v25, %v4755_v12  ;;  %v5347_v4 = vld [vmem:[%s7978_s4 + $0x34c] sm:$0xf]  ;;  %3328 = vmatpush.bf16.msrb.mxu0 %v5374_v8  ;;  %v5380_v51 = vld [vmem:[%s7979_s6 + $0x50] sm:$0xff] }
 0x179   :  { %4834 = vmatmul.msk.bf16.vlgmr.msrb.gmra.mxu3 %vm7687_vm11, %v7697_v13 }
 0x17a   :  { %2930 = vmatpush.bf16.msra.mxu2 %v4678_v60  ;;  %2887 = vmatpush.bf16.msrb.mxu3 %v4818_v6  ;;  %v4787_v60 = vld [vmem:[%s7978_s4 + $0x3b8] sm:$0xf0] }
 0x17b   :  { %v4790_v61 = vor.u32 %v5359_v59, %v4787_v60 }
 0x17e   :  { %2931 = vmatpush.bf16.msra.mxu2 %v4662_v5  ;;  %2888 = vmatpush.bf16.msrb.mxu3 %v4802_v19  ;;  %v4739_v5 = vld [vmem:[%s7978_s4 + $0x358] sm:$0xf0] }
 0x17f   :  { %v4742_v6 = vor.u32 %v5347_v4, %v4739_v5  ;;  %v5389_v5 = vld [vmem:[%s7979_s6 + $0x98] sm:$0xff] }
 0x180   :  { %v2742_v15 = vpop.f32.mrf.mxu0 }
 0x182   :  { %2932 = vmatpush.bf16.msra.mxu2 %v4646_v18  ;;  %2889 = vmatpush.bf16.msrb.mxu3 %v4786_v1  ;;  %v4707_v18 = vld [vmem:[%s7978_s4 + $0x318] sm:$0xf0]  ;;  %v2969_v1 = vxor.u32 1640531527, %v6813_v10  ;;  %v5383_v10 = vld [vmem:[%s7979_s6 + $0x68] sm:$0xff] }
 0x183   :  { %v4710_v19 = vor.u32 %v5339_v17, %v4707_v18  ;;  %3341 = vmatpush.bf16.msrb.mxu1 %v5383_v10  ;;  %v2979_v10 = vshrl.u32 %v2971_v20, 16 }
 0x184   :  { %v2977_v30 = vshrl.u32 %v2969_v1, 16 }
 0x186   :  { %2933 = vmatpush.bf16.msra.mxu2 %v4630_v26  ;;  %2890 = vmatpush.bf16.msrb.mxu3 %v4770_v36  ;;  %v2965_v26 = vxor.u32 1640531527, %v6810_v9  ;;  %v5371_v9 = vld [vmem:[%s7979_s6 + $0x8] sm:$0xff]  ;;  %v2985_v36 = vxor.u32 %v2977_v30, %v2969_v1 }
 0x187   :  { %3342 = vmatpush.bf16.msrb.mxu1 %v5382_v39 }
 0x188   :  { %v2973_v29 = vshrl.u32 %v2965_v26, 16  ;;  %v2993_v43 = vmul.u32 2146121005, %v2985_v36  ;;  %v2744_v59 = vpop.f32.mrf.mxu0  ;;  %v5387_v36 = vld [vmem:[%s7979_s6 + $0x88] sm:$0xff] }
 0x189   :  { %4846 = vmatmul.msk.bf16.vlgmr.msra.gmra.mxu3 %vm7687_vm11, %v7697_v13 }
 0x18a   :  { %2934 = vmatpush.bf16.msra.mxu2 %v4614_v33  ;;  %2891 = vmatpush.bf16.msrb.mxu3 %v4754_v45  ;;  %v2981_v33 = vxor.u32 %v2973_v29, %v2965_v26  ;;  %v5393_v45 = vld [vmem:[%s7979_s6 + $0xb8] sm:$0xff]  ;;  %v3001_v48 = vshrl.u32 %v2993_v43, 15 }
 0x18c   :  { %v2989_v40 = vmul.u32 2146121005, %v2981_v33  ;;  %v3009_v53 = vxor.u32 %v3001_v48, %v2993_v43 }
 0x18e   :  { %2935 = vmatpush.bf16.msra.mxu2 %v4598_v24  ;;  %2892 = vmatpush.bf16.msrb.mxu3 %v4738_v50  ;;  %v5381_v24 = vld [vmem:[%s7979_s6 + $0x58] sm:$0xff]  ;;  %v2997_v46 = vshrl.u32 %v2989_v40, 15  ;;  %v2970_v50 = vxor.u32 1640531527, %v6963_v52  ;;  %v5391_v52 = vld [vmem:[%s7979_s6 + $0xa8] sm:$0xff] }
 0x18f   :  { %3343 = vmatpush.bf16.msrb.mxu1 %v5381_v24 }
 0x190   :  { %v3005_v57 = vxor.u32 %v2997_v46, %v2989_v40  ;;  %v2978_v37 = vshrl.u32 %v2970_v50, 16  ;;  %v2987_v46 = vxor.u32 %v2979_v10, %v2971_v20 }
 0x192   :  { %2936 = vmatpush.bf16.msra.mxu2 %v4582_v11  ;;  %2893 = vmatpush.bf16.msrb.mxu3 %v4722_v41  ;;  %v2756_v11 = vpop.f32.mrf.mxu1  ;;  %v5392_v41 = vld [vmem:[%s7979_s6 + $0xb0] sm:$0xff] }
 0x193   :  { %3344 = vmatpush.bf16.msrb.mxu1 %v5380_v51 }
 0x195   :  { %4867 = vmatmul.msk.bf16.vlgmr.msra.gmra.mxu2 %vm7585_vm8, %v7589_v35  ;;  %v4806_v35 = vor.u32 %v5363_v58, %v4803_v32  ;;  %v2982_v58 = vxor.u32 %v2974_v54, %v2966_v49  ;;  %v2986_v32 = vxor.u32 %v2978_v37, %v2970_v50  ;;  %v5401_v50 = vld [vmem:[%s7979_s6 + $0xf8] sm:$0xff]  ;;  %v2995_v37 = vmul.u32 2146121005, %v2987_v46 }
 0x196   :  { %2894 = vmatpush.bf16.msrb.mxu3 %v4706_v55  ;;  %3353 = vmatpush.bf16.msrb.mxu2 %v5393_v45  ;;  %v3013_v55 = vmul.u32 2221713035, %v3005_v57 }
 0x197   :  { %3345 = vmatpush.bf16.msrb.mxu1 %v5379_v31  ;;  %v2990_v12 = vmul.u32 2146121005, %v2982_v58  ;;  %v2994_v4 = vmul.u32 2146121005, %v2986_v32 }
 0x199   :  { %4858 = vmatmul.msk.bf16.vlgmr.msrb.gmra.mxu3 %vm7687_vm11, %v7697_v13  ;;  %v3002_v18 = vshrl.u32 %v2994_v4, 15 }
 0x19a   :  { %2943 = vmatpush.bf16.msra.mxu3 %v4822_v56  ;;  %3354 = vmatpush.bf16.msrb.mxu2 %v5392_v41  ;;  %v3017_v56 = vmul.u32 2221713035, %v3009_v53  ;;  %v2758_v60 = vpop.f32.mrf.mxu1 }
 0x19b   :  { %v3010_v30 = vxor.u32 %v3002_v18, %v2994_v4 }
 0x19c   :  { %v3025_v25 = vshrl.u32 %v3017_v56, 16 }
 0x19d   :  { %v3018_v45 = vmul.u32 2221713035, %v3010_v30 }
 0x19e   :  { %2944 = vmatpush.bf16.msra.mxu3 %v4806_v35  ;;  %3355 = vmatpush.bf16.msrb.mxu2 %v5391_v52  ;;  %v7889_v35 = vld [vmem:[%s7981_s5] sm:$0xf]  ;;  %v3033_v14 = vxor.u32 %v3025_v25, %v3017_v56  ;;  %v5400_v52 = vld [vmem:[%s7979_s6 + $0xf0] sm:$0xff] }
 0x19f   :  { %v3026_v53 = vshrl.u32 %v3018_v45, 16 }
 0x1a0   :  { %v2798_v44 = vpop.f32.mrf.mxu0  ;;  %v3041_v1 = vshrl.u32 %v3033_v14, 8  ;;  %v5398_v14 = vld [vmem:[%s7979_s6 + $0xe0] sm:$0xff] }
 0x1a2   :  { %2945 = vmatpush.bf16.msra.mxu3 %v4790_v61  ;;  %v5378_v61 = vld [vmem:[%s7979_s6 + $0x40] sm:$0xff]  ;;  %3356 = vmatpush.bf16.msrb.mxu2 %v5390_v62  ;;  %vm7913_vm13 = vcmp.ge.s32.totalorder %v3041_v1, 3355443  ;;  %v5399_v62 = vld [vmem:[%s7979_s6 + $0xe8] sm:$0xff] }
 0x1a3   :  { %3346 = vmatpush.bf16.msrb.mxu1 %v5378_v61  ;;  %v2812_v28 = vpop.f32.mrf.mxu1  ;;  %v3003_v61 = vshrl.u32 %v2995_v37, 15 }
 0x1a6   :  { %2946 = vmatpush.bf16.msra.mxu3 %v4774_v2  ;;  %v3021_v2 = vshrl.u32 %v3013_v55, 16  ;;  %3357 = vmatpush.bf16.msrb.mxu2 %v5389_v5 }
 0x1a8   :  { %v3029_v7 = vxor.u32 %v3021_v2, %v3013_v55  ;;  %v2800_v51 = vpop.f32.mrf.mxu0 }
 0x1aa   :  { %2947 = vmatpush.bf16.msra.mxu3 %v4758_v3  ;;  %v2085_v3 = vperm.slane %v7889_v35, 0  ;;  %v3037_v26 = vshrl.u32 %v3029_v7, 8  ;;  %v3011_v7 = vxor.u32 %v3003_v61, %v2995_v37 }
 0x1ab   :  { %v2814_v31 = vpop.f32.mrf.mxu1 }
 0x1ac   :  { %v2743_v17 = vadd.f32 %v2742_v15, %v2085_v3  ;;  %v2745_v21 = vadd.f32 %v2744_v59, %v2085_v3  ;;  %vm7909_vm12 = vcmp.ge.s32.totalorder %v3037_v26, 3355443  ;;  %v3034_v59 = vxor.u32 %v3026_v53, %v3018_v45  ;;  %v5394_v53 = vld [vmem:[%s7979_s6 + $0xc0] sm:$0xff] }
 0x1ad   :  { %vm4999_vm14 = vmpackc.low %vm7913_vm13, %vm7909_vm12  ;;  %v2087_v26 = vperm.slane %v7889_v35, 2 }
 0x1ae   :  { %2948 = vmatpush.bf16.msra.mxu3 %v4742_v6  ;;  %v2757_v8 = vadd.f32 %v2756_v11, %v2743_v17  ;;  %v2759_v22 = vadd.f32 %v2758_v60, %v2745_v21  ;;  %v5386_v11 = vld [vmem:[%s7979_s6 + $0x80] sm:$0xff]  ;;  %v3042_v5 = vshrl.u32 %v3034_v59, 8 }
 0x1b0   :  { %vm7941_vm0 = vcmp.ge.s32.totalorder %v3042_v5, 3355443 }
 0x1b2   :  { %2949 = vmatpush.bf16.msra.mxu3 %v4726_v16  ;;  %v2998_v16 = vshrl.u32 %v2990_v12, 15 }
 0x1b6   :  { %2950 = vmatpush.bf16.msra.mxu3 %v4710_v19  ;;  %v2967_v19 = vxor.u32 1640531527, %v7265_v23 }
 0x1b9   :  { %4870 = vmatmul.msk.bf16.vlgmr.msra.gmra.mxu3 %vm7687_vm11, %v7697_v13  ;;  %v5373_v13 = vld [vmem:[%s7979_s6 + $0x18] sm:$0xff] }
 0x1ba   :  { %3329 = vmatpush.bf16.msrb.mxu0 %v5373_v13  ;;  %v5388_v13 = vld [vmem:[%s7979_s6 + $0x90] sm:$0xff]  ;;  %3367 = vmatpush.bf16.msrb.mxu3 %v5401_v50 }
 0x1bb   :  { %3358 = vmatpush.bf16.msrb.mxu2 %v5388_v13 }
 0x1be   :  { %3330 = vmatpush.bf16.msrb.mxu0 %v5372_v27  ;;  %v3006_v27 = vxor.u32 %v2998_v16, %v2990_v12  ;;  %3368 = vmatpush.bf16.msrb.mxu3 %v5400_v52 }
 0x1bf   :  { %3359 = vmatpush.bf16.msrb.mxu2 %v5387_v36  ;;  %v5396_v36 = vld [vmem:[%s7979_s6 + $0xd0] sm:$0xff] }
 0x1c0   :  { %v3014_v43 = vmul.u32 2221713035, %v3006_v27  ;;  %v2854_v12 = vpop.f32.mrf.mxu0 }
 0x1c1   :  { %v2868_v13 = vpop.f32.mrf.mxu1 }
 0x1c2   :  { %3331 = vmatpush.bf16.msrb.mxu0 %v5371_v9  ;;  %v2975_v9 = vshrl.u32 %v2967_v19, 16  ;;  %v3022_v41 = vshrl.u32 %v3014_v43, 16  ;;  %3369 = vmatpush.bf16.msrb.mxu3 %v5399_v62 }
 0x1c3   :  { %3360 = vmatpush.bf16.msrb.mxu2 %v5386_v11 }
 0x1c4   :  { %v2983_v15 = vxor.u32 %v2975_v9, %v2967_v19  ;;  %v3030_v58 = vxor.u32 %v3022_v41, %v3014_v43 }
 0x1c6   :  { %3332 = vmatpush.bf16.msrb.mxu0 %v5370_v38  ;;  %v2991_v54 = vmul.u32 2146121005, %v2983_v15  ;;  %v3038_v3 = vshrl.u32 %v3030_v58, 8  ;;  %3370 = vmatpush.bf16.msrb.mxu3 %v5398_v14 }
 0x1c8   :  { %v2999_v60 = vshrl.u32 %v2991_v54, 15  ;;  %vm7937_vm15 = vcmp.ge.s32.totalorder %v3038_v3, 3355443  ;;  %v2856_v10 = vpop.f32.mrf.mxu0  ;;  %v2088_v3 = vperm.slane %v7889_v35, 3 }
 0x1c9   :  { %vm5002_vm1 = vmpackc.low %vm7941_vm0, %vm7937_vm15  ;;  %v2857_v39 = vadd.f32 %v2856_v10, %v2087_v26  ;;  %v2870_v46 = vpop.f32.mrf.mxu1  ;;  %v5402_v10 = vld [vmem:[%s7980_s7] ss:$0 sm:$0xff] }
 0x1d8   :  { %v2770_v34 = vpop.f32.mrf.mxu2 }
 0x1d9   :  { %v2771_v29 = vadd.f32 %v2770_v34, %v2757_v8  ;;  %v2086_v34 = vperm.slane %v7889_v35, 1  ;;  %v3019_v8 = vmul.u32 2221713035, %v3011_v7 }
 0x1db   :  { %v2799_v32 = vadd.f32 %v2798_v44, %v2086_v34  ;;  %v3027_v9 = vshrl.u32 %v3019_v8, 16 }
 0x1dd   :  { %v2813_v2 = vadd.f32 %v2812_v28, %v2799_v32  ;;  %v5397_v28 = vld [vmem:[%s7979_s6 + $0xd8] sm:$0xff]  ;;  %v3035_v43 = vxor.u32 %v3027_v9, %v3019_v8 }
 0x1de   :  { %3371 = vmatpush.bf16.msrb.mxu3 %v5397_v28 }
 0x1df   :  { %v3043_v50 = vshrl.u32 %v3035_v43, 8 }
 0x1e0   :  { %v2772_v63 = vpop.f32.mrf.mxu2 }
 0x1e1   :  { %v2773_v33 = vadd.f32 %v2772_v63, %v2759_v22  ;;  %v2801_v63 = vadd.f32 %v2800_v51, %v2086_v34  ;;  %vm3051_vm3 = vcmp.ge.s32.totalorder %v3043_v50, 3355443 }
 0x1e2   :  { %3372 = vmatpush.bf16.msrb.mxu3 %v5396_v36 }
 0x1e3   :  { %v2815_v25 = vadd.f32 %v2814_v31, %v2801_v63 }
 0x1e8   :  { %v2826_v23 = vpop.f32.mrf.mxu2 }
 0x1e9   :  { %v2827_v4 = vadd.f32 %v2826_v23, %v2813_v2  ;;  %v2968_v23 = vxor.u32 1640531527, %v7524_v42  ;;  %v5395_v42 = vld [vmem:[%s7979_s6 + $0xc8] sm:$0xff] }
 0x1ea   :  { %3373 = vmatpush.bf16.msrb.mxu3 %v5395_v42 }
 0x1ee   :  { %3374 = vmatpush.bf16.msrb.mxu3 %v5394_v53 }
 0x1f0   :  { %v2828_v55 = vpop.f32.mrf.mxu2 }
 0x1f1   :  { %v2829_v16 = vadd.f32 %v2828_v55, %v2815_v25  ;;  %v2924_v25 = vpop.f32.mrf.mxu1 }
 0x1f8   :  { %v2882_v22 = vpop.f32.mrf.mxu2 }
 0x1fc   :  { %v2784_v6 = vpop.f32.mrf.mxu3 }
 0x1fd   :  { %v2785_v47 = vadd.f32 %v2784_v6, %v2771_v29  ;;  %v3007_v6 = vxor.u32 %v2999_v60, %v2991_v54  ;;  %v2910_v60 = vpop.f32.mrf.mxu0 }
 0x1fe   :  { %v2911_v7 = vadd.f32 %v2910_v60, %v2088_v3 }
 0x1ff   :  { %v2957_v48 = vmax.f32 %v2785_v47, 0.0  ;;  %v3015_v44 = vmul.u32 2221713035, %v3007_v6  ;;  %v2855_v47 = vadd.f32 %v2854_v12, %v2087_v26 }
 0x200   :  { %v2925_v19 = vadd.f32 %v2924_v25, %v2911_v7 }
 0x201   :  { %v3023_v30 = vshrl.u32 %v3015_v44, 16  ;;  %v2869_v15 = vadd.f32 %v2868_v13, %v2855_v47 }
 0x203   :  { %v3031_v40 = vxor.u32 %v3023_v30, %v3015_v44 }
 0x204   :  { %v2786_v38 = vpop.f32.mrf.mxu3 }
 0x205   :  { %v2787_v24 = vadd.f32 %v2786_v38, %v2773_v33  ;;  %v2972_v33 = vxor.u32 1640531527, %v7527_v0  ;;  %v2884_v0 = vpop.f32.mrf.mxu2  ;;  %v3039_v11 = vshrl.u32 %v3031_v40, 8  ;;  %v2912_v6 = vpop.f32.mrf.mxu0 }
 0x207   :  { %v2961_v49 = vmax.f32 %v2787_v24, 0.0  ;;  %v2976_v24 = vshrl.u32 %v2968_v23, 16  ;;  %v2980_v45 = vshrl.u32 %v2972_v33, 16  ;;  %vm3047_vm2 = vcmp.ge.s32.totalorder %v3039_v11, 3355443 }
 0x208   :  { %vm5005_vm4 = vmpackc.low %vm3051_vm3, %vm3047_vm2 }
 0x209   :  { %v5000_v57 = vpack.c.bf16 %v2961_v49, %v2957_v48  ;;  %v2871_v48 = vadd.f32 %v2870_v46, %v2857_v39  ;;  %v2883_v49 = vadd.f32 %v2882_v22, %v2869_v15  ;;  %v2984_v34 = vxor.u32 %v2976_v24, %v2968_v23 }
 0x20a   :  { %v2988_v51 = vxor.u32 %v2980_v45, %v2972_v33 }
 0x20b   :  { %5001 = vmatmul.msk.bf16.vlgmr.msrb.gmra.mxu0 %vm4999_vm14, %v5000_v57  ;;  %v2885_v41 = vadd.f32 %v2884_v0, %v2871_v48  ;;  %v2992_v31 = vmul.u32 2146121005, %v2984_v34 }
 0x20c   :  { %v2840_v56 = vpop.f32.mrf.mxu3  ;;  %v2996_v52 = vmul.u32 2146121005, %v2988_v51 }
 0x20d   :  { %v2841_v17 = vadd.f32 %v2840_v56, %v2827_v4  ;;  %v3000_v32 = vshrl.u32 %v2992_v31, 15 }
 0x20e   :  { %v3004_v59 = vshrl.u32 %v2996_v52, 15 }
 0x20f   :  { %v2958_v1 = vmax.f32 %v2841_v17, 0.0  ;;  %v3008_v61 = vxor.u32 %v3000_v32, %v2992_v31 }
 0x210   :  { %v3012_v62 = vxor.u32 %v3004_v59, %v2996_v52 }
 0x211   :  { %v3016_v63 = vmul.u32 2221713035, %v3008_v61 }
 0x212   :  { %v3020_v2 = vmul.u32 2221713035, %v3012_v62 }
 0x213   :  { %v3024_v4 = vshrl.u32 %v3016_v63, 16 }
 0x214   :  { %v2842_v18 = vpop.f32.mrf.mxu3  ;;  %v3028_v5 = vshrl.u32 %v3020_v2, 16 }
 0x215   :  { %v2843_v20 = vadd.f32 %v2842_v18, %v2829_v16  ;;  %v2913_v16 = vadd.f32 %v2912_v6, %v2088_v3  ;;  %v3032_v17 = vxor.u32 %v3024_v4, %v3016_v63 }
 0x216   :  { %v3036_v18 = vxor.u32 %v3028_v5, %v3020_v2 }
 0x217   :  { %v2962_v27 = vmax.f32 %v2843_v20, 0.0  ;;  %v2926_v20 = vpop.f32.mrf.mxu1  ;;  %v3040_v13 = vshrl.u32 %v3032_v17, 8 }
 0x218   :  { %v2938_v12 = vpop.f32.mrf.mxu2  ;;  %v2927_v44 = vadd.f32 %v2926_v20, %v2913_v16  ;;  %v3044_v22 = vshrl.u32 %v3036_v18, 8 }
 0x219   :  { %v5003_v29 = vpack.c.bf16 %v2962_v27, %v2958_v1  ;;  %v2939_v8 = vadd.f32 %v2938_v12, %v2925_v19  ;;  %vm3048_vm5 = vcmp.ge.s32.totalorder %v3040_v13, 3355443 }
 0x21a   :  { %vm3052_vm6 = vcmp.ge.s32.totalorder %v3044_v22, 3355443 }
 0x21b   :  { %5004 = vmatmul.msk.bf16.vlgmr.msrb.gmra.mxu1 %vm5002_vm1, %v5003_v29  ;;  %vm5008_vm7 = vmpackc.low %vm3052_vm6, %vm3048_vm5 }
 0x21c   :  { %v2896_v38 = vpop.f32.mrf.mxu3 }
 0x21d   :  { %v2897_v57 = vadd.f32 %v2896_v38, %v2883_v49 }
 0x21f   :  { %v2959_v55 = vmax.f32 %v2897_v57, 0.0 }
 0x220   :  { %v2940_v21 = vpop.f32.mrf.mxu2 }
 0x221   :  { %v2941_v26 = vadd.f32 %v2940_v21, %v2927_v44 }
 0x224   :  { %v2898_v54 = vpop.f32.mrf.mxu3 }
 0x225   :  { %v2899_v37 = vadd.f32 %v2898_v54, %v2885_v41 }
 0x227   :  { %v2963_v56 = vmax.f32 %v2899_v37, 0.0 }
 0x229   :  { %v5006_v58 = vpack.c.bf16 %v2963_v56, %v2959_v55 }
 0x22b   :  { %5007 = vmatmul.msk.bf16.vlgmr.msrb.gmra.mxu2 %vm5005_vm4, %v5006_v58 }
 0x23c   :  { %v2952_v14 = vpop.f32.mrf.mxu3 }
 0x23d   :  { %v2953_v1 = vadd.f32 %v2952_v14, %v2939_v8 }
 0x23f   :  { %v2960_v35 = vmax.f32 %v2953_v1, 0.0 }
 0x244   :  { %v2954_v27 = vpop.f32.mrf.mxu3 }
 0x245   :  { %v2955_v28 = vadd.f32 %v2954_v27, %v2941_v26 }
 0x247   :  { %v2964_v29 = vmax.f32 %v2955_v28, 0.0 }
 0x249   :  { %v5009_v30 = vpack.c.bf16 %v2964_v29, %v2960_v35 }
 0x24b   :  { %5010 = vmatmul.msk.bf16.vlgmr.msrb.gmra.mxu3 %vm5008_vm7, %v5009_v30 }
 0x288   :  { %v3334_v9 = vpop.f32.mrf.mxu0 }
 0x289   :  { %v3335_v47 = vadd.f32 %v5402_v10, %v3334_v9 }
 0x290   :  { %v3336_v39 = vpop.f32.mrf.mxu0 }
 0x291   :  { %v3337_v45 = vadd.f32 %v5402_v10, %v3336_v39 }
 0x298   :  { %v3348_v23 = vpop.f32.mrf.mxu1 }
 0x299   :  { %v3349_v36 = vadd.f32 %v3348_v23, %v3335_v47 }
 0x2a0   :  { %v3350_v24 = vpop.f32.mrf.mxu1 }
 0x2a1   :  { %v3351_v42 = vadd.f32 %v3350_v24, %v3337_v45 }
 0x2ae   :  { %v3362_v33 = vpop.f32.mrf.mxu2 }
 0x2af   :  { %v3363_v38 = vadd.f32 %v3362_v33, %v3349_v36 }
 0x2b6   :  { %v3364_v15 = vpop.f32.mrf.mxu2 }
 0x2b7   :  { %v3365_v46 = vadd.f32 %v3364_v15, %v3351_v42 }
 0x2ce   :  { %v3376_v40 = vpop.f32.mrf.mxu3 }
 0x2cf   :  { %v3377_v43 = vadd.f32 %v3376_v40, %v3363_v38 }
 0x2d1   :  { %3381 = vst [vmem:[%s7982_s8] sm:$0xff] %v3377_v43 }
 0x2d6   :  { %v3378_v0 = vpop.f32.mrf.mxu3 }
 0x2d7   :  { %v3379_v48 = vadd.f32 %v3378_v0, %v3365_v46 }
 0x2d9   :  { %3382 = vst [vmem:[%s7982_s8 + $0x8] sm:$0xff] %v3379_v48 }

</bundles_post_ra>
